<compile_context>
chip_gen: v7x
topology: tpu7x:2x2x1
jax: 0.10.0
libtpu: 0.0.40
codegen_flags: <defaults>
</compile_context>

<pallas_src>
import math

import jax
import jax.numpy as jnp
from jax.experimental import pallas as pl
from jax.experimental.pallas import tpu as pltpu


_POOL = 4


def _round_up(n, m):
    return ((n + m - 1) // m) * m


# ----------------------------------------------------------------------------
# Wrapper-side parameter packing (BN scale folded into conv weights)
# ----------------------------------------------------------------------------
def _pack_params(p):
    """Pack all weights into one (R,128) block and all shifts/biases into (16,128)."""
    wrows, brows = [], []
    cfg = {}
    state = {"woff": 0}

    def add_w(name, mat):
        mat = mat.astype(jnp.float32)
        r, c = mat.shape
        rp = _round_up(r, 8)
        wrows.append(jnp.pad(mat, ((0, rp - r), (0, 128 - c))))
        cfg[name] = state["woff"]
        state["woff"] += rp

    def add_b(name, vec):
        vec = vec.astype(jnp.float32).reshape(1, -1)
        cfg[name] = len(brows)
        brows.append(jnp.pad(vec, ((0, 0), (0, 128 - vec.shape[1]))))

    def fold(w, scale):                       # w: (K, Cin, Cout), scale: (Cout,)
        k, ci, co = w.shape
        return (w * scale.reshape(1, 1, -1)).reshape(k * ci, co)

    s0, t0 = p["bn1"]
    add_w("stem_w", fold(p["conv1_w"], s0))
    add_b("stem_b", t0)
    for i in range(1, 5):
        q = p[f"rsm{i}"]
        s1, t1 = q["bn1"]
        s2, t2 = q["bn2"]
        s3, t3 = q["bn3"]
        add_w(f"r{i}_w1", fold(q["w1"], s1))
        add_w(f"r{i}_w2", fold(q["w2"], s2))
        add_w(f"r{i}_w3", fold(q["w3"], s3))
        add_b(f"r{i}_b1", t1)
        add_b(f"r{i}_b23", t2 + t3)           # shifts of the two summed branches
    add_w("fc1_w", p["fc1_w"])
    add_w("fc2_w", p["fc2_w"])
    add_b("fc1_b", p["fc1_b"])
    add_b("fc2_b", p["fc2_b"])

    wpack = jnp.concatenate(wrows, axis=0)
    nb = _round_up(len(brows), 8)
    bpack = jnp.concatenate(
        brows + [jnp.zeros((nb - len(brows), 128), jnp.float32)], axis=0)
    return wpack, bpack, cfg


def _stem_im2col(x, K, pad, taps_padded):
    """x: (B, L, Cin) -> (B, L, taps_padded); column k*Cin+c holds x[i+k-pad, c]."""
    B, L, Cin = x.shape
    xp = jnp.pad(x, ((0, 0), (pad, pad), (0, 0)))
    cols = jnp.concatenate([xp[:, k:k + L, :] for k in range(K)], axis=-1)
    extra = taps_padded - K * Cin
    if extra:
        cols = jnp.pad(cols, ((0, 0), (0, 0), (0, extra)))
    return cols


# ----------------------------------------------------------------------------
# Fused whole-network kernel (one batch element per grid step)
# ----------------------------------------------------------------------------
def _make_fused_kernel(L, taps, chans, cfg):
    c0, c1, c2, c3, c4 = chans                # 16, 32, 64, 128, 128
    hid = cfg["hid"]
    L1, L2, L3, L4 = L // 4, L // 16, L // 64, L // 256
    f32 = jnp.float32

    def kernel(xc_ref, w_ref, b_ref, o_ref,
               xs1, yy1, xs2, yy2, xs3, yy3, xs4, yy4):

        def w_rows(off, rows, cout):
            return w_ref[pl.ds(off, rows), pl.ds(0, cout)]

        def bias(row, c):
            return b_ref[pl.ds(row, 1), pl.ds(0, c)]

        def write_slab(slab, data, n, c):
            # valid rows at [1, 1+n); rows 0 and n+1 are the zero conv halo
            slab[pl.ds(0, 1), :] = jnp.zeros((1, c), f32)
            slab[pl.ds(1, n), :] = data
            slab[pl.ds(1 + n, 1), :] = jnp.zeros((1, c), f32)

        # ---- stem: conv7 (im2col matmul) + BN + ReLU fused with maxpool(4) ----
        w0 = w_rows(cfg["stem_w"], taps, c0)
        m = None
        for r in range(_POOL):
            piece = jnp.dot(xc_ref[pl.ds(r, L1, stride=_POOL), :], w0,
                            preferred_element_type=f32)
            m = piece if m is None else jnp.maximum(m, piece)
        write_slab(xs1, jnp.maximum(m + bias(cfg["stem_b"], c0), 0.0), L1, c0)

        # ---- residual stage helpers (BN scale already folded into weights) ----
        def rsm_front(xslab, yyslab, n, cin, cout, key):
            """yy = relu(conv3(x) + b1), written into the padded yy slab."""
            ow1 = cfg[key + "_w1"]
            acc = jnp.zeros((n, cout), f32)
            for k in range(3):
                acc = acc + jnp.dot(xslab[pl.ds(k, n), :],
                                    w_rows(ow1 + k * cin, cin, cout),
                                    preferred_element_type=f32)
            write_slab(yyslab,
                       jnp.maximum(acc + bias(cfg[key + "_b1"], cout), 0.0),
                       n, cout)

        def rsm_pool(xslab, yyslab, nxt, n, cin, cout, key):
            """relu(conv3(yy) + conv1x1(x) + b2+b3) fused with maxpool(4) -> nxt."""
            rsm_front(xslab, yyslab, n, cin, cout, key)
            ow2, ow3 = cfg[key + "_w2"], cfg[key + "_w3"]
            no = n // _POOL
            m = None
            for r in range(_POOL):
                acc = jnp.dot(xslab[pl.ds(1 + r, no, stride=_POOL), :],
                              w_rows(ow3, cin, cout),
                              preferred_element_type=f32)
                for k in range(3):
                    acc = acc + jnp.dot(yyslab[pl.ds(r + k, no, stride=_POOL), :],
                                        w_rows(ow2 + k * cout, cout, cout),
                                        preferred_element_type=f32)
                m = acc if m is None else jnp.maximum(m, acc)
            write_slab(nxt,
                       jnp.maximum(m + bias(cfg[key + "_b23"], cout), 0.0),
                       no, cout)

        rsm_pool(xs1, yy1, xs2, L1, c0, c1, "r1")
        rsm_pool(xs2, yy2, xs3, L2, c1, c2, "r2")
        rsm_pool(xs3, yy3, xs4, L3, c2, c3, "r3")

        # ---- rsm4 (no pool-4) + global max pool + fc1(ReLU) + fc2(ReLU) ----
        rsm_front(xs4, yy4, L4, c3, c4, "r4")
        acc = jnp.dot(xs4[pl.ds(1, L4), :], w_rows(cfg["r4_w3"], c3, c4),
                      preferred_element_type=f32)
        for k in range(3):
            acc = acc + jnp.dot(yy4[pl.ds(k, L4), :],
                                w_rows(cfg["r4_w2"] + k * c4, c4, c4),
                                preferred_element_type=f32)
        z = jnp.maximum(acc + bias(cfg["r4_b23"], c4), 0.0)       # (L4, c4)
        feat = jnp.max(z, axis=0, keepdims=True)                  # global max pool
        h = jnp.maximum(jnp.dot(feat, w_rows(cfg["fc1_w"], c4, hid),
                                preferred_element_type=f32)
                        + bias(cfg["fc1_b"], hid), 0.0)
        logits = jnp.maximum(jnp.dot(h, w_rows(cfg["fc2_w"], hid, 128),
                                     preferred_element_type=f32)
                             + bias(cfg["fc2_b"], 128), 0.0)      # lanes >= n_cls are 0
        o_ref[0] = logits.astype(o_ref.dtype)

    return kernel


# ----------------------------------------------------------------------------
# Forward pass wrapper (single fused pallas_call)
# ----------------------------------------------------------------------------
def tssd_forward(x, params):
    # x: (B, L) or (B, Cin, L) (PyTorch NCL) -> channels-last (B, L, Cin)
    if x.ndim == 2:
        x = x[:, None, :]
    x = jnp.transpose(x, (0, 2, 1)).astype(jnp.float32)
    B, L, Cin = x.shape
    assert L % 256 == 0, "sequence length must be divisible by 4**4"

    K = params["conv1_w"].shape[0]
    taps = _round_up(K * Cin, 8)
    xcol = _stem_im2col(x, K, (K - 1) // 2, taps)

    wpack, bpack, cfg = _pack_params(params)
    c0 = params["conv1_w"].shape[2]
    c1 = params["rsm1"]["w1"].shape[2]
    c2 = params["rsm2"]["w1"].shape[2]
    c3 = params["rsm3"]["w1"].shape[2]
    c4 = params["rsm4"]["w1"].shape[2]
    hid = params["fc1_w"].shape[1]
    ncls = params["fc2_w"].shape[1]
    cfg["hid"] = hid

    L1, L2, L3, L4 = L // 4, L // 16, L // 64, L // 256
    kernel = _make_fused_kernel(L, taps, (c0, c1, c2, c3, c4), cfg)

    # Total VMEM (inputs double-buffered + scratch slabs) is ~4 MB at L=1024,
    # well under the scoped-VMEM defaults on v5e/v6e/v7x.
    out = pl.pallas_call(
        kernel,
        out_shape=jax.ShapeDtypeStruct((B, 1, 128), jnp.float32),
        grid=(B,),
        in_specs=[
            pl.BlockSpec((None, L, taps), lambda b: (b, 0, 0)),   # im2col'd input
            pl.BlockSpec(wpack.shape, lambda b: (0, 0)),          # packed weights
            pl.BlockSpec(bpack.shape, lambda b: (0, 0)),          # packed shifts/biases
        ],
        out_specs=pl.BlockSpec((1, 1, 128), lambda b: (b, 0, 0)),
        scratch_shapes=[
            pltpu.VMEM((L1 + 2, c0), jnp.float32),   # rsm1 input slab
            pltpu.VMEM((L1 + 2, c1), jnp.float32),   # rsm1 yy slab
            pltpu.VMEM((L2 + 2, c1), jnp.float32),   # rsm2 input slab
            pltpu.VMEM((L2 + 2, c2), jnp.float32),   # rsm2 yy slab
            pltpu.VMEM((L3 + 2, c2), jnp.float32),   # rsm3 input slab
            pltpu.VMEM((L3 + 2, c3), jnp.float32),   # rsm3 yy slab
            pltpu.VMEM((L4 + 2, c3), jnp.float32),   # rsm4 input slab
            pltpu.VMEM((L4 + 2, c4), jnp.float32),   # rsm4 yy slab
        ],
        compiler_params=pltpu.CompilerParams(
            dimension_semantics=("parallel",)),
    )(xcol, wpack, bpack)
    return out.reshape(B, 128)[:, :ncls]


# ----------------------------------------------------------------------------
# Parameter init (deterministic, synthetic; BN running stats folded)
# ----------------------------------------------------------------------------
def _conv_weight(key, cout, cin, k):
    w = jax.random.normal(key, (cout, cin, k), jnp.float32) / math.sqrt(cin * k)
    return jnp.transpose(w, (2, 1, 0))                        # (K, Cin, Cout)


def _bn_params(key, c, eps=1e-5):
    k1, k2, k3, k4 = jax.random.split(key, 4)
    gamma = 1.0 + 0.1 * jax.random.normal(k1, (c,), jnp.float32)
    beta = 0.1 * jax.random.normal(k2, (c,), jnp.float32)
    mean = 0.1 * jax.random.normal(k3, (c,), jnp.float32)
    var = jnp.abs(jax.random.normal(k4, (c,), jnp.float32)) + 0.5
    scale = gamma / jnp.sqrt(var + eps)
    shift = beta - mean * scale
    return scale, shift


def _rsm_params(key, cin, cout):
    ks = jax.random.split(key, 6)
    return dict(
        w1=_conv_weight(ks[0], cout, cin, 3), bn1=_bn_params(ks[1], cout),
        w2=_conv_weight(ks[2], cout, cout, 3), bn2=_bn_params(ks[3], cout),
        w3=_conv_weight(ks[4], cout, cin, 1), bn3=_bn_params(ks[5], cout),
    )


def init_params(key, in_channels=1):
    ks = jax.random.split(key, 10)
    p = {}
    p["conv1_w"] = _conv_weight(ks[0], 16, in_channels, 7)
    p["bn1"] = _bn_params(ks[1], 16)
    p["rsm1"] = _rsm_params(ks[2], 16, 32)
    p["rsm2"] = _rsm_params(ks[3], 32, 64)
    p["rsm3"] = _rsm_params(ks[4], 64, 128)
    p["rsm4"] = _rsm_params(ks[5], 128, 128)
    p["fc1_w"] = jax.random.normal(ks[6], (128, 64), jnp.float32) / math.sqrt(128)
    p["fc1_b"] = 0.1 * jax.random.normal(ks[7], (64,), jnp.float32)
    p["fc2_w"] = jax.random.normal(ks[8], (64, 30), jnp.float32) / math.sqrt(64)
    p["fc2_b"] = 0.1 * jax.random.normal(ks[9], (30,), jnp.float32)
    return p


# ----------------------------------------------------------------------------
# Pure-JAX reference (for correctness check only)
# ----------------------------------------------------------------------------
def _conv1d_ref(x, w, pad):
    return jax.lax.conv_general_dilated(
        x, w, window_strides=(1,), padding=[(pad, pad)],
        dimension_numbers=("NWC", "WIO", "NWC"),
        precision=jax.lax.Precision.HIGHEST)


def tssd_reference(x, p):
    if x.ndim == 2:
        x = x[:, None, :]
    x = jnp.transpose(x, (0, 2, 1))

    def bn(z, st):
        s, t = st
        return z * s + t

    def mp(z, k):
        B, L, C = z.shape
        return jnp.max(z[:, :(L // k) * k].reshape(B, L // k, k, C), axis=2)

    def rsm(z, q):
        yy = jax.nn.relu(bn(_conv1d_ref(z, q["w1"], 1), q["bn1"]))
        yy = bn(_conv1d_ref(yy, q["w2"], 1), q["bn2"])
        sc = bn(_conv1d_ref(z, q["w3"], 0), q["bn3"])
        return jax.nn.relu(sc + yy)

    z = jax.nn.relu(bn(_conv1d_ref(x, p["conv1_w"], 3), p["bn1"]))
    z = mp(z, 4)
    z = rsm(z, p["rsm1"]); z = mp(z, 4)
    z = rsm(z, p["rsm2"]); z = mp(z, 4)
    z = rsm(z, p["rsm3"]); z = mp(z, 4)
    z = rsm(z, p["rsm4"])
    z = jnp.max(z, axis=1)                                    # global max pool + flatten
    z = jax.nn.relu(jnp.dot(z, p["fc1_w"], precision=jax.lax.Precision.HIGHEST)
                    + p["fc1_b"])
    z = jax.nn.relu(jnp.dot(z, p["fc2_w"], precision=jax.lax.Precision.HIGHEST)
                    + p["fc2_b"])
    return z


if __name__ == "__main__":
    key = jax.random.PRNGKey(0)
    kp, kx = jax.random.split(key)
    params = init_params(kp)

    B, L = 2, 1024                       # L divisible by 4^4 so every pool is clean
    x = jax.random.normal(kx, (B, L), jnp.float32)

    out = jax.jit(tssd_forward)(x, params)
    out = jax.block_until_ready(out)
    assert out.shape == (B, 30), out.shape
    assert bool(jnp.all(jnp.isfinite(out)))

    ref = jax.jit(tssd_reference)(x, params)
    ref = jax.block_until_ready(ref)
    max_err = float(jnp.max(jnp.abs(out - ref)))
    assert bool(jnp.allclose(out, ref, rtol=5e-2, atol=5e-2)), max_err

    print("KERNEL_OK")
</pallas_src>

<mosaic_0001>
module attributes {stable_mosaic.version = 11 : i64} {
  func.func @kernel(%arg0: i32, %arg1: memref<1x1024x8xf32, #tpu.memory_space<vmem>>, %arg2: memref<2216x128xf32, #tpu.memory_space<vmem>>, %arg3: memref<16x128xf32, #tpu.memory_space<vmem>>, %arg4: memref<1x1x128xf32, #tpu.memory_space<vmem>>, %arg5: memref<258x16xf32, #tpu.memory_space<vmem>>, %arg6: memref<258x32xf32, #tpu.memory_space<vmem>>, %arg7: memref<66x32xf32, #tpu.memory_space<vmem>>, %arg8: memref<66x64xf32, #tpu.memory_space<vmem>>, %arg9: memref<18x64xf32, #tpu.memory_space<vmem>>, %arg10: memref<18x128xf32, #tpu.memory_space<vmem>>, %arg11: memref<6x128xf32, #tpu.memory_space<vmem>>, %arg12: memref<6x128xf32, #tpu.memory_space<vmem>>) attributes {dimension_semantics = [#tpu.dimension_semantics<parallel>], iteration_bounds = array<i64: 2>, scalar_prefetch = 0 : i64, scratch_operands = 8 : i64, tpu.core_type = #tpu.core_type<tc>, window_params = [{transform_indices = @transform_0, window_bounds = array<i64: 1, 1024, 8>}, {pipeline_mode = #tpu.pipeline_mode<synchronous>, transform_indices = @transform_1, window_bounds = array<i64: 2216, 128>}, {pipeline_mode = #tpu.pipeline_mode<synchronous>, transform_indices = @transform_2, window_bounds = array<i64: 16, 128>}, {transform_indices = @transform_3, window_bounds = array<i64: 1, 1, 128>}]} {
    %c0 = arith.constant 0 : index
    %c0_0 = arith.constant 0 : index
    %0 = vector.load %arg2[%c0, %c0_0] : memref<2216x128xf32, #tpu.memory_space<vmem>>, vector<8x16xf32>
    %c0_1 = arith.constant 0 : index
    %c0_2 = arith.constant 0 : index
    %c0_3 = arith.constant 0 : index
    %1 = tpu.strided_load %arg1[%c0_1, %c0_2, %c0_3] {strides = array<i32: 1, 4, 1>} : memref<1x1024x8xf32, #tpu.memory_space<vmem>>, vector<1x256x8xf32>
    %2 = vector.shape_cast %1 : vector<1x256x8xf32> to vector<256x8xf32>
    %cst = arith.constant dense<0.000000e+00> : vector<256x16xf32>
    %3 = tpu.matmul %2, %0, %cst {dimension_numbers = #tpu.dot_dimension_numbers<[1], [0], [0], [1], [0, 0, 1, 1], [], []>} : vector<256x8xf32>, vector<8x16xf32>, vector<256x16xf32> -> vector<256x16xf32>
    %c0_4 = arith.constant 0 : index
    %c1 = arith.constant 1 : index
    %c0_5 = arith.constant 0 : index
    %4 = tpu.strided_load %arg1[%c0_4, %c1, %c0_5] {strides = array<i32: 1, 4, 1>} : memref<1x1024x8xf32, #tpu.memory_space<vmem>>, vector<1x256x8xf32>
    %5 = vector.shape_cast %4 : vector<1x256x8xf32> to vector<256x8xf32>
    %cst_6 = arith.constant dense<0.000000e+00> : vector<256x16xf32>
    %6 = tpu.matmul %5, %0, %cst_6 {dimension_numbers = #tpu.dot_dimension_numbers<[1], [0], [0], [1], [0, 0, 1, 1], [], []>} : vector<256x8xf32>, vector<8x16xf32>, vector<256x16xf32> -> vector<256x16xf32>
    %7 = arith.maximumf %3, %6 : vector<256x16xf32>
    %c0_7 = arith.constant 0 : index
    %c2 = arith.constant 2 : index
    %c0_8 = arith.constant 0 : index
    %8 = tpu.strided_load %arg1[%c0_7, %c2, %c0_8] {strides = array<i32: 1, 4, 1>} : memref<1x1024x8xf32, #tpu.memory_space<vmem>>, vector<1x256x8xf32>
    %9 = vector.shape_cast %8 : vector<1x256x8xf32> to vector<256x8xf32>
    %cst_9 = arith.constant dense<0.000000e+00> : vector<256x16xf32>
    %10 = tpu.matmul %9, %0, %cst_9 {dimension_numbers = #tpu.dot_dimension_numbers<[1], [0], [0], [1], [0, 0, 1, 1], [], []>} : vector<256x8xf32>, vector<8x16xf32>, vector<256x16xf32> -> vector<256x16xf32>
    %11 = arith.maximumf %7, %10 : vector<256x16xf32>
    %c0_10 = arith.constant 0 : index
    %c3 = arith.constant 3 : index
    %c0_11 = arith.constant 0 : index
    %12 = tpu.strided_load %arg1[%c0_10, %c3, %c0_11] {strides = array<i32: 1, 4, 1>} : memref<1x1024x8xf32, #tpu.memory_space<vmem>>, vector<1x256x8xf32>
    %13 = vector.shape_cast %12 : vector<1x256x8xf32> to vector<256x8xf32>
    %cst_12 = arith.constant dense<0.000000e+00> : vector<256x16xf32>
    %14 = tpu.matmul %13, %0, %cst_12 {dimension_numbers = #tpu.dot_dimension_numbers<[1], [0], [0], [1], [0, 0, 1, 1], [], []>} : vector<256x8xf32>, vector<8x16xf32>, vector<256x16xf32> -> vector<256x16xf32>
    %15 = arith.maximumf %11, %14 : vector<256x16xf32>
    %c0_13 = arith.constant 0 : index
    %c0_14 = arith.constant 0 : index
    %16 = vector.load %arg3[%c0_13, %c0_14] : memref<16x128xf32, #tpu.memory_space<vmem>>, vector<1x16xf32>
    %17 = vector.broadcast %16 : vector<1x16xf32> to vector<256x16xf32>
    %18 = arith.addf %15, %17 : vector<256x16xf32>
    %cst_15 = arith.constant 0.000000e+00 : f32
    %19 = vector.broadcast %cst_15 : f32 to vector<256x16xf32>
    %20 = arith.maximumf %18, %19 : vector<256x16xf32>
    %cst_16 = arith.constant 0.000000e+00 : f32
    %21 = vector.broadcast %cst_16 : f32 to vector<1x16xf32>
    %c0_17 = arith.constant 0 : index
    %c0_18 = arith.constant 0 : index
    %22 = vector.load %arg5[%c0_17, %c0_18] : memref<258x16xf32, #tpu.memory_space<vmem>>, vector<1x16xf32>
    tpu.vector_store %arg5[%c0_17, %c0_18], %21 {strides = array<i32>} : memref<258x16xf32, #tpu.memory_space<vmem>>, vector<1x16xf32>,
    %c1_19 = arith.constant 1 : index
    %c0_20 = arith.constant 0 : index
    %23 = vector.load %arg5[%c1_19, %c0_20] : memref<258x16xf32, #tpu.memory_space<vmem>>, vector<256x16xf32>
    tpu.vector_store %arg5[%c1_19, %c0_20], %20 {strides = array<i32>} : memref<258x16xf32, #tpu.memory_space<vmem>>, vector<256x16xf32>,
    %cst_21 = arith.constant 0.000000e+00 : f32
    %24 = vector.broadcast %cst_21 : f32 to vector<1x16xf32>
    %c257 = arith.constant 257 : index
    %c0_22 = arith.constant 0 : index
    %25 = vector.load %arg5[%c257, %c0_22] : memref<258x16xf32, #tpu.memory_space<vmem>>, vector<1x16xf32>
    tpu.vector_store %arg5[%c257, %c0_22], %24 {strides = array<i32>} : memref<258x16xf32, #tpu.memory_space<vmem>>, vector<1x16xf32>,
    %cst_23 = arith.constant 0.000000e+00 : f32
    %26 = vector.broadcast %cst_23 : f32 to vector<256x32xf32>
    %c0_24 = arith.constant 0 : index
    %c0_25 = arith.constant 0 : index
    %27 = vector.load %arg5[%c0_24, %c0_25] : memref<258x16xf32, #tpu.memory_space<vmem>>, vector<256x16xf32>
    %c8 = arith.constant 8 : index
    %c0_26 = arith.constant 0 : index
    %28 = vector.load %arg2[%c8, %c0_26] : memref<2216x128xf32, #tpu.memory_space<vmem>>, vector<16x32xf32>
    %cst_27 = arith.constant dense<0.000000e+00> : vector<256x32xf32>
    %29 = tpu.matmul %27, %28, %cst_27 {dimension_numbers = #tpu.dot_dimension_numbers<[1], [0], [0], [1], [0, 0, 1, 1], [], []>} : vector<256x16xf32>, vector<16x32xf32>, vector<256x32xf32> -> vector<256x32xf32>
    %30 = arith.addf %26, %29 : vector<256x32xf32>
    %c1_28 = arith.constant 1 : index
    %c0_29 = arith.constant 0 : index
    %31 = vector.load %arg5[%c1_28, %c0_29] : memref<258x16xf32, #tpu.memory_space<vmem>>, vector<256x16xf32>
    %c24 = arith.constant 24 : index
    %c0_30 = arith.constant 0 : index
    %32 = vector.load %arg2[%c24, %c0_30] : memref<2216x128xf32, #tpu.memory_space<vmem>>, vector<16x32xf32>
    %cst_31 = arith.constant dense<0.000000e+00> : vector<256x32xf32>
    %33 = tpu.matmul %31, %32, %cst_31 {dimension_numbers = #tpu.dot_dimension_numbers<[1], [0], [0], [1], [0, 0, 1, 1], [], []>} : vector<256x16xf32>, vector<16x32xf32>, vector<256x32xf32> -> vector<256x32xf32>
    %34 = arith.addf %30, %33 : vector<256x32xf32>
    %c2_32 = arith.constant 2 : index
    %c0_33 = arith.constant 0 : index
    %35 = vector.load %arg5[%c2_32, %c0_33] : memref<258x16xf32, #tpu.memory_space<vmem>>, vector<256x16xf32>
    %c40 = arith.constant 40 : index
    %c0_34 = arith.constant 0 : index
    %36 = vector.load %arg2[%c40, %c0_34] : memref<2216x128xf32, #tpu.memory_space<vmem>>, vector<16x32xf32>
    %cst_35 = arith.constant dense<0.000000e+00> : vector<256x32xf32>
    %37 = tpu.matmul %35, %36, %cst_35 {dimension_numbers = #tpu.dot_dimension_numbers<[1], [0], [0], [1], [0, 0, 1, 1], [], []>} : vector<256x16xf32>, vector<16x32xf32>, vector<256x32xf32> -> vector<256x32xf32>
    %38 = arith.addf %34, %37 : vector<256x32xf32>
    %c1_36 = arith.constant 1 : index
    %c0_37 = arith.constant 0 : index
    %39 = vector.load %arg3[%c1_36, %c0_37] : memref<16x128xf32, #tpu.memory_space<vmem>>, vector<1x32xf32>
    %40 = vector.broadcast %39 : vector<1x32xf32> to vector<256x32xf32>
    %41 = arith.addf %38, %40 : vector<256x32xf32>
    %cst_38 = arith.constant 0.000000e+00 : f32
    %42 = vector.broadcast %cst_38 : f32 to vector<256x32xf32>
    %43 = arith.maximumf %41, %42 : vector<256x32xf32>
    %cst_39 = arith.constant 0.000000e+00 : f32
    %44 = vector.broadcast %cst_39 : f32 to vector<1x32xf32>
    %c0_40 = arith.constant 0 : index
    %c0_41 = arith.constant 0 : index
    %45 = vector.load %arg6[%c0_40, %c0_41] : memref<258x32xf32, #tpu.memory_space<vmem>>, vector<1x32xf32>
    tpu.vector_store %arg6[%c0_40, %c0_41], %44 {strides = array<i32>} : memref<258x32xf32, #tpu.memory_space<vmem>>, vector<1x32xf32>,
    %c1_42 = arith.constant 1 : index
    %c0_43 = arith.constant 0 : index
    %46 = vector.load %arg6[%c1_42, %c0_43] : memref<258x32xf32, #tpu.memory_space<vmem>>, vector<256x32xf32>
    tpu.vector_store %arg6[%c1_42, %c0_43], %43 {strides = array<i32>} : memref<258x32xf32, #tpu.memory_space<vmem>>, vector<256x32xf32>,
    %cst_44 = arith.constant 0.000000e+00 : f32
    %47 = vector.broadcast %cst_44 : f32 to vector<1x32xf32>
    %c257_45 = arith.constant 257 : index
    %c0_46 = arith.constant 0 : index
    %48 = vector.load %arg6[%c257_45, %c0_46] : memref<258x32xf32, #tpu.memory_space<vmem>>, vector<1x32xf32>
    tpu.vector_store %arg6[%c257_45, %c0_46], %47 {strides = array<i32>} : memref<258x32xf32, #tpu.memory_space<vmem>>, vector<1x32xf32>,
    %c1_47 = arith.constant 1 : index
    %c0_48 = arith.constant 0 : index
    %49 = tpu.strided_load %arg5[%c1_47, %c0_48] {strides = array<i32: 4, 1>} : memref<258x16xf32, #tpu.memory_space<vmem>>, vector<64x16xf32>
    %c152 = arith.constant 152 : index
    %c0_49 = arith.constant 0 : index
    %50 = vector.load %arg2[%c152, %c0_49] : memref<2216x128xf32, #tpu.memory_space<vmem>>, vector<16x32xf32>
    %cst_50 = arith.constant dense<0.000000e+00> : vector<64x32xf32>
    %51 = tpu.matmul %49, %50, %cst_50 {dimension_numbers = #tpu.dot_dimension_numbers<[1], [0], [0], [1], [0, 0, 1, 1], [], []>} : vector<64x16xf32>, vector<16x32xf32>, vector<64x32xf32> -> vector<64x32xf32>
    %c0_51 = arith.constant 0 : index
    %c0_52 = arith.constant 0 : index
    %52 = tpu.strided_load %arg6[%c0_51, %c0_52] {strides = array<i32: 4, 1>} : memref<258x32xf32, #tpu.memory_space<vmem>>, vector<64x32xf32>
    %c56 = arith.constant 56 : index
    %c0_53 = arith.constant 0 : index
    %53 = vector.load %arg2[%c56, %c0_53] : memref<2216x128xf32, #tpu.memory_space<vmem>>, vector<32x32xf32>
    %cst_54 = arith.constant dense<0.000000e+00> : vector<64x32xf32>
    %54 = tpu.matmul %52, %53, %cst_54 {dimension_numbers = #tpu.dot_dimension_numbers<[1], [0], [0], [1], [0, 0, 1, 1], [], []>} : vector<64x32xf32>, vector<32x32xf32>, vector<64x32xf32> -> vector<64x32xf32>
    %55 = arith.addf %51, %54 : vector<64x32xf32>
    %c1_55 = arith.constant 1 : index
    %c0_56 = arith.constant 0 : index
    %56 = tpu.strided_load %arg6[%c1_55, %c0_56] {strides = array<i32: 4, 1>} : memref<258x32xf32, #tpu.memory_space<vmem>>, vector<64x32xf32>
    %c88 = arith.constant 88 : index
    %c0_57 = arith.constant 0 : index
    %57 = vector.load %arg2[%c88, %c0_57] : memref<2216x128xf32, #tpu.memory_space<vmem>>, vector<32x32xf32>
    %cst_58 = arith.constant dense<0.000000e+00> : vector<64x32xf32>
    %58 = tpu.matmul %56, %57, %cst_58 {dimension_numbers = #tpu.dot_dimension_numbers<[1], [0], [0], [1], [0, 0, 1, 1], [], []>} : vector<64x32xf32>, vector<32x32xf32>, vector<64x32xf32> -> vector<64x32xf32>
    %59 = arith.addf %55, %58 : vector<64x32xf32>
    %c2_59 = arith.constant 2 : index
    %c0_60 = arith.constant 0 : index
    %60 = tpu.strided_load %arg6[%c2_59, %c0_60] {strides = array<i32: 4, 1>} : memref<258x32xf32, #tpu.memory_space<vmem>>, vector<64x32xf32>
    %c120 = arith.constant 120 : index
    %c0_61 = arith.constant 0 : index
    %61 = vector.load %arg2[%c120, %c0_61] : memref<2216x128xf32, #tpu.memory_space<vmem>>, vector<32x32xf32>
    %cst_62 = arith.constant dense<0.000000e+00> : vector<64x32xf32>
    %62 = tpu.matmul %60, %61, %cst_62 {dimension_numbers = #tpu.dot_dimension_numbers<[1], [0], [0], [1], [0, 0, 1, 1], [], []>} : vector<64x32xf32>, vector<32x32xf32>, vector<64x32xf32> -> vector<64x32xf32>
    %63 = arith.addf %59, %62 : vector<64x32xf32>
    %c2_63 = arith.constant 2 : index
    %c0_64 = arith.constant 0 : index
    %64 = tpu.strided_load %arg5[%c2_63, %c0_64] {strides = array<i32: 4, 1>} : memref<258x16xf32, #tpu.memory_space<vmem>>, vector<64x16xf32>
    %c152_65 = arith.constant 152 : index
    %c0_66 = arith.constant 0 : index
    %65 = vector.load %arg2[%c152_65, %c0_66] : memref<2216x128xf32, #tpu.memory_space<vmem>>, vector<16x32xf32>
    %cst_67 = arith.constant dense<0.000000e+00> : vector<64x32xf32>
    %66 = tpu.matmul %64, %65, %cst_67 {dimension_numbers = #tpu.dot_dimension_numbers<[1], [0], [0], [1], [0, 0, 1, 1], [], []>} : vector<64x16xf32>, vector<16x32xf32>, vector<64x32xf32> -> vector<64x32xf32>
    %c1_68 = arith.constant 1 : index
    %c0_69 = arith.constant 0 : index
    %67 = tpu.strided_load %arg6[%c1_68, %c0_69] {strides = array<i32: 4, 1>} : memref<258x32xf32, #tpu.memory_space<vmem>>, vector<64x32xf32>
    %c56_70 = arith.constant 56 : index
    %c0_71 = arith.constant 0 : index
    %68 = vector.load %arg2[%c56_70, %c0_71] : memref<2216x128xf32, #tpu.memory_space<vmem>>, vector<32x32xf32>
    %cst_72 = arith.constant dense<0.000000e+00> : vector<64x32xf32>
    %69 = tpu.matmul %67, %68, %cst_72 {dimension_numbers = #tpu.dot_dimension_numbers<[1], [0], [0], [1], [0, 0, 1, 1], [], []>} : vector<64x32xf32>, vector<32x32xf32>, vector<64x32xf32> -> vector<64x32xf32>
    %70 = arith.addf %66, %69 : vector<64x32xf32>
    %c2_73 = arith.constant 2 : index
    %c0_74 = arith.constant 0 : index
    %71 = tpu.strided_load %arg6[%c2_73, %c0_74] {strides = array<i32: 4, 1>} : memref<258x32xf32, #tpu.memory_space<vmem>>, vector<64x32xf32>
    %c88_75 = arith.constant 88 : index
    %c0_76 = arith.constant 0 : index
    %72 = vector.load %arg2[%c88_75, %c0_76] : memref<2216x128xf32, #tpu.memory_space<vmem>>, vector<32x32xf32>
    %cst_77 = arith.constant dense<0.000000e+00> : vector<64x32xf32>
    %73 = tpu.matmul %71, %72, %cst_77 {dimension_numbers = #tpu.dot_dimension_numbers<[1], [0], [0], [1], [0, 0, 1, 1], [], []>} : vector<64x32xf32>, vector<32x32xf32>, vector<64x32xf32> -> vector<64x32xf32>
    %74 = arith.addf %70, %73 : vector<64x32xf32>
    %c3_78 = arith.constant 3 : index
    %c0_79 = arith.constant 0 : index
    %75 = tpu.strided_load %arg6[%c3_78, %c0_79] {strides = array<i32: 4, 1>} : memref<258x32xf32, #tpu.memory_space<vmem>>, vector<64x32xf32>
    %c120_80 = arith.constant 120 : index
    %c0_81 = arith.constant 0 : index
    %76 = vector.load %arg2[%c120_80, %c0_81] : memref<2216x128xf32, #tpu.memory_space<vmem>>, vector<32x32xf32>
    %cst_82 = arith.constant dense<0.000000e+00> : vector<64x32xf32>
    %77 = tpu.matmul %75, %76, %cst_82 {dimension_numbers = #tpu.dot_dimension_numbers<[1], [0], [0], [1], [0, 0, 1, 1], [], []>} : vector<64x32xf32>, vector<32x32xf32>, vector<64x32xf32> -> vector<64x32xf32>
    %78 = arith.addf %74, %77 : vector<64x32xf32>
    %79 = arith.maximumf %63, %78 : vector<64x32xf32>
    %c3_83 = arith.constant 3 : index
    %c0_84 = arith.constant 0 : index
    %80 = tpu.strided_load %arg5[%c3_83, %c0_84] {strides = array<i32: 4, 1>} : memref<258x16xf32, #tpu.memory_space<vmem>>, vector<64x16xf32>
    %c152_85 = arith.constant 152 : index
    %c0_86 = arith.constant 0 : index
    %81 = vector.load %arg2[%c152_85, %c0_86] : memref<2216x128xf32, #tpu.memory_space<vmem>>, vector<16x32xf32>
    %cst_87 = arith.constant dense<0.000000e+00> : vector<64x32xf32>
    %82 = tpu.matmul %80, %81, %cst_87 {dimension_numbers = #tpu.dot_dimension_numbers<[1], [0], [0], [1], [0, 0, 1, 1], [], []>} : vector<64x16xf32>, vector<16x32xf32>, vector<64x32xf32> -> vector<64x32xf32>
    %c2_88 = arith.constant 2 : index
    %c0_89 = arith.constant 0 : index
    %83 = tpu.strided_load %arg6[%c2_88, %c0_89] {strides = array<i32: 4, 1>} : memref<258x32xf32, #tpu.memory_space<vmem>>, vector<64x32xf32>
    %c56_90 = arith.constant 56 : index
    %c0_91 = arith.constant 0 : index
    %84 = vector.load %arg2[%c56_90, %c0_91] : memref<2216x128xf32, #tpu.memory_space<vmem>>, vector<32x32xf32>
    %cst_92 = arith.constant dense<0.000000e+00> : vector<64x32xf32>
    %85 = tpu.matmul %83, %84, %cst_92 {dimension_numbers = #tpu.dot_dimension_numbers<[1], [0], [0], [1], [0, 0, 1, 1], [], []>} : vector<64x32xf32>, vector<32x32xf32>, vector<64x32xf32> -> vector<64x32xf32>
    %86 = arith.addf %82, %85 : vector<64x32xf32>
    %c3_93 = arith.constant 3 : index
    %c0_94 = arith.constant 0 : index
    %87 = tpu.strided_load %arg6[%c3_93, %c0_94] {strides = array<i32: 4, 1>} : memref<258x32xf32, #tpu.memory_space<vmem>>, vector<64x32xf32>
    %c88_95 = arith.constant 88 : index
    %c0_96 = arith.constant 0 : index
    %88 = vector.load %arg2[%c88_95, %c0_96] : memref<2216x128xf32, #tpu.memory_space<vmem>>, vector<32x32xf32>
    %cst_97 = arith.constant dense<0.000000e+00> : vector<64x32xf32>
    %89 = tpu.matmul %87, %88, %cst_97 {dimension_numbers = #tpu.dot_dimension_numbers<[1], [0], [0], [1], [0, 0, 1, 1], [], []>} : vector<64x32xf32>, vector<32x32xf32>, vector<64x32xf32> -> vector<64x32xf32>
    %90 = arith.addf %86, %89 : vector<64x32xf32>
    %c4 = arith.constant 4 : index
    %c0_98 = arith.constant 0 : index
    %91 = tpu.strided_load %arg6[%c4, %c0_98] {strides = array<i32: 4, 1>} : memref<258x32xf32, #tpu.memory_space<vmem>>, vector<64x32xf32>
    %c120_99 = arith.constant 120 : index
    %c0_100 = arith.constant 0 : index
    %92 = vector.load %arg2[%c120_99, %c0_100] : memref<2216x128xf32, #tpu.memory_space<vmem>>, vector<32x32xf32>
    %cst_101 = arith.constant dense<0.000000e+00> : vector<64x32xf32>
    %93 = tpu.matmul %91, %92, %cst_101 {dimension_numbers = #tpu.dot_dimension_numbers<[1], [0], [0], [1], [0, 0, 1, 1], [], []>} : vector<64x32xf32>, vector<32x32xf32>, vector<64x32xf32> -> vector<64x32xf32>
    %94 = arith.addf %90, %93 : vector<64x32xf32>
    %95 = arith.maximumf %79, %94 : vector<64x32xf32>
    %c4_102 = arith.constant 4 : index
    %c0_103 = arith.constant 0 : index
    %96 = tpu.strided_load %arg5[%c4_102, %c0_103] {strides = array<i32: 4, 1>} : memref<258x16xf32, #tpu.memory_space<vmem>>, vector<64x16xf32>
    %c152_104 = arith.constant 152 : index
    %c0_105 = arith.constant 0 : index
    %97 = vector.load %arg2[%c152_104, %c0_105] : memref<2216x128xf32, #tpu.memory_space<vmem>>, vector<16x32xf32>
    %cst_106 = arith.constant dense<0.000000e+00> : vector<64x32xf32>
    %98 = tpu.matmul %96, %97, %cst_106 {dimension_numbers = #tpu.dot_dimension_numbers<[1], [0], [0], [1], [0, 0, 1, 1], [], []>} : vector<64x16xf32>, vector<16x32xf32>, vector<64x32xf32> -> vector<64x32xf32>
    %c3_107 = arith.constant 3 : index
    %c0_108 = arith.constant 0 : index
    %99 = tpu.strided_load %arg6[%c3_107, %c0_108] {strides = array<i32: 4, 1>} : memref<258x32xf32, #tpu.memory_space<vmem>>, vector<64x32xf32>
    %c56_109 = arith.constant 56 : index
    %c0_110 = arith.constant 0 : index
    %100 = vector.load %arg2[%c56_109, %c0_110] : memref<2216x128xf32, #tpu.memory_space<vmem>>, vector<32x32xf32>
    %cst_111 = arith.constant dense<0.000000e+00> : vector<64x32xf32>
    %101 = tpu.matmul %99, %100, %cst_111 {dimension_numbers = #tpu.dot_dimension_numbers<[1], [0], [0], [1], [0, 0, 1, 1], [], []>} : vector<64x32xf32>, vector<32x32xf32>, vector<64x32xf32> -> vector<64x32xf32>
    %102 = arith.addf %98, %101 : vector<64x32xf32>
    %c4_112 = arith.constant 4 : index
    %c0_113 = arith.constant 0 : index
    %103 = tpu.strided_load %arg6[%c4_112, %c0_113] {strides = array<i32: 4, 1>} : memref<258x32xf32, #tpu.memory_space<vmem>>, vector<64x32xf32>
    %c88_114 = arith.constant 88 : index
    %c0_115 = arith.constant 0 : index
    %104 = vector.load %arg2[%c88_114, %c0_115] : memref<2216x128xf32, #tpu.memory_space<vmem>>, vector<32x32xf32>
    %cst_116 = arith.constant dense<0.000000e+00> : vector<64x32xf32>
    %105 = tpu.matmul %103, %104, %cst_116 {dimension_numbers = #tpu.dot_dimension_numbers<[1], [0], [0], [1], [0, 0, 1, 1], [], []>} : vector<64x32xf32>, vector<32x32xf32>, vector<64x32xf32> -> vector<64x32xf32>
    %106 = arith.addf %102, %105 : vector<64x32xf32>
    %c5 = arith.constant 5 : index
    %c0_117 = arith.constant 0 : index
    %107 = tpu.strided_load %arg6[%c5, %c0_117] {strides = array<i32: 4, 1>} : memref<258x32xf32, #tpu.memory_space<vmem>>, vector<64x32xf32>
    %c120_118 = arith.constant 120 : index
    %c0_119 = arith.constant 0 : index
    %108 = vector.load %arg2[%c120_118, %c0_119] : memref<2216x128xf32, #tpu.memory_space<vmem>>, vector<32x32xf32>
    %cst_120 = arith.constant dense<0.000000e+00> : vector<64x32xf32>
    %109 = tpu.matmul %107, %108, %cst_120 {dimension_numbers = #tpu.dot_dimension_numbers<[1], [0], [0], [1], [0, 0, 1, 1], [], []>} : vector<64x32xf32>, vector<32x32xf32>, vector<64x32xf32> -> vector<64x32xf32>
    %110 = arith.addf %106, %109 : vector<64x32xf32>
    %111 = arith.maximumf %95, %110 : vector<64x32xf32>
    %c2_121 = arith.constant 2 : index
    %c0_122 = arith.constant 0 : index
    %112 = vector.load %arg3[%c2_121, %c0_122] : memref<16x128xf32, #tpu.memory_space<vmem>>, vector<1x32xf32>
    %113 = vector.broadcast %112 : vector<1x32xf32> to vector<64x32xf32>
    %114 = arith.addf %111, %113 : vector<64x32xf32>
    %cst_123 = arith.constant 0.000000e+00 : f32
    %115 = vector.broadcast %cst_123 : f32 to vector<64x32xf32>
    %116 = arith.maximumf %114, %115 : vector<64x32xf32>
    %cst_124 = arith.constant 0.000000e+00 : f32
    %117 = vector.broadcast %cst_124 : f32 to vector<1x32xf32>
    %c0_125 = arith.constant 0 : index
    %c0_126 = arith.constant 0 : index
    %118 = vector.load %arg7[%c0_125, %c0_126] : memref<66x32xf32, #tpu.memory_space<vmem>>, vector<1x32xf32>
    tpu.vector_store %arg7[%c0_125, %c0_126], %117 {strides = array<i32>} : memref<66x32xf32, #tpu.memory_space<vmem>>, vector<1x32xf32>,
    %c1_127 = arith.constant 1 : index
    %c0_128 = arith.constant 0 : index
    %119 = vector.load %arg7[%c1_127, %c0_128] : memref<66x32xf32, #tpu.memory_space<vmem>>, vector<64x32xf32>
    tpu.vector_store %arg7[%c1_127, %c0_128], %116 {strides = array<i32>} : memref<66x32xf32, #tpu.memory_space<vmem>>, vector<64x32xf32>,
    %cst_129 = arith.constant 0.000000e+00 : f32
    %120 = vector.broadcast %cst_129 : f32 to vector<1x32xf32>
    %c65 = arith.constant 65 : index
    %c0_130 = arith.constant 0 : index
    %121 = vector.load %arg7[%c65, %c0_130] : memref<66x32xf32, #tpu.memory_space<vmem>>, vector<1x32xf32>
    tpu.vector_store %arg7[%c65, %c0_130], %120 {strides = array<i32>} : memref<66x32xf32, #tpu.memory_space<vmem>>, vector<1x32xf32>,
    %cst_131 = arith.constant 0.000000e+00 : f32
    %122 = vector.broadcast %cst_131 : f32 to vector<64x64xf32>
    %c0_132 = arith.constant 0 : index
    %c0_133 = arith.constant 0 : index
    %123 = vector.load %arg7[%c0_132, %c0_133] : memref<66x32xf32, #tpu.memory_space<vmem>>, vector<64x32xf32>
    %c168 = arith.constant 168 : index
    %c0_134 = arith.constant 0 : index
    %124 = vector.load %arg2[%c168, %c0_134] : memref<2216x128xf32, #tpu.memory_space<vmem>>, vector<32x64xf32>
    %cst_135 = arith.constant dense<0.000000e+00> : vector<64x64xf32>
    %125 = tpu.matmul %123, %124, %cst_135 {dimension_numbers = #tpu.dot_dimension_numbers<[1], [0], [0], [1], [0, 0, 1, 1], [], []>} : vector<64x32xf32>, vector<32x64xf32>, vector<64x64xf32> -> vector<64x64xf32>
    %126 = arith.addf %122, %125 : vector<64x64xf32>
    %c1_136 = arith.constant 1 : index
    %c0_137 = arith.constant 0 : index
    %127 = vector.load %arg7[%c1_136, %c0_137] : memref<66x32xf32, #tpu.memory_space<vmem>>, vector<64x32xf32>
    %c200 = arith.constant 200 : index
    %c0_138 = arith.constant 0 : index
    %128 = vector.load %arg2[%c200, %c0_138] : memref<2216x128xf32, #tpu.memory_space<vmem>>, vector<32x64xf32>
    %cst_139 = arith.constant dense<0.000000e+00> : vector<64x64xf32>
    %129 = tpu.matmul %127, %128, %cst_139 {dimension_numbers = #tpu.dot_dimension_numbers<[1], [0], [0], [1], [0, 0, 1, 1], [], []>} : vector<64x32xf32>, vector<32x64xf32>, vector<64x64xf32> -> vector<64x64xf32>
    %130 = arith.addf %126, %129 : vector<64x64xf32>
    %c2_140 = arith.constant 2 : index
    %c0_141 = arith.constant 0 : index
    %131 = vector.load %arg7[%c2_140, %c0_141] : memref<66x32xf32, #tpu.memory_space<vmem>>, vector<64x32xf32>
    %c232 = arith.constant 232 : index
    %c0_142 = arith.constant 0 : index
    %132 = vector.load %arg2[%c232, %c0_142] : memref<2216x128xf32, #tpu.memory_space<vmem>>, vector<32x64xf32>
    %cst_143 = arith.constant dense<0.000000e+00> : vector<64x64xf32>
    %133 = tpu.matmul %131, %132, %cst_143 {dimension_numbers = #tpu.dot_dimension_numbers<[1], [0], [0], [1], [0, 0, 1, 1], [], []>} : vector<64x32xf32>, vector<32x64xf32>, vector<64x64xf32> -> vector<64x64xf32>
    %134 = arith.addf %130, %133 : vector<64x64xf32>
    %c3_144 = arith.constant 3 : index
    %c0_145 = arith.constant 0 : index
    %135 = vector.load %arg3[%c3_144, %c0_145] : memref<16x128xf32, #tpu.memory_space<vmem>>, vector<1x64xf32>
    %136 = vector.broadcast %135 : vector<1x64xf32> to vector<64x64xf32>
    %137 = arith.addf %134, %136 : vector<64x64xf32>
    %cst_146 = arith.constant 0.000000e+00 : f32
    %138 = vector.broadcast %cst_146 : f32 to vector<64x64xf32>
    %139 = arith.maximumf %137, %138 : vector<64x64xf32>
    %cst_147 = arith.constant 0.000000e+00 : f32
    %140 = vector.broadcast %cst_147 : f32 to vector<1x64xf32>
    %c0_148 = arith.constant 0 : index
    %c0_149 = arith.constant 0 : index
    %141 = vector.load %arg8[%c0_148, %c0_149] : memref<66x64xf32, #tpu.memory_space<vmem>>, vector<1x64xf32>
    tpu.vector_store %arg8[%c0_148, %c0_149], %140 {strides = array<i32>} : memref<66x64xf32, #tpu.memory_space<vmem>>, vector<1x64xf32>,
    %c1_150 = arith.constant 1 : index
    %c0_151 = arith.constant 0 : index
    %142 = vector.load %arg8[%c1_150, %c0_151] : memref<66x64xf32, #tpu.memory_space<vmem>>, vector<64x64xf32>
    tpu.vector_store %arg8[%c1_150, %c0_151], %139 {strides = array<i32>} : memref<66x64xf32, #tpu.memory_space<vmem>>, vector<64x64xf32>,
    %cst_152 = arith.constant 0.000000e+00 : f32
    %143 = vector.broadcast %cst_152 : f32 to vector<1x64xf32>
    %c65_153 = arith.constant 65 : index
    %c0_154 = arith.constant 0 : index
    %144 = vector.load %arg8[%c65_153, %c0_154] : memref<66x64xf32, #tpu.memory_space<vmem>>, vector<1x64xf32>
    tpu.vector_store %arg8[%c65_153, %c0_154], %143 {strides = array<i32>} : memref<66x64xf32, #tpu.memory_space<vmem>>, vector<1x64xf32>,
    %c1_155 = arith.constant 1 : index
    %c0_156 = arith.constant 0 : index
    %145 = tpu.strided_load %arg7[%c1_155, %c0_156] {strides = array<i32: 4, 1>} : memref<66x32xf32, #tpu.memory_space<vmem>>, vector<16x32xf32>
    %c456 = arith.constant 456 : index
    %c0_157 = arith.constant 0 : index
    %146 = vector.load %arg2[%c456, %c0_157] : memref<2216x128xf32, #tpu.memory_space<vmem>>, vector<32x64xf32>
    %cst_158 = arith.constant dense<0.000000e+00> : vector<16x64xf32>
    %147 = tpu.matmul %145, %146, %cst_158 {dimension_numbers = #tpu.dot_dimension_numbers<[1], [0], [0], [1], [0, 0, 1, 1], [], []>} : vector<16x32xf32>, vector<32x64xf32>, vector<16x64xf32> -> vector<16x64xf32>
    %c0_159 = arith.constant 0 : index
    %c0_160 = arith.constant 0 : index
    %148 = tpu.strided_load %arg8[%c0_159, %c0_160] {strides = array<i32: 4, 1>} : memref<66x64xf32, #tpu.memory_space<vmem>>, vector<16x64xf32>
    %c264 = arith.constant 264 : index
    %c0_161 = arith.constant 0 : index
    %149 = vector.load %arg2[%c264, %c0_161] : memref<2216x128xf32, #tpu.memory_space<vmem>>, vector<64x64xf32>
    %cst_162 = arith.constant dense<0.000000e+00> : vector<16x64xf32>
    %150 = tpu.matmul %148, %149, %cst_162 {dimension_numbers = #tpu.dot_dimension_numbers<[1], [0], [0], [1], [0, 0, 1, 1], [], []>} : vector<16x64xf32>, vector<64x64xf32>, vector<16x64xf32> -> vector<16x64xf32>
    %151 = arith.addf %147, %150 : vector<16x64xf32>
    %c1_163 = arith.constant 1 : index
    %c0_164 = arith.constant 0 : index
    %152 = tpu.strided_load %arg8[%c1_163, %c0_164] {strides = array<i32: 4, 1>} : memref<66x64xf32, #tpu.memory_space<vmem>>, vector<16x64xf32>
    %c328 = arith.constant 328 : index
    %c0_165 = arith.constant 0 : index
    %153 = vector.load %arg2[%c328, %c0_165] : memref<2216x128xf32, #tpu.memory_space<vmem>>, vector<64x64xf32>
    %cst_166 = arith.constant dense<0.000000e+00> : vector<16x64xf32>
    %154 = tpu.matmul %152, %153, %cst_166 {dimension_numbers = #tpu.dot_dimension_numbers<[1], [0], [0], [1], [0, 0, 1, 1], [], []>} : vector<16x64xf32>, vector<64x64xf32>, vector<16x64xf32> -> vector<16x64xf32>
    %155 = arith.addf %151, %154 : vector<16x64xf32>
    %c2_167 = arith.constant 2 : index
    %c0_168 = arith.constant 0 : index
    %156 = tpu.strided_load %arg8[%c2_167, %c0_168] {strides = array<i32: 4, 1>} : memref<66x64xf32, #tpu.memory_space<vmem>>, vector<16x64xf32>
    %c392 = arith.constant 392 : index
    %c0_169 = arith.constant 0 : index
    %157 = vector.load %arg2[%c392, %c0_169] : memref<2216x128xf32, #tpu.memory_space<vmem>>, vector<64x64xf32>
    %cst_170 = arith.constant dense<0.000000e+00> : vector<16x64xf32>
    %158 = tpu.matmul %156, %157, %cst_170 {dimension_numbers = #tpu.dot_dimension_numbers<[1], [0], [0], [1], [0, 0, 1, 1], [], []>} : vector<16x64xf32>, vector<64x64xf32>, vector<16x64xf32> -> vector<16x64xf32>
    %159 = arith.addf %155, %158 : vector<16x64xf32>
    %c2_171 = arith.constant 2 : index
    %c0_172 = arith.constant 0 : index
    %160 = tpu.strided_load %arg7[%c2_171, %c0_172] {strides = array<i32: 4, 1>} : memref<66x32xf32, #tpu.memory_space<vmem>>, vector<16x32xf32>
    %c456_173 = arith.constant 456 : index
    %c0_174 = arith.constant 0 : index
    %161 = vector.load %arg2[%c456_173, %c0_174] : memref<2216x128xf32, #tpu.memory_space<vmem>>, vector<32x64xf32>
    %cst_175 = arith.constant dense<0.000000e+00> : vector<16x64xf32>
    %162 = tpu.matmul %160, %161, %cst_175 {dimension_numbers = #tpu.dot_dimension_numbers<[1], [0], [0], [1], [0, 0, 1, 1], [], []>} : vector<16x32xf32>, vector<32x64xf32>, vector<16x64xf32> -> vector<16x64xf32>
    %c1_176 = arith.constant 1 : index
    %c0_177 = arith.constant 0 : index
    %163 = tpu.strided_load %arg8[%c1_176, %c0_177] {strides = array<i32: 4, 1>} : memref<66x64xf32, #tpu.memory_space<vmem>>, vector<16x64xf32>
    %c264_178 = arith.constant 264 : index
    %c0_179 = arith.constant 0 : index
    %164 = vector.load %arg2[%c264_178, %c0_179] : memref<2216x128xf32, #tpu.memory_space<vmem>>, vector<64x64xf32>
    %cst_180 = arith.constant dense<0.000000e+00> : vector<16x64xf32>
    %165 = tpu.matmul %163, %164, %cst_180 {dimension_numbers = #tpu.dot_dimension_numbers<[1], [0], [0], [1], [0, 0, 1, 1], [], []>} : vector<16x64xf32>, vector<64x64xf32>, vector<16x64xf32> -> vector<16x64xf32>
    %166 = arith.addf %162, %165 : vector<16x64xf32>
    %c2_181 = arith.constant 2 : index
    %c0_182 = arith.constant 0 : index
    %167 = tpu.strided_load %arg8[%c2_181, %c0_182] {strides = array<i32: 4, 1>} : memref<66x64xf32, #tpu.memory_space<vmem>>, vector<16x64xf32>
    %c328_183 = arith.constant 328 : index
    %c0_184 = arith.constant 0 : index
    %168 = vector.load %arg2[%c328_183, %c0_184] : memref<2216x128xf32, #tpu.memory_space<vmem>>, vector<64x64xf32>
    %cst_185 = arith.constant dense<0.000000e+00> : vector<16x64xf32>
    %169 = tpu.matmul %167, %168, %cst_185 {dimension_numbers = #tpu.dot_dimension_numbers<[1], [0], [0], [1], [0, 0, 1, 1], [], []>} : vector<16x64xf32>, vector<64x64xf32>, vector<16x64xf32> -> vector<16x64xf32>
    %170 = arith.addf %166, %169 : vector<16x64xf32>
    %c3_186 = arith.constant 3 : index
    %c0_187 = arith.constant 0 : index
    %171 = tpu.strided_load %arg8[%c3_186, %c0_187] {strides = array<i32: 4, 1>} : memref<66x64xf32, #tpu.memory_space<vmem>>, vector<16x64xf32>
    %c392_188 = arith.constant 392 : index
    %c0_189 = arith.constant 0 : index
    %172 = vector.load %arg2[%c392_188, %c0_189] : memref<2216x128xf32, #tpu.memory_space<vmem>>, vector<64x64xf32>
    %cst_190 = arith.constant dense<0.000000e+00> : vector<16x64xf32>
    %173 = tpu.matmul %171, %172, %cst_190 {dimension_numbers = #tpu.dot_dimension_numbers<[1], [0], [0], [1], [0, 0, 1, 1], [], []>} : vector<16x64xf32>, vector<64x64xf32>, vector<16x64xf32> -> vector<16x64xf32>
    %174 = arith.addf %170, %173 : vector<16x64xf32>
    %175 = arith.maximumf %159, %174 : vector<16x64xf32>
    %c3_191 = arith.constant 3 : index
    %c0_192 = arith.constant 0 : index
    %176 = tpu.strided_load %arg7[%c3_191, %c0_192] {strides = array<i32: 4, 1>} : memref<66x32xf32, #tpu.memory_space<vmem>>, vector<16x32xf32>
    %c456_193 = arith.constant 456 : index
    %c0_194 = arith.constant 0 : index
    %177 = vector.load %arg2[%c456_193, %c0_194] : memref<2216x128xf32, #tpu.memory_space<vmem>>, vector<32x64xf32>
    %cst_195 = arith.constant dense<0.000000e+00> : vector<16x64xf32>
    %178 = tpu.matmul %176, %177, %cst_195 {dimension_numbers = #tpu.dot_dimension_numbers<[1], [0], [0], [1], [0, 0, 1, 1], [], []>} : vector<16x32xf32>, vector<32x64xf32>, vector<16x64xf32> -> vector<16x64xf32>
    %c2_196 = arith.constant 2 : index
    %c0_197 = arith.constant 0 : index
    %179 = tpu.strided_load %arg8[%c2_196, %c0_197] {strides = array<i32: 4, 1>} : memref<66x64xf32, #tpu.memory_space<vmem>>, vector<16x64xf32>
    %c264_198 = arith.constant 264 : index
    %c0_199 = arith.constant 0 : index
    %180 = vector.load %arg2[%c264_198, %c0_199] : memref<2216x128xf32, #tpu.memory_space<vmem>>, vector<64x64xf32>
    %cst_200 = arith.constant dense<0.000000e+00> : vector<16x64xf32>
    %181 = tpu.matmul %179, %180, %cst_200 {dimension_numbers = #tpu.dot_dimension_numbers<[1], [0], [0], [1], [0, 0, 1, 1], [], []>} : vector<16x64xf32>, vector<64x64xf32>, vector<16x64xf32> -> vector<16x64xf32>
    %182 = arith.addf %178, %181 : vector<16x64xf32>
    %c3_201 = arith.constant 3 : index
    %c0_202 = arith.constant 0 : index
    %183 = tpu.strided_load %arg8[%c3_201, %c0_202] {strides = array<i32: 4, 1>} : memref<66x64xf32, #tpu.memory_space<vmem>>, vector<16x64xf32>
    %c328_203 = arith.constant 328 : index
    %c0_204 = arith.constant 0 : index
    %184 = vector.load %arg2[%c328_203, %c0_204] : memref<2216x128xf32, #tpu.memory_space<vmem>>, vector<64x64xf32>
    %cst_205 = arith.constant dense<0.000000e+00> : vector<16x64xf32>
    %185 = tpu.matmul %183, %184, %cst_205 {dimension_numbers = #tpu.dot_dimension_numbers<[1], [0], [0], [1], [0, 0, 1, 1], [], []>} : vector<16x64xf32>, vector<64x64xf32>, vector<16x64xf32> -> vector<16x64xf32>
    %186 = arith.addf %182, %185 : vector<16x64xf32>
    %c4_206 = arith.constant 4 : index
    %c0_207 = arith.constant 0 : index
    %187 = tpu.strided_load %arg8[%c4_206, %c0_207] {strides = array<i32: 4, 1>} : memref<66x64xf32, #tpu.memory_space<vmem>>, vector<16x64xf32>
    %c392_208 = arith.constant 392 : index
    %c0_209 = arith.constant 0 : index
    %188 = vector.load %arg2[%c392_208, %c0_209] : memref<2216x128xf32, #tpu.memory_space<vmem>>, vector<64x64xf32>
    %cst_210 = arith.constant dense<0.000000e+00> : vector<16x64xf32>
    %189 = tpu.matmul %187, %188, %cst_210 {dimension_numbers = #tpu.dot_dimension_numbers<[1], [0], [0], [1], [0, 0, 1, 1], [], []>} : vector<16x64xf32>, vector<64x64xf32>, vector<16x64xf32> -> vector<16x64xf32>
    %190 = arith.addf %186, %189 : vector<16x64xf32>
    %191 = arith.maximumf %175, %190 : vector<16x64xf32>
    %c4_211 = arith.constant 4 : index
    %c0_212 = arith.constant 0 : index
    %192 = tpu.strided_load %arg7[%c4_211, %c0_212] {strides = array<i32: 4, 1>} : memref<66x32xf32, #tpu.memory_space<vmem>>, vector<16x32xf32>
    %c456_213 = arith.constant 456 : index
    %c0_214 = arith.constant 0 : index
    %193 = vector.load %arg2[%c456_213, %c0_214] : memref<2216x128xf32, #tpu.memory_space<vmem>>, vector<32x64xf32>
    %cst_215 = arith.constant dense<0.000000e+00> : vector<16x64xf32>
    %194 = tpu.matmul %192, %193, %cst_215 {dimension_numbers = #tpu.dot_dimension_numbers<[1], [0], [0], [1], [0, 0, 1, 1], [], []>} : vector<16x32xf32>, vector<32x64xf32>, vector<16x64xf32> -> vector<16x64xf32>
    %c3_216 = arith.constant 3 : index
    %c0_217 = arith.constant 0 : index
    %195 = tpu.strided_load %arg8[%c3_216, %c0_217] {strides = array<i32: 4, 1>} : memref<66x64xf32, #tpu.memory_space<vmem>>, vector<16x64xf32>
    %c264_218 = arith.constant 264 : index
    %c0_219 = arith.constant 0 : index
    %196 = vector.load %arg2[%c264_218, %c0_219] : memref<2216x128xf32, #tpu.memory_space<vmem>>, vector<64x64xf32>
    %cst_220 = arith.constant dense<0.000000e+00> : vector<16x64xf32>
    %197 = tpu.matmul %195, %196, %cst_220 {dimension_numbers = #tpu.dot_dimension_numbers<[1], [0], [0], [1], [0, 0, 1, 1], [], []>} : vector<16x64xf32>, vector<64x64xf32>, vector<16x64xf32> -> vector<16x64xf32>
    %198 = arith.addf %194, %197 : vector<16x64xf32>
    %c4_221 = arith.constant 4 : index
    %c0_222 = arith.constant 0 : index
    %199 = tpu.strided_load %arg8[%c4_221, %c0_222] {strides = array<i32: 4, 1>} : memref<66x64xf32, #tpu.memory_space<vmem>>, vector<16x64xf32>
    %c328_223 = arith.constant 328 : index
    %c0_224 = arith.constant 0 : index
    %200 = vector.load %arg2[%c328_223, %c0_224] : memref<2216x128xf32, #tpu.memory_space<vmem>>, vector<64x64xf32>
    %cst_225 = arith.constant dense<0.000000e+00> : vector<16x64xf32>
    %201 = tpu.matmul %199, %200, %cst_225 {dimension_numbers = #tpu.dot_dimension_numbers<[1], [0], [0], [1], [0, 0, 1, 1], [], []>} : vector<16x64xf32>, vector<64x64xf32>, vector<16x64xf32> -> vector<16x64xf32>
    %202 = arith.addf %198, %201 : vector<16x64xf32>
    %c5_226 = arith.constant 5 : index
    %c0_227 = arith.constant 0 : index
    %203 = tpu.strided_load %arg8[%c5_226, %c0_227] {strides = array<i32: 4, 1>} : memref<66x64xf32, #tpu.memory_space<vmem>>, vector<16x64xf32>
    %c392_228 = arith.constant 392 : index
    %c0_229 = arith.constant 0 : index
    %204 = vector.load %arg2[%c392_228, %c0_229] : memref<2216x128xf32, #tpu.memory_space<vmem>>, vector<64x64xf32>
    %cst_230 = arith.constant dense<0.000000e+00> : vector<16x64xf32>
    %205 = tpu.matmul %203, %204, %cst_230 {dimension_numbers = #tpu.dot_dimension_numbers<[1], [0], [0], [1], [0, 0, 1, 1], [], []>} : vector<16x64xf32>, vector<64x64xf32>, vector<16x64xf32> -> vector<16x64xf32>
    %206 = arith.addf %202, %205 : vector<16x64xf32>
    %207 = arith.maximumf %191, %206 : vector<16x64xf32>
    %c4_231 = arith.constant 4 : index
    %c0_232 = arith.constant 0 : index
    %208 = vector.load %arg3[%c4_231, %c0_232] : memref<16x128xf32, #tpu.memory_space<vmem>>, vector<1x64xf32>
    %209 = vector.broadcast %208 : vector<1x64xf32> to vector<16x64xf32>
    %210 = arith.addf %207, %209 : vector<16x64xf32>
    %cst_233 = arith.constant 0.000000e+00 : f32
    %211 = vector.broadcast %cst_233 : f32 to vector<16x64xf32>
    %212 = arith.maximumf %210, %211 : vector<16x64xf32>
    %cst_234 = arith.constant 0.000000e+00 : f32
    %213 = vector.broadcast %cst_234 : f32 to vector<1x64xf32>
    %c0_235 = arith.constant 0 : index
    %c0_236 = arith.constant 0 : index
    %214 = vector.load %arg9[%c0_235, %c0_236] : memref<18x64xf32, #tpu.memory_space<vmem>>, vector<1x64xf32>
    tpu.vector_store %arg9[%c0_235, %c0_236], %213 {strides = array<i32>} : memref<18x64xf32, #tpu.memory_space<vmem>>, vector<1x64xf32>,
    %c1_237 = arith.constant 1 : index
    %c0_238 = arith.constant 0 : index
    %215 = vector.load %arg9[%c1_237, %c0_238] : memref<18x64xf32, #tpu.memory_space<vmem>>, vector<16x64xf32>
    tpu.vector_store %arg9[%c1_237, %c0_238], %212 {strides = array<i32>} : memref<18x64xf32, #tpu.memory_space<vmem>>, vector<16x64xf32>,
    %cst_239 = arith.constant 0.000000e+00 : f32
    %216 = vector.broadcast %cst_239 : f32 to vector<1x64xf32>
    %c17 = arith.constant 17 : index
    %c0_240 = arith.constant 0 : index
    %217 = vector.load %arg9[%c17, %c0_240] : memref<18x64xf32, #tpu.memory_space<vmem>>, vector<1x64xf32>
    tpu.vector_store %arg9[%c17, %c0_240], %216 {strides = array<i32>} : memref<18x64xf32, #tpu.memory_space<vmem>>, vector<1x64xf32>,
    %cst_241 = arith.constant 0.000000e+00 : f32
    %218 = vector.broadcast %cst_241 : f32 to vector<16x128xf32>
    %c0_242 = arith.constant 0 : index
    %c0_243 = arith.constant 0 : index
    %219 = vector.load %arg9[%c0_242, %c0_243] : memref<18x64xf32, #tpu.memory_space<vmem>>, vector<16x64xf32>
    %c488 = arith.constant 488 : index
    %c0_244 = arith.constant 0 : index
    %220 = vector.load %arg2[%c488, %c0_244] : memref<2216x128xf32, #tpu.memory_space<vmem>>, vector<64x128xf32>
    %cst_245 = arith.constant dense<0.000000e+00> : vector<16x128xf32>
    %221 = tpu.matmul %219, %220, %cst_245 {dimension_numbers = #tpu.dot_dimension_numbers<[1], [0], [0], [1], [0, 0, 1, 1], [], []>} : vector<16x64xf32>, vector<64x128xf32>, vector<16x128xf32> -> vector<16x128xf32>
    %222 = arith.addf %218, %221 : vector<16x128xf32>
    %c1_246 = arith.constant 1 : index
    %c0_247 = arith.constant 0 : index
    %223 = vector.load %arg9[%c1_246, %c0_247] : memref<18x64xf32, #tpu.memory_space<vmem>>, vector<16x64xf32>
    %c552 = arith.constant 552 : index
    %c0_248 = arith.constant 0 : index
    %224 = vector.load %arg2[%c552, %c0_248] : memref<2216x128xf32, #tpu.memory_space<vmem>>, vector<64x128xf32>
    %cst_249 = arith.constant dense<0.000000e+00> : vector<16x128xf32>
    %225 = tpu.matmul %223, %224, %cst_249 {dimension_numbers = #tpu.dot_dimension_numbers<[1], [0], [0], [1], [0, 0, 1, 1], [], []>} : vector<16x64xf32>, vector<64x128xf32>, vector<16x128xf32> -> vector<16x128xf32>
    %226 = arith.addf %222, %225 : vector<16x128xf32>
    %c2_250 = arith.constant 2 : index
    %c0_251 = arith.constant 0 : index
    %227 = vector.load %arg9[%c2_250, %c0_251] : memref<18x64xf32, #tpu.memory_space<vmem>>, vector<16x64xf32>
    %c616 = arith.constant 616 : index
    %c0_252 = arith.constant 0 : index
    %228 = vector.load %arg2[%c616, %c0_252] : memref<2216x128xf32, #tpu.memory_space<vmem>>, vector<64x128xf32>
    %cst_253 = arith.constant dense<0.000000e+00> : vector<16x128xf32>
    %229 = tpu.matmul %227, %228, %cst_253 {dimension_numbers = #tpu.dot_dimension_numbers<[1], [0], [0], [1], [0, 0, 1, 1], [], []>} : vector<16x64xf32>, vector<64x128xf32>, vector<16x128xf32> -> vector<16x128xf32>
    %230 = arith.addf %226, %229 : vector<16x128xf32>
    %c5_254 = arith.constant 5 : index
    %c0_255 = arith.constant 0 : index
    %231 = vector.load %arg3[%c5_254, %c0_255] : memref<16x128xf32, #tpu.memory_space<vmem>>, vector<1x128xf32>
    %232 = vector.broadcast %231 : vector<1x128xf32> to vector<16x128xf32>
    %233 = arith.addf %230, %232 : vector<16x128xf32>
    %cst_256 = arith.constant 0.000000e+00 : f32
    %234 = vector.broadcast %cst_256 : f32 to vector<16x128xf32>
    %235 = arith.maximumf %233, %234 : vector<16x128xf32>
    %cst_257 = arith.constant 0.000000e+00 : f32
    %236 = vector.broadcast %cst_257 : f32 to vector<1x128xf32>
    %c0_258 = arith.constant 0 : index
    %c0_259 = arith.constant 0 : index
    %237 = vector.load %arg10[%c0_258, %c0_259] : memref<18x128xf32, #tpu.memory_space<vmem>>, vector<1x128xf32>
    tpu.vector_store %arg10[%c0_258, %c0_259], %236 {strides = array<i32>} : memref<18x128xf32, #tpu.memory_space<vmem>>, vector<1x128xf32>,
    %c1_260 = arith.constant 1 : index
    %c0_261 = arith.constant 0 : index
    %238 = vector.load %arg10[%c1_260, %c0_261] : memref<18x128xf32, #tpu.memory_space<vmem>>, vector<16x128xf32>
    tpu.vector_store %arg10[%c1_260, %c0_261], %235 {strides = array<i32>} : memref<18x128xf32, #tpu.memory_space<vmem>>, vector<16x128xf32>,
    %cst_262 = arith.constant 0.000000e+00 : f32
    %239 = vector.broadcast %cst_262 : f32 to vector<1x128xf32>
    %c17_263 = arith.constant 17 : index
    %c0_264 = arith.constant 0 : index
    %240 = vector.load %arg10[%c17_263, %c0_264] : memref<18x128xf32, #tpu.memory_space<vmem>>, vector<1x128xf32>
    tpu.vector_store %arg10[%c17_263, %c0_264], %239 {strides = array<i32>} : memref<18x128xf32, #tpu.memory_space<vmem>>, vector<1x128xf32>,
    %c1_265 = arith.constant 1 : index
    %c0_266 = arith.constant 0 : index
    %241 = tpu.strided_load %arg9[%c1_265, %c0_266] {strides = array<i32: 4, 1>} : memref<18x64xf32, #tpu.memory_space<vmem>>, vector<4x64xf32>
    %c1064 = arith.constant 1064 : index
    %c0_267 = arith.constant 0 : index
    %242 = vector.load %arg2[%c1064, %c0_267] : memref<2216x128xf32, #tpu.memory_space<vmem>>, vector<64x128xf32>
    %cst_268 = arith.constant dense<0.000000e+00> : vector<4x128xf32>
    %243 = tpu.matmul %241, %242, %cst_268 {dimension_numbers = #tpu.dot_dimension_numbers<[1], [0], [0], [1], [0, 0, 1, 1], [], []>} : vector<4x64xf32>, vector<64x128xf32>, vector<4x128xf32> -> vector<4x128xf32>
    %c0_269 = arith.constant 0 : index
    %c0_270 = arith.constant 0 : index
    %244 = tpu.strided_load %arg10[%c0_269, %c0_270] {strides = array<i32: 4, 1>} : memref<18x128xf32, #tpu.memory_space<vmem>>, vector<4x128xf32>
    %c680 = arith.constant 680 : index
    %c0_271 = arith.constant 0 : index
    %245 = vector.load %arg2[%c680, %c0_271] : memref<2216x128xf32, #tpu.memory_space<vmem>>, vector<128x128xf32>
    %cst_272 = arith.constant dense<0.000000e+00> : vector<4x128xf32>
    %246 = tpu.matmul %244, %245, %cst_272 {dimension_numbers = #tpu.dot_dimension_numbers<[1], [0], [0], [1], [0, 0, 1, 1], [], []>} : vector<4x128xf32>, vector<128x128xf32>, vector<4x128xf32> -> vector<4x128xf32>
    %247 = arith.addf %243, %246 : vector<4x128xf32>
    %c1_273 = arith.constant 1 : index
    %c0_274 = arith.constant 0 : index
    %248 = tpu.strided_load %arg10[%c1_273, %c0_274] {strides = array<i32: 4, 1>} : memref<18x128xf32, #tpu.memory_space<vmem>>, vector<4x128xf32>
    %c808 = arith.constant 808 : index
    %c0_275 = arith.constant 0 : index
    %249 = vector.load %arg2[%c808, %c0_275] : memref<2216x128xf32, #tpu.memory_space<vmem>>, vector<128x128xf32>
    %cst_276 = arith.constant dense<0.000000e+00> : vector<4x128xf32>
    %250 = tpu.matmul %248, %249, %cst_276 {dimension_numbers = #tpu.dot_dimension_numbers<[1], [0], [0], [1], [0, 0, 1, 1], [], []>} : vector<4x128xf32>, vector<128x128xf32>, vector<4x128xf32> -> vector<4x128xf32>
    %251 = arith.addf %247, %250 : vector<4x128xf32>
    %c2_277 = arith.constant 2 : index
    %c0_278 = arith.constant 0 : index
    %252 = tpu.strided_load %arg10[%c2_277, %c0_278] {strides = array<i32: 4, 1>} : memref<18x128xf32, #tpu.memory_space<vmem>>, vector<4x128xf32>
    %c936 = arith.constant 936 : index
    %c0_279 = arith.constant 0 : index
    %253 = vector.load %arg2[%c936, %c0_279] : memref<2216x128xf32, #tpu.memory_space<vmem>>, vector<128x128xf32>
    %cst_280 = arith.constant dense<0.000000e+00> : vector<4x128xf32>
    %254 = tpu.matmul %252, %253, %cst_280 {dimension_numbers = #tpu.dot_dimension_numbers<[1], [0], [0], [1], [0, 0, 1, 1], [], []>} : vector<4x128xf32>, vector<128x128xf32>, vector<4x128xf32> -> vector<4x128xf32>
    %255 = arith.addf %251, %254 : vector<4x128xf32>
    %c2_281 = arith.constant 2 : index
    %c0_282 = arith.constant 0 : index
    %256 = tpu.strided_load %arg9[%c2_281, %c0_282] {strides = array<i32: 4, 1>} : memref<18x64xf32, #tpu.memory_space<vmem>>, vector<4x64xf32>
    %c1064_283 = arith.constant 1064 : index
    %c0_284 = arith.constant 0 : index
    %257 = vector.load %arg2[%c1064_283, %c0_284] : memref<2216x128xf32, #tpu.memory_space<vmem>>, vector<64x128xf32>
    %cst_285 = arith.constant dense<0.000000e+00> : vector<4x128xf32>
    %258 = tpu.matmul %256, %257, %cst_285 {dimension_numbers = #tpu.dot_dimension_numbers<[1], [0], [0], [1], [0, 0, 1, 1], [], []>} : vector<4x64xf32>, vector<64x128xf32>, vector<4x128xf32> -> vector<4x128xf32>
    %c1_286 = arith.constant 1 : index
    %c0_287 = arith.constant 0 : index
    %259 = tpu.strided_load %arg10[%c1_286, %c0_287] {strides = array<i32: 4, 1>} : memref<18x128xf32, #tpu.memory_space<vmem>>, vector<4x128xf32>
    %c680_288 = arith.constant 680 : index
    %c0_289 = arith.constant 0 : index
    %260 = vector.load %arg2[%c680_288, %c0_289] : memref<2216x128xf32, #tpu.memory_space<vmem>>, vector<128x128xf32>
    %cst_290 = arith.constant dense<0.000000e+00> : vector<4x128xf32>
    %261 = tpu.matmul %259, %260, %cst_290 {dimension_numbers = #tpu.dot_dimension_numbers<[1], [0], [0], [1], [0, 0, 1, 1], [], []>} : vector<4x128xf32>, vector<128x128xf32>, vector<4x128xf32> -> vector<4x128xf32>
    %262 = arith.addf %258, %261 : vector<4x128xf32>
    %c2_291 = arith.constant 2 : index
    %c0_292 = arith.constant 0 : index
    %263 = tpu.strided_load %arg10[%c2_291, %c0_292] {strides = array<i32: 4, 1>} : memref<18x128xf32, #tpu.memory_space<vmem>>, vector<4x128xf32>
    %c808_293 = arith.constant 808 : index
    %c0_294 = arith.constant 0 : index
    %264 = vector.load %arg2[%c808_293, %c0_294] : memref<2216x128xf32, #tpu.memory_space<vmem>>, vector<128x128xf32>
    %cst_295 = arith.constant dense<0.000000e+00> : vector<4x128xf32>
    %265 = tpu.matmul %263, %264, %cst_295 {dimension_numbers = #tpu.dot_dimension_numbers<[1], [0], [0], [1], [0, 0, 1, 1], [], []>} : vector<4x128xf32>, vector<128x128xf32>, vector<4x128xf32> -> vector<4x128xf32>
    %266 = arith.addf %262, %265 : vector<4x128xf32>
    %c3_296 = arith.constant 3 : index
    %c0_297 = arith.constant 0 : index
    %267 = tpu.strided_load %arg10[%c3_296, %c0_297] {strides = array<i32: 4, 1>} : memref<18x128xf32, #tpu.memory_space<vmem>>, vector<4x128xf32>
    %c936_298 = arith.constant 936 : index
    %c0_299 = arith.constant 0 : index
    %268 = vector.load %arg2[%c936_298, %c0_299] : memref<2216x128xf32, #tpu.memory_space<vmem>>, vector<128x128xf32>
    %cst_300 = arith.constant dense<0.000000e+00> : vector<4x128xf32>
    %269 = tpu.matmul %267, %268, %cst_300 {dimension_numbers = #tpu.dot_dimension_numbers<[1], [0], [0], [1], [0, 0, 1, 1], [], []>} : vector<4x128xf32>, vector<128x128xf32>, vector<4x128xf32> -> vector<4x128xf32>
    %270 = arith.addf %266, %269 : vector<4x128xf32>
    %271 = arith.maximumf %255, %270 : vector<4x128xf32>
    %c3_301 = arith.constant 3 : index
    %c0_302 = arith.constant 0 : index
    %272 = tpu.strided_load %arg9[%c3_301, %c0_302] {strides = array<i32: 4, 1>} : memref<18x64xf32, #tpu.memory_space<vmem>>, vector<4x64xf32>
    %c1064_303 = arith.constant 1064 : index
    %c0_304 = arith.constant 0 : index
    %273 = vector.load %arg2[%c1064_303, %c0_304] : memref<2216x128xf32, #tpu.memory_space<vmem>>, vector<64x128xf32>
    %cst_305 = arith.constant dense<0.000000e+00> : vector<4x128xf32>
    %274 = tpu.matmul %272, %273, %cst_305 {dimension_numbers = #tpu.dot_dimension_numbers<[1], [0], [0], [1], [0, 0, 1, 1], [], []>} : vector<4x64xf32>, vector<64x128xf32>, vector<4x128xf32> -> vector<4x128xf32>
    %c2_306 = arith.constant 2 : index
    %c0_307 = arith.constant 0 : index
    %275 = tpu.strided_load %arg10[%c2_306, %c0_307] {strides = array<i32: 4, 1>} : memref<18x128xf32, #tpu.memory_space<vmem>>, vector<4x128xf32>
    %c680_308 = arith.constant 680 : index
    %c0_309 = arith.constant 0 : index
    %276 = vector.load %arg2[%c680_308, %c0_309] : memref<2216x128xf32, #tpu.memory_space<vmem>>, vector<128x128xf32>
    %cst_310 = arith.constant dense<0.000000e+00> : vector<4x128xf32>
    %277 = tpu.matmul %275, %276, %cst_310 {dimension_numbers = #tpu.dot_dimension_numbers<[1], [0], [0], [1], [0, 0, 1, 1], [], []>} : vector<4x128xf32>, vector<128x128xf32>, vector<4x128xf32> -> vector<4x128xf32>
    %278 = arith.addf %274, %277 : vector<4x128xf32>
    %c3_311 = arith.constant 3 : index
    %c0_312 = arith.constant 0 : index
    %279 = tpu.strided_load %arg10[%c3_311, %c0_312] {strides = array<i32: 4, 1>} : memref<18x128xf32, #tpu.memory_space<vmem>>, vector<4x128xf32>
    %c808_313 = arith.constant 808 : index
    %c0_314 = arith.constant 0 : index
    %280 = vector.load %arg2[%c808_313, %c0_314] : memref<2216x128xf32, #tpu.memory_space<vmem>>, vector<128x128xf32>
    %cst_315 = arith.constant dense<0.000000e+00> : vector<4x128xf32>
    %281 = tpu.matmul %279, %280, %cst_315 {dimension_numbers = #tpu.dot_dimension_numbers<[1], [0], [0], [1], [0, 0, 1, 1], [], []>} : vector<4x128xf32>, vector<128x128xf32>, vector<4x128xf32> -> vector<4x128xf32>
    %282 = arith.addf %278, %281 : vector<4x128xf32>
    %c4_316 = arith.constant 4 : index
    %c0_317 = arith.constant 0 : index
    %283 = tpu.strided_load %arg10[%c4_316, %c0_317] {strides = array<i32: 4, 1>} : memref<18x128xf32, #tpu.memory_space<vmem>>, vector<4x128xf32>
    %c936_318 = arith.constant 936 : index
    %c0_319 = arith.constant 0 : index
    %284 = vector.load %arg2[%c936_318, %c0_319] : memref<2216x128xf32, #tpu.memory_space<vmem>>, vector<128x128xf32>
    %cst_320 = arith.constant dense<0.000000e+00> : vector<4x128xf32>
    %285 = tpu.matmul %283, %284, %cst_320 {dimension_numbers = #tpu.dot_dimension_numbers<[1], [0], [0], [1], [0, 0, 1, 1], [], []>} : vector<4x128xf32>, vector<128x128xf32>, vector<4x128xf32> -> vector<4x128xf32>
    %286 = arith.addf %282, %285 : vector<4x128xf32>
    %287 = arith.maximumf %271, %286 : vector<4x128xf32>
    %c4_321 = arith.constant 4 : index
    %c0_322 = arith.constant 0 : index
    %288 = tpu.strided_load %arg9[%c4_321, %c0_322] {strides = array<i32: 4, 1>} : memref<18x64xf32, #tpu.memory_space<vmem>>, vector<4x64xf32>
    %c1064_323 = arith.constant 1064 : index
    %c0_324 = arith.constant 0 : index
    %289 = vector.load %arg2[%c1064_323, %c0_324] : memref<2216x128xf32, #tpu.memory_space<vmem>>, vector<64x128xf32>
    %cst_325 = arith.constant dense<0.000000e+00> : vector<4x128xf32>
    %290 = tpu.matmul %288, %289, %cst_325 {dimension_numbers = #tpu.dot_dimension_numbers<[1], [0], [0], [1], [0, 0, 1, 1], [], []>} : vector<4x64xf32>, vector<64x128xf32>, vector<4x128xf32> -> vector<4x128xf32>
    %c3_326 = arith.constant 3 : index
    %c0_327 = arith.constant 0 : index
    %291 = tpu.strided_load %arg10[%c3_326, %c0_327] {strides = array<i32: 4, 1>} : memref<18x128xf32, #tpu.memory_space<vmem>>, vector<4x128xf32>
    %c680_328 = arith.constant 680 : index
    %c0_329 = arith.constant 0 : index
    %292 = vector.load %arg2[%c680_328, %c0_329] : memref<2216x128xf32, #tpu.memory_space<vmem>>, vector<128x128xf32>
    %cst_330 = arith.constant dense<0.000000e+00> : vector<4x128xf32>
    %293 = tpu.matmul %291, %292, %cst_330 {dimension_numbers = #tpu.dot_dimension_numbers<[1], [0], [0], [1], [0, 0, 1, 1], [], []>} : vector<4x128xf32>, vector<128x128xf32>, vector<4x128xf32> -> vector<4x128xf32>
    %294 = arith.addf %290, %293 : vector<4x128xf32>
    %c4_331 = arith.constant 4 : index
    %c0_332 = arith.constant 0 : index
    %295 = tpu.strided_load %arg10[%c4_331, %c0_332] {strides = array<i32: 4, 1>} : memref<18x128xf32, #tpu.memory_space<vmem>>, vector<4x128xf32>
    %c808_333 = arith.constant 808 : index
    %c0_334 = arith.constant 0 : index
    %296 = vector.load %arg2[%c808_333, %c0_334] : memref<2216x128xf32, #tpu.memory_space<vmem>>, vector<128x128xf32>
    %cst_335 = arith.constant dense<0.000000e+00> : vector<4x128xf32>
    %297 = tpu.matmul %295, %296, %cst_335 {dimension_numbers = #tpu.dot_dimension_numbers<[1], [0], [0], [1], [0, 0, 1, 1], [], []>} : vector<4x128xf32>, vector<128x128xf32>, vector<4x128xf32> -> vector<4x128xf32>
    %298 = arith.addf %294, %297 : vector<4x128xf32>
    %c5_336 = arith.constant 5 : index
    %c0_337 = arith.constant 0 : index
    %299 = tpu.strided_load %arg10[%c5_336, %c0_337] {strides = array<i32: 4, 1>} : memref<18x128xf32, #tpu.memory_space<vmem>>, vector<4x128xf32>
    %c936_338 = arith.constant 936 : index
    %c0_339 = arith.constant 0 : index
    %300 = vector.load %arg2[%c936_338, %c0_339] : memref<2216x128xf32, #tpu.memory_space<vmem>>, vector<128x128xf32>
    %cst_340 = arith.constant dense<0.000000e+00> : vector<4x128xf32>
    %301 = tpu.matmul %299, %300, %cst_340 {dimension_numbers = #tpu.dot_dimension_numbers<[1], [0], [0], [1], [0, 0, 1, 1], [], []>} : vector<4x128xf32>, vector<128x128xf32>, vector<4x128xf32> -> vector<4x128xf32>
    %302 = arith.addf %298, %301 : vector<4x128xf32>
    %303 = arith.maximumf %287, %302 : vector<4x128xf32>
    %c6 = arith.constant 6 : index
    %c0_341 = arith.constant 0 : index
    %304 = vector.load %arg3[%c6, %c0_341] : memref<16x128xf32, #tpu.memory_space<vmem>>, vector<1x128xf32>
    %305 = vector.broadcast %304 : vector<1x128xf32> to vector<4x128xf32>
    %306 = arith.addf %303, %305 : vector<4x128xf32>
    %cst_342 = arith.constant 0.000000e+00 : f32
    %307 = vector.broadcast %cst_342 : f32 to vector<4x128xf32>
    %308 = arith.maximumf %306, %307 : vector<4x128xf32>
    %cst_343 = arith.constant 0.000000e+00 : f32
    %309 = vector.broadcast %cst_343 : f32 to vector<1x128xf32>
    %c0_344 = arith.constant 0 : index
    %c0_345 = arith.constant 0 : index
    %310 = vector.load %arg11[%c0_344, %c0_345] : memref<6x128xf32, #tpu.memory_space<vmem>>, vector<1x128xf32>
    tpu.vector_store %arg11[%c0_344, %c0_345], %309 {strides = array<i32>} : memref<6x128xf32, #tpu.memory_space<vmem>>, vector<1x128xf32>,
    %c1_346 = arith.constant 1 : index
    %c0_347 = arith.constant 0 : index
    %311 = vector.load %arg11[%c1_346, %c0_347] : memref<6x128xf32, #tpu.memory_space<vmem>>, vector<4x128xf32>
    tpu.vector_store %arg11[%c1_346, %c0_347], %308 {strides = array<i32>} : memref<6x128xf32, #tpu.memory_space<vmem>>, vector<4x128xf32>,
    %cst_348 = arith.constant 0.000000e+00 : f32
    %312 = vector.broadcast %cst_348 : f32 to vector<1x128xf32>
    %c5_349 = arith.constant 5 : index
    %c0_350 = arith.constant 0 : index
    %313 = vector.load %arg11[%c5_349, %c0_350] : memref<6x128xf32, #tpu.memory_space<vmem>>, vector<1x128xf32>
    tpu.vector_store %arg11[%c5_349, %c0_350], %312 {strides = array<i32>} : memref<6x128xf32, #tpu.memory_space<vmem>>, vector<1x128xf32>,
    %cst_351 = arith.constant 0.000000e+00 : f32
    %314 = vector.broadcast %cst_351 : f32 to vector<4x128xf32>
    %c0_352 = arith.constant 0 : index
    %c0_353 = arith.constant 0 : index
    %315 = vector.load %arg11[%c0_352, %c0_353] : memref<6x128xf32, #tpu.memory_space<vmem>>, vector<4x128xf32>
    %c1128 = arith.constant 1128 : index
    %c0_354 = arith.constant 0 : index
    %316 = vector.load %arg2[%c1128, %c0_354] : memref<2216x128xf32, #tpu.memory_space<vmem>>, vector<128x128xf32>
    %cst_355 = arith.constant dense<0.000000e+00> : vector<4x128xf32>
    %317 = tpu.matmul %315, %316, %cst_355 {dimension_numbers = #tpu.dot_dimension_numbers<[1], [0], [0], [1], [0, 0, 1, 1], [], []>} : vector<4x128xf32>, vector<128x128xf32>, vector<4x128xf32> -> vector<4x128xf32>
    %318 = arith.addf %314, %317 : vector<4x128xf32>
    %c1_356 = arith.constant 1 : index
    %c0_357 = arith.constant 0 : index
    %319 = vector.load %arg11[%c1_356, %c0_357] : memref<6x128xf32, #tpu.memory_space<vmem>>, vector<4x128xf32>
    %c1256 = arith.constant 1256 : index
    %c0_358 = arith.constant 0 : index
    %320 = vector.load %arg2[%c1256, %c0_358] : memref<2216x128xf32, #tpu.memory_space<vmem>>, vector<128x128xf32>
    %cst_359 = arith.constant dense<0.000000e+00> : vector<4x128xf32>
    %321 = tpu.matmul %319, %320, %cst_359 {dimension_numbers = #tpu.dot_dimension_numbers<[1], [0], [0], [1], [0, 0, 1, 1], [], []>} : vector<4x128xf32>, vector<128x128xf32>, vector<4x128xf32> -> vector<4x128xf32>
    %322 = arith.addf %318, %321 : vector<4x128xf32>
    %c2_360 = arith.constant 2 : index
    %c0_361 = arith.constant 0 : index
    %323 = vector.load %arg11[%c2_360, %c0_361] : memref<6x128xf32, #tpu.memory_space<vmem>>, vector<4x128xf32>
    %c1384 = arith.constant 1384 : index
    %c0_362 = arith.constant 0 : index
    %324 = vector.load %arg2[%c1384, %c0_362] : memref<2216x128xf32, #tpu.memory_space<vmem>>, vector<128x128xf32>
    %cst_363 = arith.constant dense<0.000000e+00> : vector<4x128xf32>
    %325 = tpu.matmul %323, %324, %cst_363 {dimension_numbers = #tpu.dot_dimension_numbers<[1], [0], [0], [1], [0, 0, 1, 1], [], []>} : vector<4x128xf32>, vector<128x128xf32>, vector<4x128xf32> -> vector<4x128xf32>
    %326 = arith.addf %322, %325 : vector<4x128xf32>
    %c7 = arith.constant 7 : index
    %c0_364 = arith.constant 0 : index
    %327 = vector.load %arg3[%c7, %c0_364] : memref<16x128xf32, #tpu.memory_space<vmem>>, vector<1x128xf32>
    %328 = vector.broadcast %327 : vector<1x128xf32> to vector<4x128xf32>
    %329 = arith.addf %326, %328 : vector<4x128xf32>
    %cst_365 = arith.constant 0.000000e+00 : f32
    %330 = vector.broadcast %cst_365 : f32 to vector<4x128xf32>
    %331 = arith.maximumf %329, %330 : vector<4x128xf32>
    %cst_366 = arith.constant 0.000000e+00 : f32
    %332 = vector.broadcast %cst_366 : f32 to vector<1x128xf32>
    %c0_367 = arith.constant 0 : index
    %c0_368 = arith.constant 0 : index
    %333 = vector.load %arg12[%c0_367, %c0_368] : memref<6x128xf32, #tpu.memory_space<vmem>>, vector<1x128xf32>
    tpu.vector_store %arg12[%c0_367, %c0_368], %332 {strides = array<i32>} : memref<6x128xf32, #tpu.memory_space<vmem>>, vector<1x128xf32>,
    %c1_369 = arith.constant 1 : index
    %c0_370 = arith.constant 0 : index
    %334 = vector.load %arg12[%c1_369, %c0_370] : memref<6x128xf32, #tpu.memory_space<vmem>>, vector<4x128xf32>
    tpu.vector_store %arg12[%c1_369, %c0_370], %331 {strides = array<i32>} : memref<6x128xf32, #tpu.memory_space<vmem>>, vector<4x128xf32>,
    %cst_371 = arith.constant 0.000000e+00 : f32
    %335 = vector.broadcast %cst_371 : f32 to vector<1x128xf32>
    %c5_372 = arith.constant 5 : index
    %c0_373 = arith.constant 0 : index
    %336 = vector.load %arg12[%c5_372, %c0_373] : memref<6x128xf32, #tpu.memory_space<vmem>>, vector<1x128xf32>
    tpu.vector_store %arg12[%c5_372, %c0_373], %335 {strides = array<i32>} : memref<6x128xf32, #tpu.memory_space<vmem>>, vector<1x128xf32>,
    %c1_374 = arith.constant 1 : index
    %c0_375 = arith.constant 0 : index
    %337 = vector.load %arg11[%c1_374, %c0_375] : memref<6x128xf32, #tpu.memory_space<vmem>>, vector<4x128xf32>
    %c1896 = arith.constant 1896 : index
    %c0_376 = arith.constant 0 : index
    %338 = vector.load %arg2[%c1896, %c0_376] : memref<2216x128xf32, #tpu.memory_space<vmem>>, vector<128x128xf32>
    %cst_377 = arith.constant dense<0.000000e+00> : vector<4x128xf32>
    %339 = tpu.matmul %337, %338, %cst_377 {dimension_numbers = #tpu.dot_dimension_numbers<[1], [0], [0], [1], [0, 0, 1, 1], [], []>} : vector<4x128xf32>, vector<128x128xf32>, vector<4x128xf32> -> vector<4x128xf32>
    %c0_378 = arith.constant 0 : index
    %c0_379 = arith.constant 0 : index
    %340 = vector.load %arg12[%c0_378, %c0_379] : memref<6x128xf32, #tpu.memory_space<vmem>>, vector<4x128xf32>
    %c1512 = arith.constant 1512 : index
    %c0_380 = arith.constant 0 : index
    %341 = vector.load %arg2[%c1512, %c0_380] : memref<2216x128xf32, #tpu.memory_space<vmem>>, vector<128x128xf32>
    %cst_381 = arith.constant dense<0.000000e+00> : vector<4x128xf32>
    %342 = tpu.matmul %340, %341, %cst_381 {dimension_numbers = #tpu.dot_dimension_numbers<[1], [0], [0], [1], [0, 0, 1, 1], [], []>} : vector<4x128xf32>, vector<128x128xf32>, vector<4x128xf32> -> vector<4x128xf32>
    %343 = arith.addf %339, %342 : vector<4x128xf32>
    %c1_382 = arith.constant 1 : index
    %c0_383 = arith.constant 0 : index
    %344 = vector.load %arg12[%c1_382, %c0_383] : memref<6x128xf32, #tpu.memory_space<vmem>>, vector<4x128xf32>
    %c1640 = arith.constant 1640 : index
    %c0_384 = arith.constant 0 : index
    %345 = vector.load %arg2[%c1640, %c0_384] : memref<2216x128xf32, #tpu.memory_space<vmem>>, vector<128x128xf32>
    %cst_385 = arith.constant dense<0.000000e+00> : vector<4x128xf32>
    %346 = tpu.matmul %344, %345, %cst_385 {dimension_numbers = #tpu.dot_dimension_numbers<[1], [0], [0], [1], [0, 0, 1, 1], [], []>} : vector<4x128xf32>, vector<128x128xf32>, vector<4x128xf32> -> vector<4x128xf32>
    %347 = arith.addf %343, %346 : vector<4x128xf32>
    %c2_386 = arith.constant 2 : index
    %c0_387 = arith.constant 0 : index
    %348 = vector.load %arg12[%c2_386, %c0_387] : memref<6x128xf32, #tpu.memory_space<vmem>>, vector<4x128xf32>
    %c1768 = arith.constant 1768 : index
    %c0_388 = arith.constant 0 : index
    %349 = vector.load %arg2[%c1768, %c0_388] : memref<2216x128xf32, #tpu.memory_space<vmem>>, vector<128x128xf32>
    %cst_389 = arith.constant dense<0.000000e+00> : vector<4x128xf32>
    %350 = tpu.matmul %348, %349, %cst_389 {dimension_numbers = #tpu.dot_dimension_numbers<[1], [0], [0], [1], [0, 0, 1, 1], [], []>} : vector<4x128xf32>, vector<128x128xf32>, vector<4x128xf32> -> vector<4x128xf32>
    %351 = arith.addf %347, %350 : vector<4x128xf32>
    %c8_390 = arith.constant 8 : index
    %c0_391 = arith.constant 0 : index
    %352 = vector.load %arg3[%c8_390, %c0_391] : memref<16x128xf32, #tpu.memory_space<vmem>>, vector<1x128xf32>
    %353 = vector.broadcast %352 : vector<1x128xf32> to vector<4x128xf32>
    %354 = arith.addf %351, %353 : vector<4x128xf32>
    %cst_392 = arith.constant 0.000000e+00 : f32
    %355 = vector.broadcast %cst_392 : f32 to vector<4x128xf32>
    %356 = arith.maximumf %354, %355 : vector<4x128xf32>
    %cst_393 = arith.constant dense<0xFF800000> : vector<128xf32>
    %357 = vector.multi_reduction <maximumf>, %356, %cst_393 [0] : vector<4x128xf32> to vector<128xf32>
    %358 = vector.shape_cast %357 : vector<128xf32> to vector<1x128xf32>
    %c2024 = arith.constant 2024 : index
    %c0_394 = arith.constant 0 : index
    %359 = vector.load %arg2[%c2024, %c0_394] : memref<2216x128xf32, #tpu.memory_space<vmem>>, vector<128x64xf32>
    %cst_395 = arith.constant dense<0.000000e+00> : vector<1x64xf32>
    %360 = tpu.matmul %358, %359, %cst_395 {dimension_numbers = #tpu.dot_dimension_numbers<[1], [0], [0], [1], [0, 0, 1, 1], [], []>} : vector<1x128xf32>, vector<128x64xf32>, vector<1x64xf32> -> vector<1x64xf32>
    %c9 = arith.constant 9 : index
    %c0_396 = arith.constant 0 : index
    %361 = vector.load %arg3[%c9, %c0_396] : memref<16x128xf32, #tpu.memory_space<vmem>>, vector<1x64xf32>
    %362 = arith.addf %360, %361 : vector<1x64xf32>
    %cst_397 = arith.constant 0.000000e+00 : f32
    %363 = vector.broadcast %cst_397 : f32 to vector<1x64xf32>
    %364 = arith.maximumf %362, %363 : vector<1x64xf32>
    %c2152 = arith.constant 2152 : index
    %c0_398 = arith.constant 0 : index
    %365 = vector.load %arg2[%c2152, %c0_398] : memref<2216x128xf32, #tpu.memory_space<vmem>>, vector<64x128xf32>
    %cst_399 = arith.constant dense<0.000000e+00> : vector<1x128xf32>
    %366 = tpu.matmul %364, %365, %cst_399 {dimension_numbers = #tpu.dot_dimension_numbers<[1], [0], [0], [1], [0, 0, 1, 1], [], []>} : vector<1x64xf32>, vector<64x128xf32>, vector<1x128xf32> -> vector<1x128xf32>
    %c10 = arith.constant 10 : index
    %c0_400 = arith.constant 0 : index
    %367 = vector.load %arg3[%c10, %c0_400] : memref<16x128xf32, #tpu.memory_space<vmem>>, vector<1x128xf32>
    %368 = arith.addf %366, %367 : vector<1x128xf32>
    %cst_401 = arith.constant 0.000000e+00 : f32
    %369 = vector.broadcast %cst_401 : f32 to vector<1x128xf32>
    %370 = arith.maximumf %368, %369 : vector<1x128xf32>
    %c0_402 = arith.constant 0 : index
    %c0_403 = arith.constant 0 : index
    %c0_404 = arith.constant 0 : index
    %371 = vector.load %arg4[%c0_402, %c0_403, %c0_404] : memref<1x1x128xf32, #tpu.memory_space<vmem>>, vector<1x1x128xf32>
    %372 = vector.shape_cast %371 : vector<1x1x128xf32> to vector<1x128xf32>
    %373 = vector.shape_cast %370 : vector<1x128xf32> to vector<1x1x128xf32>
    tpu.vector_store %arg4[%c0_402, %c0_403, %c0_404], %373 {strides = array<i32>} : memref<1x1x128xf32, #tpu.memory_space<vmem>>, vector<1x1x128xf32>,
    return
  }
  func.func @transform_0(%arg0: i32) -> (i32, i32, i32) {
    %c0_i32 = arith.constant 0 : i32
    %c0_i32_0 = arith.constant 0 : i32
    %c0_i32_1 = arith.constant 0 : i32
    return %arg0, %c0_i32, %c0_i32_0 : i32, i32, i32
  }
  func.func @transform_1(%arg0: i32) -> (i32, i32) {
    %c0_i32 = arith.constant 0 : i32
    %c0_i32_0 = arith.constant 0 : i32
    %c0_i32_1 = arith.constant 0 : i32
    return %c0_i32, %c0_i32_0 : i32, i32
  }
  func.func @transform_2(%arg0: i32) -> (i32, i32) {
    %c0_i32 = arith.constant 0 : i32
    %c0_i32_0 = arith.constant 0 : i32
    %c0_i32_1 = arith.constant 0 : i32
    return %c0_i32, %c0_i32_0 : i32, i32
  }
  func.func @transform_3(%arg0: i32) -> (i32, i32, i32) {
    %c0_i32 = arith.constant 0 : i32
    %c0_i32_0 = arith.constant 0 : i32
    %c0_i32_1 = arith.constant 0 : i32
    return %arg0, %c0_i32, %c0_i32_0 : i32, i32, i32
  }
}

</mosaic_0001>

<bundles_post_ra>
// kernel: tssd_forward.1
= control target key start
LH: loop header
LB: loop body
LE: loop exit
PB: predicated region body
PF: predicated region fallthrough
CT: control target
= control target key end

     0   :  { %8 = vsyncpa [#allocation11], 0  ;;  %s17110_s0 = inlined_call_operand.vmem [shape: f32[2,1024,8], index: 0, kind: input, shape index: {}]   ;;  %s17111_s1 = inlined_call_operand.vmem [shape: f32[2216,128], index: 1, kind: input, shape index: {}]   ;;  %s17112_s2 = inlined_call_operand.vmem [shape: f32[16,128], index: 2, kind: input, shape index: {}]   ;;  %s17113_s3 = inlined_call_operand.hbm [shape: f32[2,1,128], index: 3, kind: output, shape index: {}]  }
   0x1   :  { %10 = vsyncpa [#allocation11 + $0x1], 0  ;;  %s14285_s12 = smov 0   ;;  %s14287_s13 = smov 0  }
   0x2   :  { %s14289_s14 = smov 0   ;;  %s14291_s15 = smov 0  }
   0x3 LB: > { %s14306_s16 = sadd.s32 4294967295, %s14259_s15   ;;  %s9543_s17 = sadd.s32 4294967294, %s14259_s15   ;;  %s14259_s15 = sphi %s14291_s15, %s17180_s15   ;;  %s14255_s14 = sphi %s14289_s14, %s17179_s14   ;;  %s14251_s13 = sphi %s14287_s13, %s17178_s13   ;;  %s14247_s12 = sphi %s14285_s12, %s17177_s12  }
   0x4   : > { %s14310_s18 = sadd.s32 1, %s14259_s15   ;;  %s91_s19 = sadd.s32 1, %s14255_s14 }
   0x5   : > { %s88_s20 = ssub.s32 %s14259_s15, %s14310_s18  ;;  %p101_p0 = scmp.ne.s32.totalorder %s14255_s14, %s14251_s13 }
   0x6   : > { %p89_p1 = scmp.eq.s32.totalorder %s88_s20, 0  ;;  %p102_p2 = scmp.eq.s32.totalorder %s14306_s16, 1 }
   0x7   : > { %p107_p3 = scmp.ne.s32.totalorder %s14251_s13, %s14247_s12  ;;  %p108_p4 = scmp.eq.s32.totalorder %s9543_s17, 1 }
   0x8   : > { %s14321_s21 = scalar_select %p89_p1, %s14255_s14, %s91_s19  }
   0x9   : > { %p14323_p5 = por %p102_p2, %p101_p0  ;;  %p14327_p6 = por %p108_p4, %p107_p3 }
   0xa   : > { %p9546_p7 = scmp.ge.s32.totalorder %s14259_s15, 1  ;;  %p140_p8 = scmp.lt.s32.totalorder %s14259_s15, 3 }
   0xc   : > { %p141_p9 = pnand %p9546_p7, %p140_p8 }
   0xe   : > { %144 = sbr.rel (%p141_p9) target bundleno = 3381 (0xd35), region = 32 }
  0x15   : > { %v168_v0 = vld [vmem:[%s17111_s1] sm:$0xff]  ;;  %p163_p10 = scmp.lt.s32.totalorder %s14306_s16, 1  ;;  %vm232_vm0 = vcmask 64512   ;;  %vm1874_vm1 = vcmask 122880   ;;  %vm1876_vm2 = vcmask 130048   ;;  %vm3076_vm3 = vcmask 253952  }
  0x16   : > { %13925 = vmatprep.subr.mxu1 %v168_v0  ;;  %11121 = vmatprep.subr.mxu0 %v168_v0  ;;  %vm3078_vm4 = vcmask 261120   ;;  %vm5776_vm5 = vcmask 516096   ;;  %vm5778_vm6 = vcmask 523264   ;;  %vm14263_vm7 = vmmov 0  }
  0x17   : > { %13926 = vmatpush3.msra.mxu1 %v168_v0  ;;  %11122 = vmatpush3.msra.mxu0 %v168_v0  ;;  %s164_s26 = scalar_select %p163_p10, %s14306_s16, 1  ;;  %vm9295_vm8 = vcmask 1043456  }
  0x18   : > { %11171 = vmatprep.subr.mxu1 %v168_v0  ;;  %11221 = vmatprep.subr.mxu0 %v168_v0 }
  0x19   : > { %s10107_s27 = sshll.u32 %s164_s26, 10 }
  0x1a   : > { %s14341_s30 = scalar_lea.vmem %s17110_s0, %s10107_s27  ;;  %s161_s27 = sand.u32 1, %s14251_s13  }
  0x1b   : > { %v169_v1 = vld [vmem:[%s14341_s30] ss:$4 sm:$0xff]  ;;  %v9612_v10 = vld [vmem:[%s14341_s30 + $0x1] ss:$4 sm:$0xff]  ;;  %v9676_v58 = vld [vmem:[%s14341_s30 + $0x2] ss:$4 sm:$0xff] }
  0x1c   : > { %v9576_v2 = vld [vmem:[%s14341_s30 + $0x380] ss:$4 sm:$0xff]  ;;  %11123 = vmatprep.mubr.msk.f32.mxu0 %vm232_vm0, %v169_v1  ;;  %v9613_v12 = vld [vmem:[%s14341_s30 + $0x21] ss:$4 sm:$0xff]  ;;  %v9677_v60 = vld [vmem:[%s14341_s30 + $0x22] ss:$4 sm:$0xff] }
  0x1d   : > { %v9549_v3 = vld [vmem:[%s14341_s30 + $0x20] ss:$4 sm:$0xff]  ;;  %11165 = vmatprep.mubr.msk.f32.mxu1 %vm232_vm0, %v9576_v2  ;;  %v9614_v14 = vld [vmem:[%s14341_s30 + $0x41] ss:$4 sm:$0xff]  ;;  %v9678_v62 = vld [vmem:[%s14341_s30 + $0x42] ss:$4 sm:$0xff] }
  0x1e   : > { %v9577_v4 = vld [vmem:[%s14341_s30 + $0x3a0] ss:$4 sm:$0xff]  ;;  %11124 = vmatmul.mubr.msk.f32.vlgmr.msra.gmra.mrb[0].mxu0 %vm232_vm0, %v9549_v3  ;;  %v9615_v16 = vld [vmem:[%s14341_s30 + $0x61] ss:$4 sm:$0xff]  ;;  %v9680_v2 = vld [vmem:[%s14341_s30 + $0x82] ss:$4 sm:$0xff] }
  0x1f   : > { %v9550_v5 = vld [vmem:[%s14341_s30 + $0x40] ss:$4 sm:$0xff]  ;;  %11166 = vmatmul.mubr.msk.f32.vlgmr.msra.gmra.mrb[0].mxu1 %vm232_vm0, %v9577_v4  ;;  %11222 = vmatpush3.msra.mxu0 %v168_v0  ;;  %v9616_v18 = vld [vmem:[%s14341_s30 + $0x81] ss:$4 sm:$0xff]  ;;  %v9681_v4 = vld [vmem:[%s14341_s30 + $0xa2] ss:$4 sm:$0xff] }
  0x20   : > { %v9578_v6 = vld [vmem:[%s14341_s30 + $0x3c0] ss:$4 sm:$0xff]  ;;  %11172 = vmatpush3.msra.mxu1 %v168_v0  ;;  %11126 = vmatprep.mubr.msk.f32.mxu0 %vm232_vm0, %v9550_v5  ;;  %v9617_v20 = vld [vmem:[%s14341_s30 + $0xa1] ss:$4 sm:$0xff]  ;;  %s162_s4 = scalar_lea.vmem [#allocation10], %s161_s27  ;;  %s9476_s9 = scalar_lea.sflag [#allocation11], %s161_s27 }
  0x21   : > { %v9551_v7 = vld [vmem:[%s14341_s30 + $0x60] ss:$4 sm:$0xff]  ;;  %11168 = vmatprep.mubr.msk.f32.mxu1 %vm232_vm0, %v9578_v6  ;;  %11271 = vmatprep.subr.mxu1 %v168_v0  ;;  %v9618_v22 = vld [vmem:[%s14341_s30 + $0xc1] ss:$4 sm:$0xff]  ;;  %v9682_v6 = vld [vmem:[%s14341_s30 + $0xc2] ss:$4 sm:$0xff] }
  0x22   : > { %v9579_v8 = vld [vmem:[%s14341_s30 + $0x3e0] ss:$4 sm:$0xff]  ;;  %11127 = vmatmul.mubr.msk.f32.gmra.mrb[2].mxu0 %vm232_vm0, %v9551_v7  ;;  %v9619_v24 = vld [vmem:[%s14341_s30 + $0xe1] ss:$4 sm:$0xff]  ;;  %s9488_s5 = sshll.u32 %s162_s4, 4  ;;  %s17070_s5 = int_to_ptr.vmem [resolvable:$true] %s9488_s5 }
  0x23   : > { %v9552_v9 = vld [vmem:[%s14341_s30 + $0x80] ss:$4 sm:$0xff]  ;;  %11169 = vmatmul.mubr.msk.f32.gmra.mrb[2].mxu1 %vm232_vm0, %v9579_v8  ;;  %v9620_v26 = vld [vmem:[%s14341_s30 + $0x101] ss:$4 sm:$0xff]  ;;  %v9683_v8 = vld [vmem:[%s14341_s30 + $0xe2] ss:$4 sm:$0xff] }
  0x24   : > { %11129 = vmatprep.mubr.msk.f32.mxu0 %vm232_vm0, %v9552_v9  ;;  %11173 = vmatprep.mubr.msk.f32.mxu1 %vm232_vm0, %v9612_v10  ;;  %v9553_v11 = vld [vmem:[%s14341_s30 + $0xa0] ss:$4 sm:$0xff]  ;;  %v9621_v28 = vld [vmem:[%s14341_s30 + $0x121] ss:$4 sm:$0xff]  ;;  %v9684_v9 = vld [vmem:[%s14341_s30 + $0x102] ss:$4 sm:$0xff] }
  0x25   : > { %v9554_v13 = vld [vmem:[%s14341_s30 + $0xc0] ss:$4 sm:$0xff]  ;;  %v9622_v30 = vld [vmem:[%s14341_s30 + $0x141] ss:$4 sm:$0xff]  ;;  %v9740_v10 = vld [vmem:[%s14341_s30 + $0x3] ss:$4 sm:$0xff] }
  0x26   : > { %11130 = vmatmul.mubr.msk.f32.gmra.mrb[4].mxu0 %vm232_vm0, %v9553_v11  ;;  %v9555_v15 = vld [vmem:[%s14341_s30 + $0xe0] ss:$4 sm:$0xff]  ;;  %v9623_v32 = vld [vmem:[%s14341_s30 + $0x161] ss:$4 sm:$0xff]  ;;  %v9685_v11 = vld [vmem:[%s14341_s30 + $0x122] ss:$4 sm:$0xff] }
  0x27   : > { %11174 = vmatmul.mubr.msk.f32.vlgmr.msra.gmra.mrb[4].mxu1 %vm232_vm0, %v9613_v12  ;;  %11132 = vmatprep.mubr.msk.f32.mxu0 %vm232_vm0, %v9554_v13  ;;  %v9556_v17 = vld [vmem:[%s14341_s30 + $0x100] ss:$4 sm:$0xff]  ;;  %v9624_v34 = vld [vmem:[%s14341_s30 + $0x181] ss:$4 sm:$0xff]  ;;  %v9741_v12 = vld [vmem:[%s14341_s30 + $0x23] ss:$4 sm:$0xff] }
  0x28   : > { %11272 = vmatpush3.msra.mxu1 %v168_v0  ;;  %11176 = vmatprep.mubr.msk.f32.mxu1 %vm232_vm0, %v9614_v14  ;;  %v9557_v19 = vld [vmem:[%s14341_s30 + $0x120] ss:$4 sm:$0xff]  ;;  %v9625_v36 = vld [vmem:[%s14341_s30 + $0x1a1] ss:$4 sm:$0xff]  ;;  %v9679_v0 = vld [vmem:[%s14341_s30 + $0x62] ss:$4 sm:$0xff] }
  0x29   : > { %v9558_v21 = vld [vmem:[%s14341_s30 + $0x140] ss:$4 sm:$0xff]  ;;  %v9626_v38 = vld [vmem:[%s14341_s30 + $0x1c1] ss:$4 sm:$0xff]  ;;  %v9686_v13 = vld [vmem:[%s14341_s30 + $0x142] ss:$4 sm:$0xff] }
  0x2a   : > { %11133 = vmatmul.mubr.msk.f32.gmra.mrb[6].mxu0 %vm232_vm0, %v9555_v15  ;;  %v9559_v23 = vld [vmem:[%s14341_s30 + $0x160] ss:$4 sm:$0xff]  ;;  %v9627_v40 = vld [vmem:[%s14341_s30 + $0x1e1] ss:$4 sm:$0xff]  ;;  %v9742_v14 = vld [vmem:[%s14341_s30 + $0x43] ss:$4 sm:$0xff] }
  0x2b   : > { %11177 = vmatmul.mubr.msk.f32.gmra.mrb[6].mxu1 %vm232_vm0, %v9615_v16  ;;  %11135 = vmatprep.mubr.msk.f32.mxu0 %vm232_vm0, %v9556_v17  ;;  %v9560_v25 = vld [vmem:[%s14341_s30 + $0x180] ss:$4 sm:$0xff]  ;;  %v9628_v42 = vld [vmem:[%s14341_s30 + $0x201] ss:$4 sm:$0xff]  ;;  %v9687_v15 = vld [vmem:[%s14341_s30 + $0x162] ss:$4 sm:$0xff] }
  0x2c   : > { %11179 = vmatprep.mubr.msk.f32.mxu1 %vm232_vm0, %v9616_v18  ;;  %v9561_v27 = vld [vmem:[%s14341_s30 + $0x1a0] ss:$4 sm:$0xff]  ;;  %v9629_v44 = vld [vmem:[%s14341_s30 + $0x221] ss:$4 sm:$0xff]  ;;  %v9743_v16 = vld [vmem:[%s14341_s30 + $0x63] ss:$4 sm:$0xff] }
  0x2d   : > { %v9562_v29 = vld [vmem:[%s14341_s30 + $0x1c0] ss:$4 sm:$0xff]  ;;  %v9630_v46 = vld [vmem:[%s14341_s30 + $0x241] ss:$4 sm:$0xff]  ;;  %v9688_v17 = vld [vmem:[%s14341_s30 + $0x182] ss:$4 sm:$0xff] }
  0x2e   : > { %11136 = vmatmul.mubr.msk.f32.gmra.mrb[8].mxu0 %vm232_vm0, %v9557_v19  ;;  %v9563_v31 = vld [vmem:[%s14341_s30 + $0x1e0] ss:$4 sm:$0xff]  ;;  %v9631_v48 = vld [vmem:[%s14341_s30 + $0x261] ss:$4 sm:$0xff]  ;;  %v9744_v18 = vld [vmem:[%s14341_s30 + $0x83] ss:$4 sm:$0xff] }
  0x2f   : > { %11180 = vmatmul.mubr.msk.f32.gmra.mrb[8].mxu1 %vm232_vm0, %v9617_v20  ;;  %11138 = vmatprep.mubr.msk.f32.mxu0 %vm232_vm0, %v9558_v21  ;;  %v9564_v33 = vld [vmem:[%s14341_s30 + $0x200] ss:$4 sm:$0xff]  ;;  %v9632_v50 = vld [vmem:[%s14341_s30 + $0x281] ss:$4 sm:$0xff]  ;;  %v9689_v19 = vld [vmem:[%s14341_s30 + $0x1a2] ss:$4 sm:$0xff] }
  0x30   : > { %11182 = vmatprep.mubr.msk.f32.mxu1 %vm232_vm0, %v9618_v22  ;;  %v9565_v35 = vld [vmem:[%s14341_s30 + $0x220] ss:$4 sm:$0xff]  ;;  %v9633_v52 = vld [vmem:[%s14341_s30 + $0x2a1] ss:$4 sm:$0xff]  ;;  %v9745_v20 = vld [vmem:[%s14341_s30 + $0xa3] ss:$4 sm:$0xff] }
  0x31   : > { %v9566_v37 = vld [vmem:[%s14341_s30 + $0x240] ss:$4 sm:$0xff]  ;;  %v9634_v54 = vld [vmem:[%s14341_s30 + $0x2c1] ss:$4 sm:$0xff]  ;;  %v9690_v21 = vld [vmem:[%s14341_s30 + $0x1c2] ss:$4 sm:$0xff] }
  0x32   : > { %11139 = vmatmul.mubr.msk.f32.gmra.mrb[10].mxu0 %vm232_vm0, %v9559_v23  ;;  %v9567_v39 = vld [vmem:[%s14341_s30 + $0x260] ss:$4 sm:$0xff]  ;;  %v9635_v56 = vld [vmem:[%s14341_s30 + $0x2e1] ss:$4 sm:$0xff]  ;;  %v9746_v22 = vld [vmem:[%s14341_s30 + $0xc3] ss:$4 sm:$0xff] }
  0x33   : > { %11183 = vmatmul.mubr.msk.f32.gmra.mrb[10].mxu1 %vm232_vm0, %v9619_v24  ;;  %11141 = vmatprep.mubr.msk.f32.mxu0 %vm232_vm0, %v9560_v25  ;;  %v9568_v41 = vld [vmem:[%s14341_s30 + $0x280] ss:$4 sm:$0xff]  ;;  %v9636_v57 = vld [vmem:[%s14341_s30 + $0x301] ss:$4 sm:$0xff]  ;;  %v9691_v23 = vld [vmem:[%s14341_s30 + $0x1e2] ss:$4 sm:$0xff] }
  0x34   : > { %11185 = vmatprep.mubr.msk.f32.mxu1 %vm232_vm0, %v9620_v26  ;;  %v9569_v43 = vld [vmem:[%s14341_s30 + $0x2a0] ss:$4 sm:$0xff]  ;;  %v9637_v59 = vld [vmem:[%s14341_s30 + $0x321] ss:$4 sm:$0xff]  ;;  %v9747_v24 = vld [vmem:[%s14341_s30 + $0xe3] ss:$4 sm:$0xff] }
  0x35   : > { %v9570_v45 = vld [vmem:[%s14341_s30 + $0x2c0] ss:$4 sm:$0xff]  ;;  %v9638_v61 = vld [vmem:[%s14341_s30 + $0x341] ss:$4 sm:$0xff]  ;;  %v9692_v25 = vld [vmem:[%s14341_s30 + $0x202] ss:$4 sm:$0xff] }
  0x36   : > { %11142 = vmatmul.mubr.msk.f32.gmra.mrb[12].mxu0 %vm232_vm0, %v9561_v27  ;;  %v9571_v47 = vld [vmem:[%s14341_s30 + $0x2e0] ss:$4 sm:$0xff]  ;;  %v9639_v63 = vld [vmem:[%s14341_s30 + $0x361] ss:$4 sm:$0xff]  ;;  %v9748_v26 = vld [vmem:[%s14341_s30 + $0x103] ss:$4 sm:$0xff] }
  0x37   : > { %11186 = vmatmul.mubr.msk.f32.gmra.mrb[12].mxu1 %vm232_vm0, %v9621_v28  ;;  %11144 = vmatprep.mubr.msk.f32.mxu0 %vm232_vm0, %v9562_v29  ;;  %v9572_v49 = vld [vmem:[%s14341_s30 + $0x300] ss:$4 sm:$0xff]  ;;  %v9640_v1 = vld [vmem:[%s14341_s30 + $0x381] ss:$4 sm:$0xff]  ;;  %v9693_v27 = vld [vmem:[%s14341_s30 + $0x222] ss:$4 sm:$0xff] }
  0x38   : > { %11188 = vmatprep.mubr.msk.f32.mxu1 %vm232_vm0, %v9622_v30  ;;  %v9573_v51 = vld [vmem:[%s14341_s30 + $0x320] ss:$4 sm:$0xff]  ;;  %v9641_v3 = vld [vmem:[%s14341_s30 + $0x3a1] ss:$4 sm:$0xff]  ;;  %v9749_v28 = vld [vmem:[%s14341_s30 + $0x123] ss:$4 sm:$0xff] }
  0x39   : > { %v9574_v53 = vld [vmem:[%s14341_s30 + $0x340] ss:$4 sm:$0xff]  ;;  %v9642_v5 = vld [vmem:[%s14341_s30 + $0x3c1] ss:$4 sm:$0xff]  ;;  %v9694_v29 = vld [vmem:[%s14341_s30 + $0x242] ss:$4 sm:$0xff] }
  0x3a   : > { %11145 = vmatmul.mubr.msk.f32.gmra.mrb[14].mxu0 %vm232_vm0, %v9563_v31  ;;  %v9575_v55 = vld [vmem:[%s14341_s30 + $0x360] ss:$4 sm:$0xff]  ;;  %v9643_v7 = vld [vmem:[%s14341_s30 + $0x3e1] ss:$4 sm:$0xff]  ;;  %v9750_v30 = vld [vmem:[%s14341_s30 + $0x143] ss:$4 sm:$0xff] }
  0x3b   : > { %11189 = vmatmul.mubr.msk.f32.gmra.mrb[14].mxu1 %vm232_vm0, %v9623_v32  ;;  %11147 = vmatprep.mubr.msk.f32.mxu0 %vm232_vm0, %v9564_v33  ;;  %v9695_v31 = vld [vmem:[%s14341_s30 + $0x262] ss:$4 sm:$0xff]  ;;  %v9751_v32 = vld [vmem:[%s14341_s30 + $0x163] ss:$4 sm:$0xff]  ;;  %s14197_s10 = scalar_lea.vmem %s17070_s5, 16 }
  0x3c   : > { %11191 = vmatprep.mubr.msk.f32.mxu1 %vm232_vm0, %v9624_v34  ;;  %v9696_v33 = vld [vmem:[%s14341_s30 + $0x282] ss:$4 sm:$0xff]  ;;  %v9752_v34 = vld [vmem:[%s14341_s30 + $0x183] ss:$4 sm:$0xff]  ;;  %p14198_p11 = scmp.ne.s32.totalorder %s17070_s5, %s14197_s10 }
  0x3e   : > { %11148 = vmatmul.mubr.msk.f32.gmra.mrb[16].mxu0 %vm232_vm0, %v9565_v35  ;;  %v9697_v35 = vld [vmem:[%s14341_s30 + $0x2a2] ss:$4 sm:$0xff]  ;;  %p14199_p12 = pnand %p14198_p11, %p14323_p5 }
  0x3f   : > { %11192 = vmatmul.mubr.msk.f32.gmra.mrb[16].mxu1 %vm232_vm0, %v9625_v36  ;;  %11150 = vmatprep.mubr.msk.f32.mxu0 %vm232_vm0, %v9566_v37  ;;  %v9753_v36 = vld [vmem:[%s14341_s30 + $0x1a3] ss:$4 sm:$0xff]  ;;  %v9698_v37 = vld [vmem:[%s14341_s30 + $0x2c2] ss:$4 sm:$0xff] }
  0x40   : > { %11194 = vmatprep.mubr.msk.f32.mxu1 %vm232_vm0, %v9626_v38  ;;  %v9754_v38 = vld [vmem:[%s14341_s30 + $0x1c3] ss:$4 sm:$0xff]  ;;  %p14200_p13 = pneg %p14199_p12 }
  0x42   : > { %11151 = vmatmul.mubr.msk.f32.gmra.mrb[18].mxu0 %vm232_vm0, %v9567_v39  ;;  %v9699_v39 = vld [vmem:[%s14341_s30 + $0x2e2] ss:$4 sm:$0xff] }
  0x43   : > { %11195 = vmatmul.mubr.msk.f32.gmra.mrb[18].mxu1 %vm232_vm0, %v9627_v40  ;;  %11153 = vmatprep.mubr.msk.f32.mxu0 %vm232_vm0, %v9568_v41  ;;  %v9755_v40 = vld [vmem:[%s14341_s30 + $0x1e3] ss:$4 sm:$0xff]  ;;  %v9700_v41 = vld [vmem:[%s14341_s30 + $0x302] ss:$4 sm:$0xff] }
  0x44   : > { %11197 = vmatprep.mubr.msk.f32.mxu1 %vm232_vm0, %v9628_v42  ;;  %v9756_v42 = vld [vmem:[%s14341_s30 + $0x203] ss:$4 sm:$0xff] }
  0x46   : > { %11154 = vmatmul.mubr.msk.f32.gmra.mrb[20].mxu0 %vm232_vm0, %v9569_v43  ;;  %v9701_v43 = vld [vmem:[%s14341_s30 + $0x322] ss:$4 sm:$0xff] }
  0x47   : > { %11198 = vmatmul.mubr.msk.f32.gmra.mrb[20].mxu1 %vm232_vm0, %v9629_v44  ;;  %11156 = vmatprep.mubr.msk.f32.mxu0 %vm232_vm0, %v9570_v45  ;;  %v9757_v44 = vld [vmem:[%s14341_s30 + $0x223] ss:$4 sm:$0xff]  ;;  %v9702_v45 = vld [vmem:[%s14341_s30 + $0x342] ss:$4 sm:$0xff] }
  0x48   : > { %11200 = vmatprep.mubr.msk.f32.mxu1 %vm232_vm0, %v9630_v46  ;;  %v9758_v46 = vld [vmem:[%s14341_s30 + $0x243] ss:$4 sm:$0xff] }
  0x4a   : > { %11157 = vmatmul.mubr.msk.f32.gmra.mrb[22].mxu0 %vm232_vm0, %v9571_v47  ;;  %v9703_v47 = vld [vmem:[%s14341_s30 + $0x362] ss:$4 sm:$0xff] }
  0x4b   : > { %11201 = vmatmul.mubr.msk.f32.gmra.mrb[22].mxu1 %vm232_vm0, %v9631_v48  ;;  %11159 = vmatprep.mubr.msk.f32.mxu0 %vm232_vm0, %v9572_v49  ;;  %v9759_v48 = vld [vmem:[%s14341_s30 + $0x263] ss:$4 sm:$0xff]  ;;  %v9704_v49 = vld [vmem:[%s14341_s30 + $0x382] ss:$4 sm:$0xff] }
  0x4c   : > { %11203 = vmatprep.mubr.msk.f32.mxu1 %vm232_vm0, %v9632_v50  ;;  %v9760_v50 = vld [vmem:[%s14341_s30 + $0x283] ss:$4 sm:$0xff] }
  0x4e   : > { %11160 = vmatmul.mubr.msk.f32.gmra.mrb[24].mxu0 %vm232_vm0, %v9573_v51  ;;  %v1976_v51 = vld [vmem:[%s17111_s1 + $0x18] sm:$0xff] }
  0x4f   : > { %11204 = vmatmul.mubr.msk.f32.gmra.mrb[24].mxu1 %vm232_vm0, %v9633_v52  ;;  %11162 = vmatprep.mubr.msk.f32.mxu0 %vm232_vm0, %v9574_v53  ;;  %v1977_v52 = vld [vmem:[%s17111_s1 + $0x20] sm:$0xff] }
  0x50   : > { %11206 = vmatprep.mubr.msk.f32.mxu1 %vm232_vm0, %v9634_v54  ;;  %v9705_v53 = vld [vmem:[%s14341_s30 + $0x3a2] ss:$4 sm:$0xff]  ;;  %v9761_v54 = vld [vmem:[%s14341_s30 + $0x2a3] ss:$4 sm:$0xff] }
  0x52   : > { %11163 = vmatmul.mubr.msk.f32.gmra.mrb[26].mxu0 %vm232_vm0, %v9575_v55  ;;  %v12965_v55 = vpack.c.bf16 %v1977_v52, %v1976_v51 }
  0x53   : > { %11207 = vmatmul.mubr.msk.f32.gmra.mrb[26].mxu1 %vm232_vm0, %v9635_v56  ;;  %11223 = vmatprep.mubr.msk.f32.mxu0 %vm232_vm0, %v9676_v58  ;;  %v9706_v56 = vld [vmem:[%s14341_s30 + $0x3c2] ss:$4 sm:$0xff] }
  0x54   : > { %11209 = vmatprep.mubr.msk.f32.mxu1 %vm232_vm0, %v9636_v57  ;;  %v9762_v57 = vld [vmem:[%s14341_s30 + $0x2c3] ss:$4 sm:$0xff]  ;;  %12966 = vmatprep.subr.bf16.mxu0 %v12965_v55  ;;  %v9707_v58 = vld [vmem:[%s14341_s30 + $0x3e2] ss:$4 sm:$0xff] }
  0x56   : > { %11224 = vmatmul.mubr.msk.f32.vlgmr.msra.gmra.mrb[28].mxu0 %vm232_vm0, %v9677_v60  ;;  %v9764_v60 = vld [vmem:[%s14341_s30 + $0x303] ss:$4 sm:$0xff] }
  0x57   : > { %11210 = vmatmul.mubr.msk.f32.gmra.mrb[28].mxu1 %vm232_vm0, %v9637_v59  ;;  %11226 = vmatprep.mubr.msk.f32.mxu0 %vm232_vm0, %v9678_v62  ;;  %v9763_v59 = vld [vmem:[%s14341_s30 + $0x2e3] ss:$4 sm:$0xff] }
  0x58   : > { %11212 = vmatprep.mubr.msk.f32.mxu1 %vm232_vm0, %v9638_v61  ;;  %12968 = vmatpush3.bf16.msra.mxu0 %v12965_v55  ;;  %v9765_v61 = vld [vmem:[%s14341_s30 + $0x323] ss:$4 sm:$0xff] }
  0x59   : > { %v9766_v62 = vld [vmem:[%s14341_s30 + $0x343] ss:$4 sm:$0xff] }
  0x5a   : > { %11227 = vmatmul.mubr.msk.f32.gmra.mrb[30].mxu0 %vm232_vm0, %v9679_v0  ;;  %v9768_v0 = vld [vmem:[%s14341_s30 + $0x383] ss:$4 sm:$0xff] }
  0x5b   : > { %11213 = vmatmul.mubr.msk.f32.gmra.mrb[30].mxu1 %vm232_vm0, %v9639_v63  ;;  %11229 = vmatprep.mubr.msk.f32.mxu0 %vm232_vm0, %v9680_v2  ;;  %v9767_v63 = vld [vmem:[%s14341_s30 + $0x363] ss:$4 sm:$0xff] }
  0x5c   : > { %11215 = vmatprep.mubr.msk.f32.mxu1 %vm232_vm0, %v9640_v1  ;;  %v9769_v1 = vld [vmem:[%s14341_s30 + $0x3a3] ss:$4 sm:$0xff] }
  0x5d   : > { %v9770_v2 = vld [vmem:[%s14341_s30 + $0x3c3] ss:$4 sm:$0xff] }
  0x5e   : > { %11230 = vmatmul.mubr.msk.f32.gmra.mrb[32].mxu0 %vm232_vm0, %v9681_v4  ;;  %v17114_v4 = vmov 0.0  }
  0x5f   : > { %11216 = vmatmul.mubr.msk.f32.gmra.mrb[32].mxu1 %vm232_vm0, %v9641_v3  ;;  %11232 = vmatprep.mubr.msk.f32.mxu0 %vm232_vm0, %v9682_v6  ;;  %v9771_v3 = vld [vmem:[%s14341_s30 + $0x3e3] ss:$4 sm:$0xff]  ;;  %1875 = vst.msk [vmem:[#allocation2] sm:$0x1] %vm1874_vm1, %v17114_v4  ;;  %1909 = vst.msk [vmem:[#allocation2 + $0x101] sm:$0x1] %vm1874_vm1, %v17114_v4 }
  0x60   : > { %11218 = vmatprep.mubr.msk.f32.mxu1 %vm232_vm0, %v9642_v5  ;;  %7434 = vst [vmem:[#allocation7] sm:$0x1] %v17114_v4  ;;  %7437 = vst [vmem:[#allocation7 + $0x11] sm:$0x1] %v17114_v4  ;;  %v1942_v5 = vld [vmem:[%s17111_s1 + $0x8] sm:$0xff]  ;;  %v1943_v6 = vld [vmem:[%s17111_s1 + $0x10] sm:$0xff] }
  0x61   : > { %8663 = vst [vmem:[#allocation8] sm:$0x1] %v17114_v4  ;;  %8665 = vst [vmem:[#allocation8 + $0x5] sm:$0x1] %v17114_v4  ;;  %s10104_s30 = sshll.u32 %s14306_s16, 4  ;;  %s14264_s16 = smov [#allocation10]  }
  0x62   : > { %11233 = vmatmul.mubr.msk.f32.gmra.mrb[34].mxu0 %vm232_vm0, %v9683_v8  ;;  %8935 = vst [vmem:[#allocation9] sm:$0x1] %v17114_v4  ;;  %8937 = vst [vmem:[#allocation9 + $0x5] sm:$0x1] %v17114_v4  ;;  %s17068_s8 = scalar_lea.hbm %s17113_s3, %s10104_s30  ;;  %s14201_s11 = sshll.u32 %s14264_s16, 4  ;;  %s14202_s11 = int_to_ptr.vmem [resolvable:$false] %s14201_s11 }
  0x63   : > { %11219 = vmatmul.mubr.msk.f32.gmra.mrb[34].mxu1 %vm232_vm0, %v9643_v7  ;;  %11235 = vmatprep.mubr.msk.f32.mxu0 %vm232_vm0, %v9684_v9  ;;  %v14619_v7 = vpack.c.bf16 %v1943_v6, %v1942_v5  ;;  %s14203_s17 = scalar_lea.vmem %s14202_s11, 32  ;;  %p14204_p0 = scmp.lt.s32.totalorder %s17070_s5, %s14202_s11 }
  0x64   : > { %11273 = vmatprep.mubr.msk.f32.mxu1 %vm232_vm0, %v9740_v10  ;;  %p14205_p1 = scmp.lt.s32.totalorder %s14203_s17, %s14197_s10 }
  0x65   : > { %12970 = vmatprep.subr.bf16.mxu0 %v14619_v7 }
  0x66   : > { %11236 = vmatmul.mubr.msk.f32.gmra.mrb[36].mxu0 %vm232_vm0, %v9685_v11  ;;  %p14206_p2 = por %p14205_p1, %p14204_p0 }
  0x67   : > { %11274 = vmatmul.mubr.msk.f32.vlgmr.msra.gmra.mrb[36].mxu1 %vm232_vm0, %v9741_v12  ;;  %11238 = vmatprep.mubr.msk.f32.mxu0 %vm232_vm0, %v9686_v13 }
  0x68   : > { %11276 = vmatprep.mubr.msk.f32.mxu1 %vm232_vm0, %v9742_v14  ;;  %p14207_p3 = pnand %p14206_p2, %p14200_p13 }
  0x6a   : > { %11239 = vmatmul.mubr.msk.f32.gmra.mrb[38].mxu0 %vm232_vm0, %v9687_v15 }
  0x6b   : > { %11277 = vmatmul.mubr.msk.f32.gmra.mrb[38].mxu1 %vm232_vm0, %v9743_v16  ;;  %11241 = vmatprep.mubr.msk.f32.mxu0 %vm232_vm0, %v9688_v17 }
  0x6c   : > { %11279 = vmatprep.mubr.msk.f32.mxu1 %vm232_vm0, %v9744_v18 }
  0x6e   : > { %11242 = vmatmul.mubr.msk.f32.gmra.mrb[40].mxu0 %vm232_vm0, %v9689_v19 }
  0x6f   : > { %11280 = vmatmul.mubr.msk.f32.gmra.mrb[40].mxu1 %vm232_vm0, %v9745_v20  ;;  %11244 = vmatprep.mubr.msk.f32.mxu0 %vm232_vm0, %v9690_v21 }
  0x70   : > { %11282 = vmatprep.mubr.msk.f32.mxu1 %vm232_vm0, %v9746_v22 }
  0x72   : > { %11245 = vmatmul.mubr.msk.f32.gmra.mrb[42].mxu0 %vm232_vm0, %v9691_v23 }
  0x73   : > { %11283 = vmatmul.mubr.msk.f32.gmra.mrb[42].mxu1 %vm232_vm0, %v9747_v24  ;;  %11247 = vmatprep.mubr.msk.f32.mxu0 %vm232_vm0, %v9692_v25 }
  0x74   : > { %11285 = vmatprep.mubr.msk.f32.mxu1 %vm232_vm0, %v9748_v26 }
  0x76   : > { %11248 = vmatmul.mubr.msk.f32.gmra.mrb[44].mxu0 %vm232_vm0, %v9693_v27 }
  0x77   : > { %11286 = vmatmul.mubr.msk.f32.gmra.mrb[44].mxu1 %vm232_vm0, %v9749_v28  ;;  %11250 = vmatprep.mubr.msk.f32.mxu0 %vm232_vm0, %v9694_v29 }
  0x78   : > { %11288 = vmatprep.mubr.msk.f32.mxu1 %vm232_vm0, %v9750_v30 }
  0x7a   : > { %11251 = vmatmul.mubr.msk.f32.gmra.mrb[46].mxu0 %vm232_vm0, %v9695_v31 }
  0x7b   : > { %11289 = vmatmul.mubr.msk.f32.gmra.mrb[46].mxu1 %vm232_vm0, %v9751_v32  ;;  %11253 = vmatprep.mubr.msk.f32.mxu0 %vm232_vm0, %v9696_v33 }
  0x7c   : > { %11291 = vmatprep.mubr.msk.f32.mxu1 %vm232_vm0, %v9752_v34 }
  0x7e   : > { %11254 = vmatmul.mubr.msk.f32.gmra.mrb[48].mxu0 %vm232_vm0, %v9697_v35 }
  0x7f   : > { %11292 = vmatmul.mubr.msk.f32.gmra.mrb[48].mxu1 %vm232_vm0, %v9753_v36  ;;  %11256 = vmatprep.mubr.msk.f32.mxu0 %vm232_vm0, %v9698_v37 }
  0x80   : > { %11294 = vmatprep.mubr.msk.f32.mxu1 %vm232_vm0, %v9754_v38 }
  0x82   : > { %11257 = vmatmul.mubr.msk.f32.gmra.mrb[50].mxu0 %vm232_vm0, %v9699_v39 }
  0x83   : > { %11295 = vmatmul.mubr.msk.f32.gmra.mrb[50].mxu1 %vm232_vm0, %v9755_v40  ;;  %11259 = vmatprep.mubr.msk.f32.mxu0 %vm232_vm0, %v9700_v41 }
  0x84   : > { %11297 = vmatprep.mubr.msk.f32.mxu1 %vm232_vm0, %v9756_v42 }
  0x86   : > { %11260 = vmatmul.mubr.msk.f32.gmra.mrb[52].mxu0 %vm232_vm0, %v9701_v43 }
  0x87   : > { %11298 = vmatmul.mubr.msk.f32.gmra.mrb[52].mxu1 %vm232_vm0, %v9757_v44  ;;  %11262 = vmatprep.mubr.msk.f32.mxu0 %vm232_vm0, %v9702_v45 }
  0x88   : > { %11300 = vmatprep.mubr.msk.f32.mxu1 %vm232_vm0, %v9758_v46 }
  0x8a   : > { %11263 = vmatmul.mubr.msk.f32.gmra.mrb[54].mxu0 %vm232_vm0, %v9703_v47 }
  0x8b   : > { %11301 = vmatmul.mubr.msk.f32.gmra.mrb[54].mxu1 %vm232_vm0, %v9759_v48  ;;  %11265 = vmatprep.mubr.msk.f32.mxu0 %vm232_vm0, %v9704_v49 }
  0x8c   : > { %11303 = vmatprep.mubr.msk.f32.mxu1 %vm232_vm0, %v9760_v50 }
  0x8e   : > { %11266 = vmatmul.mubr.msk.f32.gmra.mrb[56].mxu0 %vm232_vm0, %v9705_v53 }
  0x8f   : > { %11304 = vmatmul.mubr.msk.f32.gmra.mrb[56].mxu1 %vm232_vm0, %v9761_v54  ;;  %11268 = vmatprep.mubr.msk.f32.mxu0 %vm232_vm0, %v9706_v56 }
  0x90   : > { %11306 = vmatprep.mubr.msk.f32.mxu1 %vm232_vm0, %v9762_v57 }
  0x92   : > { %11269 = vmatmul.mubr.msk.f32.gmra.mrb[58].mxu0 %vm232_vm0, %v9707_v58 }
  0x93   : > { %11307 = vmatmul.mubr.msk.f32.gmra.mrb[58].mxu1 %vm232_vm0, %v9763_v59 }
  0x94   : > { %11309 = vmatprep.mubr.msk.f32.mxu1 %vm232_vm0, %v9764_v60 }
  0x97   : > { %11310 = vmatmul.mubr.msk.f32.gmra.mrb[60].mxu1 %vm232_vm0, %v9765_v61 }
  0x98   : > { %11312 = vmatprep.mubr.msk.f32.mxu1 %vm232_vm0, %v9766_v62 }
  0x9b   : > { %11313 = vmatmul.mubr.msk.f32.gmra.mrb[62].mxu1 %vm232_vm0, %v9767_v63  ;;  %v14841_v63 = vld [vmem:[%s17112_s2] ss:$0 sm:$0xff] }
  0x9c   : > { %11315 = vmatprep.mubr.msk.f32.mxu1 %vm232_vm0, %v9768_v0 }
  0x9f   : > { %11316 = vmatmul.mubr.msk.f32.gmra.mrb[64].mxu1 %vm232_vm0, %v9769_v1 }
  0xa0   : > { %11318 = vmatprep.mubr.msk.f32.mxu1 %vm232_vm0, %v9770_v2 }
  0xa3   : > { %11319 = vmatmul.mubr.msk.f32.gmra.mrb[66].mxu1 %vm232_vm0, %v9771_v3 }
  0xf1   : > { %v14624_v9 = vpop.f32.mrb[0].mxu0 }
  0xf2   : > { %v14622_v8 = vpop.f32.mrb[0].mxu1  ;;  %v14628_v11 = vpop.f32.mrb[1].mxu0 }
  0xf3   : > { %v14626_v10 = vpop.f32.mrb[1].mxu1 }
  0xf5   : > { %v14632_v13 = vpop.f32.mrb[2].mxu0 }
  0xf6   : > { %v14630_v12 = vpop.f32.mrb[2].mxu1  ;;  %v14636_v15 = vpop.f32.mrb[3].mxu0 }
  0xf7   : > { %17127 = vst [vmem:[#allocation13_spill] sm:$0xff] %v14630_v12  ;;  %v14634_v14 = vpop.f32.mrb[3].mxu1 }
  0xf8   : > { %17128 = vst [vmem:[#allocation14_spill] sm:$0xff] %v14634_v14 }
  0xf9   : > { %v14640_v17 = vpop.f32.mrb[4].mxu0 }
  0xfa   : > { %v14638_v16 = vpop.f32.mrb[4].mxu1  ;;  %v14646_v20 = vpop.f32.mrb[5].mxu0 }
  0xfb   : > { %v940_v18 = vmax.f32 %v14624_v9, %v14638_v16  ;;  %v14644_v19 = vpop.f32.mrb[5].mxu1 }
  0xfd   : > { %v14652_v23 = vpop.f32.mrb[6].mxu0 }
  0xfe   : > { %v14650_v22 = vpop.f32.mrb[6].mxu1  ;;  %v14658_v26 = vpop.f32.mrb[7].mxu0 }
  0xff   : > { %v14656_v25 = vpop.f32.mrb[7].mxu1  ;;  %v17135_v9 = vmax.f32 %v14632_v13, %v14650_v22 }
 0x101   : > { %v14664_v29 = vpop.f32.mrb[8].mxu0 }
 0x102   : > { %v14662_v28 = vpop.f32.mrb[8].mxu1  ;;  %v14670_v32 = vpop.f32.mrb[9].mxu0 }
 0x103   : > { %v14668_v31 = vpop.f32.mrb[9].mxu1  ;;  %v17137_v13 = vmax.f32 %v14640_v17, %v14662_v28 }
 0x105   : > { %v14676_v35 = vpop.f32.mrb[10].mxu0 }
 0x106   : > { %v14674_v34 = vpop.f32.mrb[10].mxu1  ;;  %v14682_v38 = vpop.f32.mrb[11].mxu0 }
 0x107   : > { %v14680_v37 = vpop.f32.mrb[11].mxu1  ;;  %v17140_v17 = vmax.f32 %v14652_v23, %v14674_v34 }
 0x109   : > { %v14688_v41 = vpop.f32.mrb[12].mxu0 }
 0x10a   : > { %v14686_v40 = vpop.f32.mrb[12].mxu1  ;;  %v14694_v44 = vpop.f32.mrb[13].mxu0 }
 0x10b   : > { %v14692_v43 = vpop.f32.mrb[13].mxu1  ;;  %v17143_v23 = vmax.f32 %v14664_v29, %v14686_v40 }
 0x10d   : > { %v14700_v47 = vpop.f32.mrb[14].mxu0 }
 0x10e   : > { %v14698_v46 = vpop.f32.mrb[14].mxu1  ;;  %v14706_v50 = vpop.f32.mrb[15].mxu0 }
 0x10f   : > { %v14704_v49 = vpop.f32.mrb[15].mxu1  ;;  %v17145_v29 = vmax.f32 %v14676_v35, %v14698_v46 }
 0x111   : > { %v14712_v53 = vpop.f32.mrb[16].mxu0 }
 0x112   : > { %v14710_v52 = vpop.f32.mrb[16].mxu1  ;;  %v14718_v56 = vpop.f32.mrb[17].mxu0 }
 0x113   : > { %v14716_v55 = vpop.f32.mrb[17].mxu1 }
 0x115   : > { %v14724_v59 = vpop.f32.mrb[18].mxu0 }
 0x116   : > { %v14722_v58 = vpop.f32.mrb[18].mxu1  ;;  %v14730_v62 = vpop.f32.mrb[19].mxu0 }
 0x117   : > { %v14728_v61 = vpop.f32.mrb[19].mxu1 }
 0x119   : > { %v14736_v1 = vpop.f32.mrb[20].mxu0 }
 0x11a   : > { %v14734_v0 = vpop.f32.mrb[20].mxu1  ;;  %v14742_v5 = vpop.f32.mrb[21].mxu0 }
 0x11b   : > { %v14740_v3 = vpop.f32.mrb[21].mxu1 }
 0x11d   : > { %v14748_v60 = vpop.f32.mrb[22].mxu0 }
 0x11e   : > { %v14746_v4 = vpop.f32.mrb[22].mxu1  ;;  %17129 = vst [vmem:[#allocation15_spill] sm:$0xff] %v14748_v60  ;;  %v14754_v54 = vpop.f32.mrb[23].mxu0  ;;  %v17134_v60 = vmax.f32 %v14628_v11, %v14644_v19  ;;  %v17136_v11 = vmax.f32 %v14636_v15, %v14656_v25  ;;  %v17138_v15 = vmax.f32 %v14646_v20, %v14668_v31  ;;  %v17142_v20 = vmax.f32 %v14658_v26, %v14680_v37 }
 0x11f   : > { %v14752_v57 = vpop.f32.mrb[23].mxu1  ;;  %17130 = vst [vmem:[#allocation16_spill] sm:$0xff] %v14754_v54 }
 0x121   : > { %v14760_v48 = vpop.f32.mrb[24].mxu0 }
 0x122   : > { %v14758_v51 = vpop.f32.mrb[24].mxu1  ;;  %v14766_v42 = vpop.f32.mrb[25].mxu0 }
 0x123   : > { %v14764_v45 = vpop.f32.mrb[25].mxu1 }
 0x124   : > { %17131 = vst [vmem:[#allocation17_spill] sm:$0xff] %v14764_v45 }
 0x125   : > { %v14772_v36 = vpop.f32.mrb[26].mxu0 }
 0x126   : > { %v14770_v39 = vpop.f32.mrb[26].mxu1  ;;  %v14778_v30 = vpop.f32.mrb[27].mxu0 }
 0x127   : > { %17132 = vst [vmem:[#allocation18_spill] sm:$0xff] %v14770_v39  ;;  %v14776_v33 = vpop.f32.mrb[27].mxu1  ;;  %v17144_v39 = vmax.f32 %v14670_v32, %v14692_v43 }
 0x128   : > { %17133 = vst [vmem:[#allocation19_spill] sm:$0xff] %v14776_v33 }
 0x129   : > { %v11225_v24 = vpop.f32.mrb[28].mxu0 }
 0x12a   : > { %v14782_v27 = vpop.f32.mrb[28].mxu1  ;;  %v1357_v21 = vmax.f32 %v940_v18, %v11225_v24  ;;  %v1197_v2 = vpop.f32.mrb[29].mxu0 }
 0x12b   : > { %v14789_v45 = vpop.f32.mrb[29].mxu1  ;;  %v1356_v6 = vmax.f32 %v17134_v60, %v1197_v2 }
 0x12d   : > { %v11228_v54 = vpop.f32.mrb[30].mxu0 }
 0x12e   : > { %v14796_v33 = vpop.f32.mrb[30].mxu1  ;;  %v1359_v16 = vmax.f32 %v17135_v9, %v11228_v54  ;;  %v1207_v24 = vpop.f32.mrb[31].mxu0 }
 0x12f   : > { %v14803_v18 = vpop.f32.mrb[31].mxu1  ;;  %v1358_v19 = vmax.f32 %v17136_v11, %v1207_v24 }
 0x131   : > { %v11231_v2 = vpop.f32.mrb[32].mxu0 }
 0x132   : > { %v14810_v60 = vpop.f32.mrb[32].mxu1  ;;  %v1361_v22 = vmax.f32 %v17137_v13, %v11231_v2  ;;  %v1217_v9 = vpop.f32.mrb[33].mxu0 }
 0x133   : > { %v14817_v54 = vpop.f32.mrb[33].mxu1  ;;  %v1360_v25 = vmax.f32 %v17138_v15, %v1217_v9 }
 0x135   : > { %v11234_v11 = vpop.f32.mrb[34].mxu0 }
 0x136   : > { %v14824_v24 = vpop.f32.mrb[34].mxu1  ;;  %v1363_v28 = vmax.f32 %v17140_v17, %v11234_v11  ;;  %v1227_v13 = vpop.f32.mrb[35].mxu0 }
 0x137   : > { %17139 = vst [vmem:[#allocation20_spill] sm:$0xff] %v14824_v24  ;;  %v14831_v2 = vpop.f32.mrb[35].mxu1  ;;  %v1362_v31 = vmax.f32 %v17142_v20, %v1227_v13 }
 0x138   : > { %17141 = vst [vmem:[#allocation21_spill] sm:$0xff] %v14831_v2 }
 0x139   : > { %v11237_v9 = vpop.f32.mrb[36].mxu0 }
 0x13a   : > { %v11275_v15 = vpop.f32.mrb[36].mxu1  ;;  %v14846_v34 = vmax.f32 %v17143_v23, %v11237_v9  ;;  %v1237_v17 = vpop.f32.mrb[37].mxu0 }
 0x13b   : > { %v1774_v11 = vmax.f32 %v1357_v21, %v11275_v15  ;;  %v1614_v24 = vpop.f32.mrb[37].mxu1  ;;  %v14851_v26 = vmax.f32 %v17144_v39, %v1237_v17  ;;  %v17146_v39 = vmax.f32 %v14682_v38, %v14704_v49 }
 0x13c   : > { %v1773_v37 = vmax.f32 %v1356_v6, %v1614_v24 }
 0x13d   : > { %v1811_v13 = vadd.f32 %v14841_v63, %v1774_v11  ;;  %v11240_v2 = vpop.f32.mrb[38].mxu0 }
 0x13e   : > { %v1810_v20 = vadd.f32 %v14841_v63, %v1773_v37  ;;  %v11278_v14 = vpop.f32.mrb[38].mxu1  ;;  %v14858_v21 = vmax.f32 %v17145_v29, %v11240_v2  ;;  %v1247_v9 = vpop.f32.mrb[39].mxu0 }
 0x13f   : > { %v1843_v12 = vmax.f32 %v1811_v13, 0.0  ;;  %v1776_v40 = vmax.f32 %v1359_v16, %v11278_v14  ;;  %v1624_v15 = vpop.f32.mrb[39].mxu1  ;;  %v14863_v43 = vmax.f32 %v17146_v39, %v1247_v9  ;;  %v17147_v16 = vmax.f32 %v14688_v41, %v14710_v52 }
 0x140   : > { %v1842_v32 = vmax.f32 %v1810_v20, 0.0  ;;  %v1775_v6 = vmax.f32 %v1358_v19, %v1624_v15  ;;  %v17150_v39 = vmax.f32 %v14706_v50, %v14728_v61  ;;  %v17151_v61 = vmax.f32 %v14712_v53, %v14734_v0 }
 0x141   : > { %1878 = vst.msk [vmem:[#allocation2 + $0x9] sm:$0xff] %vm1876_vm2, %v1843_v12  ;;  %v1813_v24 = vadd.f32 %v14841_v63, %v1776_v40  ;;  %v11243_v46 = vpop.f32.mrb[40].mxu0  ;;  %v17148_v12 = vmax.f32 %v14694_v44, %v14716_v55  ;;  %v2653_v44 = vld [vmem:[%s17111_s1 + $0x30] sm:$0xff] }
 0x142   : > { %1877 = vst.msk [vmem:[#allocation2 + $0x1] sm:$0xff] %vm1876_vm2, %v1842_v32  ;;  %v1812_v35 = vadd.f32 %v14841_v63, %v1775_v6  ;;  %v11281_v2 = vpop.f32.mrb[40].mxu1  ;;  %v14872_v23 = vmax.f32 %v17147_v16, %v11243_v46  ;;  %v1257_v49 = vpop.f32.mrb[41].mxu0 }
 0x143   : > { %v1845_v14 = vmax.f32 %v1813_v24, 0.0  ;;  %v1778_v38 = vmax.f32 %v1361_v22, %v11281_v2  ;;  %v1634_v11 = vpop.f32.mrb[41].mxu1  ;;  %v14877_v17 = vmax.f32 %v17148_v12, %v1257_v49  ;;  %v2652_v22 = vld [vmem:[%s17111_s1 + $0x28] sm:$0xff] }
 0x144   : > { %v1844_v19 = vmax.f32 %v1812_v35, 0.0  ;;  %v1777_v37 = vmax.f32 %v1360_v25, %v1634_v11  ;;  %v17149_v25 = vmax.f32 %v14700_v47, %v14722_v58  ;;  %v14901_v2 = vpack.c.bf16 %v2653_v44, %v2652_v22 }
 0x145   : > { %1880 = vst.msk [vmem:[#allocation2 + $0x19] sm:$0xff] %vm1876_vm2, %v1845_v14  ;;  %v1815_v13 = vadd.f32 %v14841_v63, %v1778_v38  ;;  %v11246_v52 = vpop.f32.mrb[42].mxu0 }
 0x146   : > { %1879 = vst.msk [vmem:[#allocation2 + $0x11] sm:$0xff] %vm1876_vm2, %v1844_v19  ;;  %v1814_v41 = vadd.f32 %v14841_v63, %v1777_v37  ;;  %v11284_v20 = vpop.f32.mrb[42].mxu1  ;;  %v14892_v29 = vmax.f32 %v17149_v25, %v11246_v52  ;;  %v1267_v9 = vpop.f32.mrb[43].mxu0  ;;  %v17152_v19 = vmax.f32 %v14718_v56, %v14740_v3 }
 0x147   : > { %v1847_v55 = vmax.f32 %v1815_v13, 0.0  ;;  %v1780_v40 = vmax.f32 %v1363_v28, %v11284_v20  ;;  %v1644_v15 = vpop.f32.mrb[43].mxu1  ;;  %v14897_v6 = vmax.f32 %v17150_v39, %v1267_v9 }
 0x148   : > { %v1846_v32 = vmax.f32 %v1814_v41, 0.0  ;;  %v1779_v24 = vmax.f32 %v1362_v31, %v1644_v15  ;;  %v1945_v14 = vld [vmem:[#allocation2 + $0x9] sm:$0xff] }
 0x149   : > { %1882 = vst.msk [vmem:[#allocation2 + $0x29] sm:$0xff] %vm1876_vm2, %v1847_v55  ;;  %v1817_v35 = vadd.f32 %v14841_v63, %v1780_v40  ;;  %v1944_v46 = vld [vmem:[#allocation2 + $0x1] sm:$0xff]  ;;  %v11249_v58 = vpop.f32.mrb[44].mxu0  ;;  %v17154_v55 = vmax.f32 %v14730_v62, %v14752_v57  ;;  %v17155_v57 = vmax.f32 %v14736_v1, %v14758_v51 }
 0x14a   : > { %1881 = vst.msk [vmem:[#allocation2 + $0x21] sm:$0xff] %vm1876_vm2, %v1846_v32  ;;  %v1816_v47 = vadd.f32 %v14841_v63, %v1779_v24  ;;  %v11287_v28 = vpop.f32.mrb[44].mxu1  ;;  %11325 = vmatprep.mubr.msk.f32.mxu0 %vm1876_vm2, %v1944_v46  ;;  %v14909_v31 = vmax.f32 %v17151_v61, %v11249_v58  ;;  %v1277_v38 = vpop.f32.mrb[45].mxu0 }
 0x14b   : > { %v1849_v50 = vmax.f32 %v1817_v35, 0.0  ;;  %v1782_v16 = vmax.f32 %v14846_v34, %v11287_v28  ;;  %v1654_v49 = vpop.f32.mrb[45].mxu1  ;;  %11326 = vmatmul.mubr.msk.f32.vlgmr.msra.gmra.mrb[60].mxu0 %vm1876_vm2, %v1945_v14  ;;  %v14916_v12 = vmax.f32 %v17152_v19, %v1277_v38 }
 0x14c   : > { %v1848_v11 = vmax.f32 %v1816_v47, 0.0  ;;  %v1781_v37 = vmax.f32 %v14851_v26, %v1654_v49  ;;  %12972 = vmatpush3.bf16.msra.mxu0 %v14619_v7  ;;  %v1947_v56 = vld [vmem:[#allocation2 + $0x19] sm:$0xff]  ;;  %v17153_v7 = vmax.f32 %v14724_v59, %v14746_v4  ;;  %v17156_v47 = vld [vmem:[#allocation17_spill] sm:$0xff]  ;;  %v17159_v49 = vld [vmem:[#allocation18_spill] sm:$0xff] }
 0x14d   : > { %1884 = vst.msk [vmem:[#allocation2 + $0x39] sm:$0xff] %vm1876_vm2, %v1849_v50  ;;  %v1819_v53 = vadd.f32 %v14841_v63, %v1782_v16  ;;  %v1946_v0 = vld [vmem:[#allocation2 + $0x11] sm:$0xff]  ;;  %12974 = vmatprep.subr.bf16.mxu0 %v14901_v2  ;;  %v11252_v13 = vpop.f32.mrb[46].mxu0  ;;  %v17157_v58 = vmax.f32 %v14742_v5, %v17156_v47 }
 0x14e   : > { %1883 = vst.msk [vmem:[#allocation2 + $0x31] sm:$0xff] %vm1876_vm2, %v1848_v11  ;;  %v1818_v34 = vadd.f32 %v14841_v63, %v1781_v37  ;;  %v11290_v41 = vpop.f32.mrb[46].mxu1  ;;  %11328 = vmatprep.mubr.msk.f32.mxu0 %vm1876_vm2, %v1946_v0  ;;  %v14929_v26 = vmax.f32 %v17153_v7, %v11252_v13  ;;  %v1287_v20 = vpop.f32.mrb[47].mxu0  ;;  %v17158_v5 = vld [vmem:[#allocation15_spill] sm:$0xff] }
 0x14f   : > { %v1851_v3 = vmax.f32 %v1819_v53, 0.0  ;;  %v1784_v52 = vmax.f32 %v14858_v21, %v11290_v41  ;;  %v1664_v22 = vpop.f32.mrb[47].mxu1  ;;  %11329 = vmatmul.mubr.msk.f32.gmra.mrb[62].mxu0 %vm1876_vm2, %v1947_v56  ;;  %v14936_v25 = vmax.f32 %v17154_v55, %v1287_v20  ;;  %v17160_v11 = vmax.f32 %v17158_v5, %v17159_v49  ;;  %v17162_v13 = vld [vmem:[#allocation19_spill] sm:$0xff] }
 0x150   : > { %v1850_v44 = vmax.f32 %v1818_v34, 0.0  ;;  %v1783_v40 = vmax.f32 %v14863_v43, %v1664_v22  ;;  %v1949_v32 = vld [vmem:[#allocation2 + $0x29] sm:$0xff]  ;;  %v17161_v34 = vld [vmem:[#allocation16_spill] sm:$0xff] }
 0x151   : > { %1886 = vst.msk [vmem:[#allocation2 + $0x49] sm:$0xff] %vm1876_vm2, %v1851_v3  ;;  %v1821_v4 = vadd.f32 %v14841_v63, %v1784_v52  ;;  %v1948_v59 = vld [vmem:[#allocation2 + $0x21] sm:$0xff]  ;;  %v11255_v9 = vpop.f32.mrb[48].mxu0  ;;  %v17163_v41 = vmax.f32 %v17161_v34, %v17162_v13 }
 0x152   : > { %1885 = vst.msk [vmem:[#allocation2 + $0x41] sm:$0xff] %vm1876_vm2, %v1850_v44  ;;  %v1820_v21 = vadd.f32 %v14841_v63, %v1783_v40  ;;  %v11293_v15 = vpop.f32.mrb[48].mxu1  ;;  %11331 = vmatprep.mubr.msk.f32.mxu0 %vm1876_vm2, %v1948_v59  ;;  %v14947_v62 = vmax.f32 %v17155_v57, %v11255_v9  ;;  %v1297_v24 = vpop.f32.mrb[49].mxu0  ;;  %v17164_v40 = vmax.f32 %v14760_v48, %v14782_v27 }
 0x153   : > { %v1853_v39 = vmax.f32 %v1821_v4, 0.0  ;;  %v1786_v43 = vmax.f32 %v14872_v23, %v11293_v15  ;;  %v1674_v35 = vpop.f32.mrb[49].mxu1  ;;  %11332 = vmatmul.mubr.msk.f32.gmra.mrb[64].mxu0 %vm1876_vm2, %v1949_v32  ;;  %v14954_v28 = vmax.f32 %v17157_v58, %v1297_v24  ;;  %v17165_v15 = vmax.f32 %v14766_v42, %v14789_v45 }
 0x154   : > { %v1852_v46 = vmax.f32 %v1820_v21, 0.0  ;;  %v1785_v14 = vmax.f32 %v14877_v17, %v1674_v35  ;;  %v1951_v16 = vld [vmem:[#allocation2 + $0x39] sm:$0xff]  ;;  %v17166_v42 = vmax.f32 %v14772_v36, %v14796_v33 }
 0x155   : > { %1888 = vst.msk [vmem:[#allocation2 + $0x59] sm:$0xff] %vm1876_vm2, %v1853_v39  ;;  %v1823_v51 = vadd.f32 %v14841_v63, %v1786_v43  ;;  %v1950_v1 = vld [vmem:[#allocation2 + $0x31] sm:$0xff]  ;;  %v11258_v50 = vpop.f32.mrb[50].mxu0 }
 0x156   : > { %1887 = vst.msk [vmem:[#allocation2 + $0x51] sm:$0xff] %vm1876_vm2, %v1852_v46  ;;  %v1822_v23 = vadd.f32 %v14841_v63, %v1785_v14  ;;  %v11296_v61 = vpop.f32.mrb[50].mxu1  ;;  %11334 = vmatprep.mubr.msk.f32.mxu0 %vm1876_vm2, %v1950_v1  ;;  %v14965_v19 = vmax.f32 %v17160_v11, %v11258_v50  ;;  %v1307_v37 = vpop.f32.mrb[51].mxu0  ;;  %v17167_v14 = vmax.f32 %v14778_v30, %v14803_v18 }
 0x157   : > { %v1855_v38 = vmax.f32 %v1823_v51, 0.0  ;;  %v1788_v17 = vmax.f32 %v14892_v29, %v11296_v61  ;;  %v1684_v53 = vpop.f32.mrb[51].mxu1  ;;  %11335 = vmatmul.mubr.msk.f32.gmra.mrb[66].mxu0 %vm1876_vm2, %v1951_v16  ;;  %v14972_v56 = vmax.f32 %v17163_v41, %v1307_v37  ;;  %v17168_v30 = vmax.f32 %v14622_v8, %v14810_v60 }
 0x158   : > { %v1854_v0 = vmax.f32 %v1822_v23, 0.0  ;;  %v1787_v3 = vmax.f32 %v14897_v6, %v1684_v53  ;;  %v1953_v44 = vld [vmem:[#allocation2 + $0x49] sm:$0xff]  ;;  %v17169_v11 = vmax.f32 %v14626_v10, %v14817_v54  ;;  %v17171_v54 = vld [vmem:[#allocation20_spill] sm:$0xff] }
 0x159   : > { %1890 = vst.msk [vmem:[#allocation2 + $0x69] sm:$0xff] %vm1876_vm2, %v1855_v38  ;;  %v1825_v7 = vadd.f32 %v14841_v63, %v1788_v17  ;;  %v1952_v52 = vld [vmem:[#allocation2 + $0x41] sm:$0xff]  ;;  %v11261_v20 = vpop.f32.mrb[52].mxu0 }
 0x15a   : > { %1889 = vst.msk [vmem:[#allocation2 + $0x61] sm:$0xff] %vm1876_vm2, %v1854_v0  ;;  %v1824_v29 = vadd.f32 %v14841_v63, %v1787_v3  ;;  %v11299_v22 = vpop.f32.mrb[52].mxu1  ;;  %11337 = vmatprep.mubr.msk.f32.mxu0 %vm1876_vm2, %v1952_v52  ;;  %v14983_v4 = vmax.f32 %v17164_v40, %v11261_v20  ;;  %v1317_v59 = vpop.f32.mrb[53].mxu0  ;;  %v17170_v10 = vld [vmem:[#allocation13_spill] sm:$0xff]  ;;  %v17173_v20 = vld [vmem:[#allocation14_spill] sm:$0xff] }
 0x15b   : > { %v1857_v55 = vmax.f32 %v1825_v7, 0.0  ;;  %v1790_v6 = vmax.f32 %v14909_v31, %v11299_v22  ;;  %v1694_v21 = vpop.f32.mrb[53].mxu1  ;;  %11338 = vmatmul.mubr.msk.f32.gmra.mrb[68].mxu0 %vm1876_vm2, %v1953_v44  ;;  %v14990_v32 = vmax.f32 %v17165_v15, %v1317_v59  ;;  %v17172_v41 = vmax.f32 %v17170_v10, %v17171_v54  ;;  %v17174_v22 = vld [vmem:[#allocation21_spill] sm:$0xff] }
 0x15c   : > { %v1856_v9 = vmax.f32 %v1824_v29, 0.0  ;;  %v1789_v39 = vmax.f32 %v14916_v12, %v1694_v21  ;;  %v1955_v24 = vld [vmem:[#allocation2 + $0x59] sm:$0xff]  ;;  %v17175_v44 = vmax.f32 %v17173_v20, %v17174_v22 }
 0x15d   : > { %1892 = vst.msk [vmem:[#allocation2 + $0x79] sm:$0xff] %vm1876_vm2, %v1857_v55  ;;  %v1827_v27 = vadd.f32 %v14841_v63, %v1790_v6  ;;  %v1954_v48 = vld [vmem:[#allocation2 + $0x51] sm:$0xff]  ;;  %v11264_v57 = vpop.f32.mrb[54].mxu0  ;;  %v1914_v22 = vld [vmem:[#allocation2 + $0x20] sm:$0xff] }
 0x15e   : > { %1891 = vst.msk [vmem:[#allocation2 + $0x71] sm:$0xff] %vm1876_vm2, %v1856_v9  ;;  %v1826_v31 = vadd.f32 %v14841_v63, %v1789_v39  ;;  %v11302_v43 = vpop.f32.mrb[54].mxu1  ;;  %11340 = vmatprep.mubr.msk.f32.mxu0 %vm1876_vm2, %v1954_v48  ;;  %v15001_v45 = vmax.f32 %v17166_v42, %v11264_v57  ;;  %v1327_v46 = vpop.f32.mrb[55].mxu0  ;;  %v1913_v20 = vld [vmem:[#allocation2 + $0x18] sm:$0xff] }
 0x15f   : > { %v1859_v35 = vmax.f32 %v1827_v27, 0.0  ;;  %v1792_v12 = vmax.f32 %v14929_v26, %v11302_v43  ;;  %v1704_v47 = vpop.f32.mrb[55].mxu1  ;;  %11341 = vmatmul.mubr.msk.f32.gmra.mrb[70].mxu0 %vm1876_vm2, %v1955_v24  ;;  %v15008_v51 = vmax.f32 %v17167_v14, %v1327_v46 }
 0x160   : > { %v1858_v58 = vmax.f32 %v1826_v31, 0.0  ;;  %v1791_v1 = vmax.f32 %v14936_v25, %v1704_v47  ;;  %v1957_v61 = vld [vmem:[#allocation2 + $0x69] sm:$0xff] }
 0x161   : > { %1894 = vst.msk [vmem:[#allocation2 + $0x89] sm:$0xff] %vm1876_vm2, %v1859_v35  ;;  %v1829_v33 = vadd.f32 %v14841_v63, %v1792_v12  ;;  %v1956_v36 = vld [vmem:[#allocation2 + $0x61] sm:$0xff]  ;;  %v11267_v23 = vpop.f32.mrb[56].mxu0 }
 0x162   : > { %1893 = vst.msk [vmem:[#allocation2 + $0x81] sm:$0xff] %vm1876_vm2, %v1858_v58  ;;  %v1828_v26 = vadd.f32 %v14841_v63, %v1791_v1  ;;  %v11305_v50 = vpop.f32.mrb[56].mxu1  ;;  %11343 = vmatprep.mubr.msk.f32.mxu0 %vm1876_vm2, %v1956_v36  ;;  %v15019_v18 = vmax.f32 %v17168_v30, %v11267_v23  ;;  %v1337_v38 = vpop.f32.mrb[57].mxu0 }
 0x163   : > { %v1861_v16 = vmax.f32 %v1829_v33, 0.0  ;;  %v1794_v25 = vmax.f32 %v14947_v62, %v11305_v50  ;;  %v1714_v5 = vpop.f32.mrb[57].mxu1  ;;  %11344 = vmatmul.mubr.msk.f32.gmra.mrb[72].mxu0 %vm1876_vm2, %v1957_v61  ;;  %v15026_v17 = vmax.f32 %v17169_v11, %v1337_v38 }
 0x164   : > { %v1860_v49 = vmax.f32 %v1828_v26, 0.0  ;;  %v1793_v37 = vmax.f32 %v14954_v28, %v1714_v5  ;;  %v1959_v34 = vld [vmem:[#allocation2 + $0x79] sm:$0xff] }
 0x165   : > { %1896 = vst.msk [vmem:[#allocation2 + $0x99] sm:$0xff] %vm1876_vm2, %v1861_v16  ;;  %v1831_v8 = vadd.f32 %v14841_v63, %v1794_v25  ;;  %v1958_v60 = vld [vmem:[#allocation2 + $0x71] sm:$0xff]  ;;  %v11270_v53 = vpop.f32.mrb[58].mxu0 }
 0x166   : > { %1895 = vst.msk [vmem:[#allocation2 + $0x91] sm:$0xff] %vm1876_vm2, %v1860_v49  ;;  %v1830_v62 = vadd.f32 %v14841_v63, %v1793_v37  ;;  %v11308_v0 = vpop.f32.mrb[58].mxu1  ;;  %11346 = vmatprep.mubr.msk.f32.mxu0 %vm1876_vm2, %v1958_v60  ;;  %v15037_v3 = vmax.f32 %v17172_v41, %v11270_v53  ;;  %v1347_v7 = vpop.f32.mrb[59].mxu0  ;;  %v1910_v41 = vld [vmem:[#allocation2] sm:$0xff] }
 0x167   : > { %v1863_v13 = vmax.f32 %v1831_v8, 0.0  ;;  %v1796_v28 = vmax.f32 %v14965_v19, %v11308_v0  ;;  %v1724_v52 = vpop.f32.mrb[59].mxu1  ;;  %11347 = vmatmul.mubr.msk.f32.gmra.mrb[74].mxu0 %vm1876_vm2, %v1959_v34  ;;  %v15044_v55 = vmax.f32 %v17175_v44, %v1347_v7  ;;  %v1915_v44 = vld [vmem:[#allocation2 + $0x28] sm:$0xff] }
 0x168   : > { %v1862_v29 = vmax.f32 %v1830_v62, 0.0  ;;  %v1795_v40 = vmax.f32 %v14972_v56, %v1724_v52  ;;  %v1961_v9 = vld [vmem:[#allocation2 + $0x89] sm:$0xff] }
 0x169   : > { %1898 = vst.msk [vmem:[#allocation2 + $0xa9] sm:$0xff] %vm1876_vm2, %v1863_v13  ;;  %v1833_v6 = vadd.f32 %v14841_v63, %v1796_v28  ;;  %v1960_v59 = vld [vmem:[#allocation2 + $0x81] sm:$0xff] }
 0x16a   : > { %1897 = vst.msk [vmem:[#allocation2 + $0xa1] sm:$0xff] %vm1876_vm2, %v1862_v29  ;;  %v1832_v19 = vadd.f32 %v14841_v63, %v1795_v40  ;;  %v11311_v21 = vpop.f32.mrb[60].mxu1  ;;  %11349 = vmatprep.mubr.msk.f32.mxu0 %vm1876_vm2, %v1960_v59  ;;  %v3146_v28 = vld [vmem:[%s17111_s1 + $0x40] sm:$0xff]  ;;  %v1911_v52 = vld [vmem:[#allocation2 + $0x8] sm:$0xff]  ;;  %v1912_v29 = vld [vmem:[#allocation2 + $0x10] sm:$0xff] }
 0x16b   : > { %v1865_v15 = vmax.f32 %v1833_v6, 0.0  ;;  %v1798_v39 = vmax.f32 %v14983_v4, %v11311_v21  ;;  %v1734_v27 = vpop.f32.mrb[61].mxu1  ;;  %11350 = vmatmul.mubr.msk.f32.gmra.mrb[76].mxu0 %vm1876_vm2, %v1961_v9  ;;  %v1917_v40 = vld [vmem:[#allocation2 + $0x38] sm:$0xff]  ;;  %v1919_v6 = vld [vmem:[#allocation2 + $0x48] sm:$0xff]  ;;  %v1920_v59 = vld [vmem:[#allocation2 + $0x50] sm:$0xff] }
 0x16c   : > { %v1864_v56 = vmax.f32 %v1832_v19, 0.0  ;;  %v1797_v48 = vmax.f32 %v14990_v32, %v1734_v27  ;;  %v1963_v35 = vld [vmem:[#allocation2 + $0x99] sm:$0xff]  ;;  %v1923_v9 = vld [vmem:[#allocation2 + $0x68] sm:$0xff] }
 0x16d   : > { %1900 = vst.msk [vmem:[#allocation2 + $0xb9] sm:$0xff] %vm1876_vm2, %v1865_v15  ;;  %v1835_v31 = vadd.f32 %v14841_v63, %v1798_v39  ;;  %v1962_v57 = vld [vmem:[#allocation2 + $0x91] sm:$0xff]  ;;  %v1922_v21 = vld [vmem:[#allocation2 + $0x60] sm:$0xff] }
 0x16e   : > { %1899 = vst.msk [vmem:[#allocation2 + $0xb1] sm:$0xff] %vm1876_vm2, %v1864_v56  ;;  %v1834_v43 = vadd.f32 %v14841_v63, %v1797_v48  ;;  %v11314_v24 = vpop.f32.mrb[62].mxu1  ;;  %11352 = vmatprep.mubr.msk.f32.mxu0 %vm1876_vm2, %v1962_v57  ;;  %v1921_v19 = vld [vmem:[#allocation2 + $0x58] sm:$0xff]  ;;  %v1924_v15 = vld [vmem:[#allocation2 + $0x70] sm:$0xff]  ;;  %v1926_v27 = vld [vmem:[#allocation2 + $0x80] sm:$0xff] }
 0x16f   : > { %v1867_v4 = vmax.f32 %v1835_v31, 0.0  ;;  %v1800_v42 = vmax.f32 %v15001_v45, %v11314_v24  ;;  %v1744_v12 = vpop.f32.mrb[63].mxu1  ;;  %11353 = vmatmul.mubr.msk.f32.gmra.mrb[78].mxu0 %vm1876_vm2, %v1963_v35  ;;  %v1925_v39 = vld [vmem:[#allocation2 + $0x78] sm:$0xff]  ;;  %v1927_v56 = vld [vmem:[#allocation2 + $0x88] sm:$0xff]  ;;  %v1928_v48 = vld [vmem:[#allocation2 + $0x90] sm:$0xff] }
 0x170   : > { %v1866_v32 = vmax.f32 %v1834_v43, 0.0  ;;  %v1799_v46 = vmax.f32 %v15008_v51, %v1744_v12  ;;  %v1965_v33 = vld [vmem:[#allocation2 + $0xa9] sm:$0xff]  ;;  %v1929_v31 = vld [vmem:[#allocation2 + $0x98] sm:$0xff] }
 0x171   : > { %1902 = vst.msk [vmem:[#allocation2 + $0xc9] sm:$0xff] %vm1876_vm2, %v1867_v4  ;;  %v1837_v47 = vadd.f32 %v14841_v63, %v1800_v42  ;;  %v1964_v58 = vld [vmem:[#allocation2 + $0xa1] sm:$0xff] }
 0x172   : > { %1901 = vst.msk [vmem:[#allocation2 + $0xc1] sm:$0xff] %vm1876_vm2, %v1866_v32  ;;  %v1836_v14 = vadd.f32 %v14841_v63, %v1799_v46  ;;  %v11317_v1 = vpop.f32.mrb[64].mxu1  ;;  %11355 = vmatprep.mubr.msk.f32.mxu0 %vm1876_vm2, %v1964_v58  ;;  %v1930_v57 = vld [vmem:[#allocation2 + $0xa0] sm:$0xff]  ;;  %v1931_v43 = vld [vmem:[#allocation2 + $0xa8] sm:$0xff] }
 0x173   : > { %v1869_v45 = vmax.f32 %v1837_v47, 0.0  ;;  %v1802_v36 = vmax.f32 %v15019_v18, %v11317_v1  ;;  %v1754_v26 = vpop.f32.mrb[65].mxu1  ;;  %11356 = vmatmul.mubr.msk.f32.gmra.mrb[80].mxu0 %vm1876_vm2, %v1965_v33  ;;  %v2620_v1 = vld [vmem:[#allocation2 + $0x2] sm:$0xff]  ;;  %v2621_v33 = vld [vmem:[#allocation2 + $0xa] sm:$0xff] }
 0x174   : > { %v1868_v51 = vmax.f32 %v1836_v14, 0.0  ;;  %v1801_v23 = vmax.f32 %v15026_v17, %v1754_v26  ;;  %v1967_v25 = vld [vmem:[#allocation2 + $0xb9] sm:$0xff]  ;;  %v2624_v26 = vld [vmem:[#allocation2 + $0x22] sm:$0xff] }
 0x175   : > { %1904 = vst.msk [vmem:[#allocation2 + $0xd9] sm:$0xff] %vm1876_vm2, %v1869_v45  ;;  %v1839_v50 = vadd.f32 %v14841_v63, %v1802_v36  ;;  %v1966_v61 = vld [vmem:[#allocation2 + $0xb1] sm:$0xff]  ;;  %v2623_v36 = vld [vmem:[#allocation2 + $0x1a] sm:$0xff] }
 0x176   : > { %1903 = vst.msk [vmem:[#allocation2 + $0xd1] sm:$0xff] %vm1876_vm2, %v1868_v51  ;;  %v1838_v16 = vadd.f32 %v14841_v63, %v1801_v23  ;;  %v11320_v30 = vpop.f32.mrb[66].mxu1  ;;  %11358 = vmatprep.mubr.msk.f32.mxu0 %vm1876_vm2, %v1966_v61  ;;  %v1932_v24 = vld [vmem:[#allocation2 + $0xb0] sm:$0xff]  ;;  %v1933_v35 = vld [vmem:[#allocation2 + $0xb8] sm:$0xff]  ;;  %v2628_v61 = vld [vmem:[#allocation2 + $0x42] sm:$0xff] }
 0x177   : > { %v1871_v18 = vmax.f32 %v1839_v50, 0.0  ;;  %v1804_v38 = vmax.f32 %v15037_v3, %v11320_v30  ;;  %v1764_v5 = vpop.f32.mrb[67].mxu1  ;;  %11359 = vmatmul.mubr.msk.f32.gmra.mrb[82].mxu0 %vm1876_vm2, %v1967_v25  ;;  %v3145_v3 = vld [vmem:[%s17111_s1 + $0x38] sm:$0xff]  ;;  %v2625_v51 = vld [vmem:[#allocation2 + $0x2a] sm:$0xff] }
 0x178   : > { %v1870_v49 = vmax.f32 %v1838_v16, 0.0  ;;  %v1803_v11 = vmax.f32 %v15044_v55, %v1764_v5  ;;  %v1969_v60 = vld [vmem:[#allocation2 + $0xc9] sm:$0xff]  ;;  %v15100_v7 = vpack.c.bf16 %v3146_v28, %v3145_v3  ;;  %v2622_v45 = vld [vmem:[#allocation2 + $0x12] sm:$0xff]  ;;  %v2627_v50 = vld [vmem:[#allocation2 + $0x3a] sm:$0xff] }
 0x179   : > { %1906 = vst.msk [vmem:[#allocation2 + $0xe9] sm:$0xff] %vm1876_vm2, %v1871_v18  ;;  %v1841_v17 = vadd.f32 %v14841_v63, %v1804_v38  ;;  %v1968_v37 = vld [vmem:[#allocation2 + $0xc1] sm:$0xff]  ;;  %v1916_v55 = vld [vmem:[#allocation2 + $0x30] sm:$0xff] }
 0x17a   : > { %1905 = vst.msk [vmem:[#allocation2 + $0xe1] sm:$0xff] %vm1876_vm2, %v1870_v49  ;;  %v1840_v8 = vadd.f32 %v14841_v63, %v1803_v11  ;;  %11361 = vmatprep.mubr.msk.f32.mxu0 %vm1876_vm2, %v1968_v37  ;;  %12978 = vmatprep.subr.bf16.mxu1 %v15100_v7  ;;  %v1934_v4 = vld [vmem:[#allocation2 + $0xc0] sm:$0xff]  ;;  %v1935_v42 = vld [vmem:[#allocation2 + $0xc8] sm:$0xff]  ;;  %v2626_v23 = vld [vmem:[#allocation2 + $0x32] sm:$0xff] }
 0x17b   : > { %v1873_v62 = vmax.f32 %v1841_v17, 0.0  ;;  %11362 = vmatmul.mubr.msk.f32.gmra.mrb[84].mxu0 %vm1876_vm2, %v1969_v60  ;;  %12980 = vmatpush3.bf16.msra.mxu1 %v15100_v7  ;;  %v2629_v16 = vld [vmem:[#allocation2 + $0x4a] sm:$0xff]  ;;  %v2630_v30 = vld [vmem:[#allocation2 + $0x52] sm:$0xff]  ;;  %v2631_v25 = vld [vmem:[#allocation2 + $0x5a] sm:$0xff] }
 0x17c   : > { %v1872_v53 = vmax.f32 %v1840_v8, 0.0  ;;  %v1971_v34 = vld [vmem:[#allocation2 + $0xd9] sm:$0xff]  ;;  %v2632_v18 = vld [vmem:[#allocation2 + $0x62] sm:$0xff]  ;;  %v2633_v38 = vld [vmem:[#allocation2 + $0x6a] sm:$0xff] }
 0x17d   : > { %1908 = vst.msk [vmem:[#allocation2 + $0xf9] sm:$0xff] %vm1876_vm2, %v1873_v62  ;;  %v1970_v0 = vld [vmem:[#allocation2 + $0xd1] sm:$0xff]  ;;  %v2635_v49 = vld [vmem:[#allocation2 + $0x7a] sm:$0xff]  ;;  %v2636_v11 = vld [vmem:[#allocation2 + $0x82] sm:$0xff] }
 0x17e   : > { %1907 = vst.msk [vmem:[#allocation2 + $0xf1] sm:$0xff] %vm1876_vm2, %v1872_v53  ;;  %11364 = vmatprep.mubr.msk.f32.mxu0 %vm1876_vm2, %v1970_v0  ;;  %v1936_v12 = vld [vmem:[#allocation2 + $0xd0] sm:$0xff]  ;;  %v1937_v32 = vld [vmem:[#allocation2 + $0xd8] sm:$0xff]  ;;  %v2640_v60 = vld [vmem:[#allocation2 + $0xa2] sm:$0xff] }
 0x17f   : > { %11365 = vmatmul.mubr.msk.f32.gmra.mrb[86].mxu0 %vm1876_vm2, %v1971_v34  ;;  %v2634_v5 = vld [vmem:[#allocation2 + $0x72] sm:$0xff]  ;;  %v2637_v17 = vld [vmem:[#allocation2 + $0x8a] sm:$0xff]  ;;  %v2639_v8 = vld [vmem:[#allocation2 + $0x9a] sm:$0xff] }
 0x180   : > { %v1973_v63 = vld [vmem:[#allocation2 + $0xe9] sm:$0xff]  ;;  %v2638_v37 = vld [vmem:[#allocation2 + $0x92] sm:$0xff]  ;;  %v2643_v0 = vld [vmem:[#allocation2 + $0xba] sm:$0xff] }
 0x181   : > { %v1972_v13 = vld [vmem:[#allocation2 + $0xe1] sm:$0xff]  ;;  %v2641_v62 = vld [vmem:[#allocation2 + $0xaa] sm:$0xff]  ;;  %v2642_v53 = vld [vmem:[#allocation2 + $0xb2] sm:$0xff] }
 0x182   : > { %11367 = vmatprep.mubr.msk.f32.mxu0 %vm1876_vm2, %v1972_v13  ;;  %v1938_v46 = vld [vmem:[#allocation2 + $0xe0] sm:$0xff]  ;;  %v1939_v47 = vld [vmem:[#allocation2 + $0xe8] sm:$0xff] }
 0x183   : > { %11368 = vmatmul.mubr.msk.f32.gmra.mrb[88].mxu0 %vm1876_vm2, %v1973_v63  ;;  %v2644_v34 = vld [vmem:[#allocation2 + $0xc2] sm:$0xff]  ;;  %v2645_v13 = vld [vmem:[#allocation2 + $0xca] sm:$0xff]  ;;  %v2646_v63 = vld [vmem:[#allocation2 + $0xd2] sm:$0xff] }
 0x184   : > { %v1975_v54 = vld [vmem:[#allocation2 + $0xf9] sm:$0xff] }
 0x185   : > { %v1974_v10 = vld [vmem:[#allocation2 + $0xf1] sm:$0xff]  ;;  %v2651_v28 = vld [vmem:[#allocation2 + $0xfa] sm:$0xff] }
 0x186   : > { %11370 = vmatprep.mubr.msk.f32.mxu0 %vm1876_vm2, %v1974_v10  ;;  %v1940_v58 = vld [vmem:[#allocation2 + $0xf0] sm:$0xff]  ;;  %v1941_v14 = vld [vmem:[#allocation2 + $0xf8] sm:$0xff] }
 0x187   : > { %11371 = vmatmul.mubr.msk.f32.gmra.mrb[90].mxu0 %vm1876_vm2, %v1975_v54  ;;  %v2647_v10 = vld [vmem:[#allocation2 + $0xda] sm:$0xff]  ;;  %v2648_v54 = vld [vmem:[#allocation2 + $0xe2] sm:$0xff]  ;;  %v2650_v3 = vld [vmem:[#allocation2 + $0xf2] sm:$0xff] }
 0x188   : > { %11377 = vmatprep.mubr.msk.f32.mxu0 %vm1876_vm2, %v1910_v41  ;;  %v2649_v41 = vld [vmem:[#allocation2 + $0xea] sm:$0xff] }
 0x18b   : > { %11378 = vmatmul.mubr.msk.f32.vlgmr.msra.gmra.mrb[60].mxu0 %vm1876_vm2, %v1911_v52  ;;  %v17176_v52 = vmov 0.0  }
 0x18c   : > { %12976 = vmatpush3.bf16.msra.mxu0 %v14901_v2  ;;  %11380 = vmatprep.mubr.msk.f32.mxu0 %vm1876_vm2, %v1912_v29  ;;  %v1918_v2 = vld [vmem:[#allocation2 + $0x40] sm:$0xff]  ;;  %3077 = vst.msk [vmem:[#allocation3] sm:$0x1] %vm3076_vm3, %v17176_v52  ;;  %3111 = vst.msk [vmem:[#allocation3 + $0x101] sm:$0x1] %vm3076_vm3, %v17176_v52  ;;  %v3147_v29 = vld [vmem:[%s17111_s1 + $0x48] sm:$0xff] }
 0x18d   : > { %13062 = vmatprep.subr.bf16.mxu0 %v15100_v7  ;;  %5314 = vst.msk [vmem:[#allocation4] sm:$0x1] %vm3076_vm3, %v17176_v52  ;;  %5323 = vst.msk [vmem:[#allocation4 + $0x41] sm:$0x1] %vm3076_vm3, %v17176_v52 }
 0x18e   : > { %5777 = vst.msk [vmem:[#allocation5] sm:$0x1] %vm5776_vm5, %v17176_v52  ;;  %5787 = vst.msk [vmem:[#allocation5 + $0x41] sm:$0x1] %vm5776_vm5, %v17176_v52 }
 0x18f   : > { %11381 = vmatmul.mubr.msk.f32.gmra.mrb[62].mxu0 %vm1876_vm2, %v1913_v20  ;;  %v3148_v20 = vld [vmem:[%s17111_s1 + $0x50] sm:$0xff]  ;;  %7146 = vst.msk [vmem:[#allocation6] sm:$0x1] %vm5776_vm5, %v17176_v52  ;;  %7149 = vst.msk [vmem:[#allocation6 + $0x11] sm:$0x1] %vm5776_vm5, %v17176_v52 }
 0x190   : > { %11383 = vmatprep.mubr.msk.f32.mxu0 %vm1876_vm2, %v1914_v22  ;;  %v15180_v22 = vpack.c.bf16 %v3148_v20, %v3147_v29 }
 0x192   : > { %12982 = vmatprep.subr.bf16.mxu1 %v15180_v22 }
 0x193   : > { %11384 = vmatmul.mubr.msk.f32.gmra.mrb[64].mxu0 %vm1876_vm2, %v1915_v44  ;;  %12984 = vmatpush3.bf16.msra.mxu1 %v15180_v22  ;;  %v3128_v44 = vld [vmem:[%s17111_s1 + $0x98] sm:$0xff] }
 0x194   : > { %11386 = vmatprep.mubr.msk.f32.mxu0 %vm1876_vm2, %v1916_v55  ;;  %v3129_v55 = vld [vmem:[%s17111_s1 + $0xa0] sm:$0xff] }
 0x197   : > { %11387 = vmatmul.mubr.msk.f32.gmra.mrb[66].mxu0 %vm1876_vm2, %v1917_v40  ;;  %v15192_v40 = vpack.c.bf16 %v3129_v55, %v3128_v44 }
 0x198   : > { %11389 = vmatprep.mubr.msk.f32.mxu0 %vm1876_vm2, %v1918_v2  ;;  %v15199_v2 = vld [vmem:[%s17112_s2 + $0x1] ss:$0 sm:$0xff] }
 0x199   : > { %12986 = vmatprep.subr.bf16.mxu1 %v15192_v40 }
 0x19b   : > { %11390 = vmatmul.mubr.msk.f32.gmra.mrb[68].mxu0 %vm1876_vm2, %v1919_v6 }
 0x19c   : > { %11392 = vmatprep.mubr.msk.f32.mxu0 %vm1876_vm2, %v1920_v59 }
 0x19f   : > { %11393 = vmatmul.mubr.msk.f32.gmra.mrb[70].mxu0 %vm1876_vm2, %v1921_v19 }
 0x1a0   : > { %11395 = vmatprep.mubr.msk.f32.mxu0 %vm1876_vm2, %v1922_v21 }
 0x1a3   : > { %11396 = vmatmul.mubr.msk.f32.gmra.mrb[72].mxu0 %vm1876_vm2, %v1923_v9 }
 0x1a4   : > { %11398 = vmatprep.mubr.msk.f32.mxu0 %vm1876_vm2, %v1924_v15 }
 0x1a7   : > { %11399 = vmatmul.mubr.msk.f32.gmra.mrb[74].mxu0 %vm1876_vm2, %v1925_v39 }
 0x1a8   : > { %11401 = vmatprep.mubr.msk.f32.mxu0 %vm1876_vm2, %v1926_v27 }
 0x1ab   : > { %11402 = vmatmul.mubr.msk.f32.gmra.mrb[76].mxu0 %vm1876_vm2, %v1927_v56 }
 0x1ac   : > { %11404 = vmatprep.mubr.msk.f32.mxu0 %vm1876_vm2, %v1928_v48 }
 0x1af   : > { %11405 = vmatmul.mubr.msk.f32.gmra.mrb[78].mxu0 %vm1876_vm2, %v1929_v31 }
 0x1b0   : > { %11407 = vmatprep.mubr.msk.f32.mxu0 %vm1876_vm2, %v1930_v57 }
 0x1b3   : > { %11408 = vmatmul.mubr.msk.f32.gmra.mrb[80].mxu0 %vm1876_vm2, %v1931_v43 }
 0x1b4   : > { %11410 = vmatprep.mubr.msk.f32.mxu0 %vm1876_vm2, %v1932_v24 }
 0x1b7   : > { %11411 = vmatmul.mubr.msk.f32.gmra.mrb[82].mxu0 %vm1876_vm2, %v1933_v35 }
 0x1b8   : > { %11413 = vmatprep.mubr.msk.f32.mxu0 %vm1876_vm2, %v1934_v4 }
 0x1bb   : > { %11414 = vmatmul.mubr.msk.f32.gmra.mrb[84].mxu0 %vm1876_vm2, %v1935_v42 }
 0x1bc   : > { %11416 = vmatprep.mubr.msk.f32.mxu0 %vm1876_vm2, %v1936_v12 }
 0x1bf   : > { %11417 = vmatmul.mubr.msk.f32.gmra.mrb[86].mxu0 %vm1876_vm2, %v1937_v32 }
 0x1c0   : > { %11419 = vmatprep.mubr.msk.f32.mxu0 %vm1876_vm2, %v1938_v46 }
 0x1c3   : > { %11420 = vmatmul.mubr.msk.f32.gmra.mrb[88].mxu0 %vm1876_vm2, %v1939_v47 }
 0x1c4   : > { %11422 = vmatprep.mubr.msk.f32.mxu0 %vm1876_vm2, %v1940_v58 }
 0x1c7   : > { %11423 = vmatmul.mubr.msk.f32.gmra.mrb[90].mxu0 %vm1876_vm2, %v1941_v14 }
 0x1c8   : > { %11429 = vmatprep.mubr.msk.f32.mxu0 %vm1876_vm2, %v2620_v1 }
 0x1cb   : > { %11430 = vmatmul.mubr.msk.f32.vlgmr.msra.gmra.mrb[60].mxu0 %vm1876_vm2, %v2621_v33 }
 0x1cc   : > { %11432 = vmatprep.mubr.msk.f32.mxu0 %vm1876_vm2, %v2622_v45  ;;  %13064 = vmatpush3.bf16.msra.mxu0 %v15100_v7 }
 0x1cd   : > { %13066 = vmatprep.subr.bf16.mxu0 %v15180_v22 }
 0x1cf   : > { %11433 = vmatmul.mubr.msk.f32.gmra.mrb[62].mxu0 %vm1876_vm2, %v2623_v36 }
 0x1d0   : > { %11435 = vmatprep.mubr.msk.f32.mxu0 %vm1876_vm2, %v2624_v26  ;;  %13068 = vmatpush3.bf16.msra.mxu0 %v15180_v22 }
 0x1d1   : > { %13070 = vmatprep.subr.bf16.mxu0 %v15192_v40 }
 0x1d3   : > { %11436 = vmatmul.mubr.msk.f32.gmra.mrb[64].mxu0 %vm1876_vm2, %v2625_v51 }
 0x1d4   : > { %11438 = vmatprep.mubr.msk.f32.mxu0 %vm1876_vm2, %v2626_v23 }
 0x1d7   : > { %11439 = vmatmul.mubr.msk.f32.gmra.mrb[66].mxu0 %vm1876_vm2, %v2627_v50 }
 0x1d8   : > { %11441 = vmatprep.mubr.msk.f32.mxu0 %vm1876_vm2, %v2628_v61 }
 0x1db   : > { %11442 = vmatmul.mubr.msk.f32.gmra.mrb[68].mxu0 %vm1876_vm2, %v2629_v16 }
 0x1dc   : > { %11444 = vmatprep.mubr.msk.f32.mxu0 %vm1876_vm2, %v2630_v30 }
 0x1df   : > { %11445 = vmatmul.mubr.msk.f32.gmra.mrb[70].mxu0 %vm1876_vm2, %v2631_v25 }
 0x1e0   : > { %11447 = vmatprep.mubr.msk.f32.mxu0 %vm1876_vm2, %v2632_v18  ;;  %v3423_v18 = vld [vmem:[%s17111_s1 + $0x58] sm:$0xff] }
 0x1e3   : > { %11448 = vmatmul.mubr.msk.f32.gmra.mrb[72].mxu0 %vm1876_vm2, %v2633_v38  ;;  %v3424_v38 = vld [vmem:[%s17111_s1 + $0x60] sm:$0xff] }
 0x1e4   : > { %11450 = vmatprep.mubr.msk.f32.mxu0 %vm1876_vm2, %v2634_v5 }
 0x1e7   : > { %11451 = vmatmul.mubr.msk.f32.gmra.mrb[74].mxu0 %vm1876_vm2, %v2635_v49 }
 0x1e8   : > { %11453 = vmatprep.mubr.msk.f32.mxu0 %vm1876_vm2, %v2636_v11 }
 0x1eb   : > { %11454 = vmatmul.mubr.msk.f32.gmra.mrb[76].mxu0 %vm1876_vm2, %v2637_v17 }
 0x1ec   : > { %11456 = vmatprep.mubr.msk.f32.mxu0 %vm1876_vm2, %v2638_v37  ;;  %v15234_v37 = vpack.c.bf16 %v3424_v38, %v3423_v18 }
 0x1ef   : > { %11457 = vmatmul.mubr.msk.f32.gmra.mrb[78].mxu0 %vm1876_vm2, %v2639_v8 }
 0x1f0   : > { %11459 = vmatprep.mubr.msk.f32.mxu0 %vm1876_vm2, %v2640_v60 }
 0x1f3   : > { %11460 = vmatmul.mubr.msk.f32.gmra.mrb[80].mxu0 %vm1876_vm2, %v2641_v62 }
 0x1f4   : > { %11462 = vmatprep.mubr.msk.f32.mxu0 %vm1876_vm2, %v2642_v53 }
 0x1f7   : > { %11463 = vmatmul.mubr.msk.f32.gmra.mrb[82].mxu0 %vm1876_vm2, %v2643_v0 }
 0x1f8   : > { %11465 = vmatprep.mubr.msk.f32.mxu0 %vm1876_vm2, %v2644_v34 }
 0x1fb   : > { %11466 = vmatmul.mubr.msk.f32.gmra.mrb[84].mxu0 %vm1876_vm2, %v2645_v13 }
 0x1fc   : > { %11468 = vmatprep.mubr.msk.f32.mxu0 %vm1876_vm2, %v2646_v63 }
 0x1ff   : > { %11469 = vmatmul.mubr.msk.f32.gmra.mrb[86].mxu0 %vm1876_vm2, %v2647_v10 }
 0x200   : > { %11471 = vmatprep.mubr.msk.f32.mxu0 %vm1876_vm2, %v2648_v54 }
 0x203   : > { %11472 = vmatmul.mubr.msk.f32.gmra.mrb[88].mxu0 %vm1876_vm2, %v2649_v41 }
 0x204   : > { %11474 = vmatprep.mubr.msk.f32.mxu0 %vm1876_vm2, %v2650_v3 }
 0x207   : > { %11475 = vmatmul.mubr.msk.f32.gmra.mrb[90].mxu0 %vm1876_vm2, %v2651_v28 }
 0x29e   : > { %v11431_v6 = vpop.f32.mrb[60].mxu0 }
 0x29f   : > { %v3013_v59 = vadd.f32 %v11431_v6, %v15199_v2  ;;  %v2816_v19 = vpop.f32.mrb[61].mxu0 }
 0x2a0   : > { %v3012_v21 = vadd.f32 %v15199_v2, %v2816_v19 }
 0x2a1   : > { %v3045_v9 = vmax.f32 %v3013_v59, 0.0 }
 0x2a2   : > { %v3044_v15 = vmax.f32 %v3012_v21, 0.0  ;;  %v11434_v39 = vpop.f32.mrb[62].mxu0 }
 0x2a3   : > { %3080 = vst.msk [vmem:[#allocation3 + $0x9] sm:$0xff] %vm3078_vm4, %v3045_v9  ;;  %v3015_v27 = vadd.f32 %v11434_v39, %v15199_v2  ;;  %v2826_v56 = vpop.f32.mrb[63].mxu0 }
 0x2a4   : > { %3079 = vst.msk [vmem:[#allocation3 + $0x1] sm:$0xff] %vm3078_vm4, %v3044_v15  ;;  %v3014_v48 = vadd.f32 %v15199_v2, %v2826_v56 }
 0x2a5   : > { %v3047_v31 = vmax.f32 %v3015_v27, 0.0 }
 0x2a6   : > { %v3046_v57 = vmax.f32 %v3014_v48, 0.0  ;;  %v11437_v43 = vpop.f32.mrb[64].mxu0 }
 0x2a7   : > { %3082 = vst.msk [vmem:[#allocation3 + $0x19] sm:$0xff] %vm3078_vm4, %v3047_v31  ;;  %v3017_v24 = vadd.f32 %v11437_v43, %v15199_v2  ;;  %v2836_v35 = vpop.f32.mrb[65].mxu0 }
 0x2a8   : > { %3081 = vst.msk [vmem:[#allocation3 + $0x11] sm:$0xff] %vm3078_vm4, %v3046_v57  ;;  %v3016_v4 = vadd.f32 %v15199_v2, %v2836_v35 }
 0x2a9   : > { %v3049_v42 = vmax.f32 %v3017_v24, 0.0 }
 0x2aa   : > { %v3048_v12 = vmax.f32 %v3016_v4, 0.0  ;;  %v11440_v32 = vpop.f32.mrb[66].mxu0 }
 0x2ab   : > { %3084 = vst.msk [vmem:[#allocation3 + $0x29] sm:$0xff] %vm3078_vm4, %v3049_v42  ;;  %v3019_v46 = vadd.f32 %v11440_v32, %v15199_v2  ;;  %v2846_v47 = vpop.f32.mrb[67].mxu0 }
 0x2ac   : > { %3083 = vst.msk [vmem:[#allocation3 + $0x21] sm:$0xff] %vm3078_vm4, %v3048_v12  ;;  %v3018_v58 = vadd.f32 %v15199_v2, %v2846_v47 }
 0x2ad   : > { %v3051_v14 = vmax.f32 %v3019_v46, 0.0 }
 0x2ae   : > { %v3050_v1 = vmax.f32 %v3018_v58, 0.0  ;;  %v11443_v33 = vpop.f32.mrb[68].mxu0 }
 0x2af   : > { %3086 = vst.msk [vmem:[#allocation3 + $0x39] sm:$0xff] %vm3078_vm4, %v3051_v14  ;;  %v3021_v45 = vadd.f32 %v11443_v33, %v15199_v2  ;;  %v2856_v36 = vpop.f32.mrb[69].mxu0  ;;  %v3130_v26 = vld [vmem:[#allocation3] ss:$4 sm:$0xff]  ;;  %v15217_v51 = vld [vmem:[#allocation3 + $0x3] ss:$4 sm:$0xff] }
 0x2b0   : > { %3085 = vst.msk [vmem:[#allocation3 + $0x31] sm:$0xff] %vm3078_vm4, %v3050_v1  ;;  %v3020_v23 = vadd.f32 %v15199_v2, %v2856_v36  ;;  %11485 = vmatprep.mubr.msk.f32.mxu1 %vm3078_vm4, %v3130_v26  ;;  %11713 = vmatprep.mubr.msk.f32.mxu0 %vm3078_vm4, %v15217_v51 }
 0x2b1   : > { %v3053_v50 = vmax.f32 %v3021_v45, 0.0 }
 0x2b2   : > { %v3052_v61 = vmax.f32 %v3020_v23, 0.0  ;;  %v11446_v16 = vpop.f32.mrb[70].mxu0 }
 0x2b3   : > { %3088 = vst.msk [vmem:[#allocation3 + $0x49] sm:$0xff] %vm3078_vm4, %v3053_v50  ;;  %v3023_v30 = vadd.f32 %v11446_v16, %v15199_v2  ;;  %v2866_v25 = vpop.f32.mrb[71].mxu0 }
 0x2b4   : > { %3087 = vst.msk [vmem:[#allocation3 + $0x41] sm:$0xff] %vm3078_vm4, %v3052_v61  ;;  %v3022_v5 = vadd.f32 %v15199_v2, %v2866_v25 }
 0x2b5   : > { %v3055_v49 = vmax.f32 %v3023_v30, 0.0 }
 0x2b6   : > { %v3054_v11 = vmax.f32 %v3022_v5, 0.0  ;;  %v11449_v17 = vpop.f32.mrb[72].mxu0 }
 0x2b7   : > { %3090 = vst.msk [vmem:[#allocation3 + $0x59] sm:$0xff] %vm3078_vm4, %v3055_v49  ;;  %v3025_v8 = vadd.f32 %v11449_v17, %v15199_v2  ;;  %v2876_v60 = vpop.f32.mrb[73].mxu0  ;;  %v3132_v62 = vld [vmem:[#allocation3 + $0x20] ss:$4 sm:$0xff]  ;;  %v15238_v53 = vld [vmem:[#allocation3 + $0x23] ss:$4 sm:$0xff] }
 0x2b8   : > { %3089 = vst.msk [vmem:[#allocation3 + $0x51] sm:$0xff] %vm3078_vm4, %v3054_v11  ;;  %v3024_v0 = vadd.f32 %v15199_v2, %v2876_v60  ;;  %11486 = vmatmul.mubr.msk.f32.vlgmr.msra.gmra.mrb[68].mxu1 %vm3078_vm4, %v3132_v62  ;;  %11714 = vmatmul.mubr.msk.f32.vlgmr.msra.gmra.mrb[92].mxu0 %vm3078_vm4, %v15238_v53 }
 0x2b9   : > { %v3057_v34 = vmax.f32 %v3025_v8, 0.0  ;;  %12988 = vmatpush3.bf16.msra.mxu1 %v15192_v40  ;;  %13072 = vmatpush3.bf16.msra.mxu0 %v15192_v40 }
 0x2ba   : > { %v3056_v13 = vmax.f32 %v3024_v0, 0.0  ;;  %v11452_v63 = vpop.f32.mrb[74].mxu0  ;;  %12990 = vmatprep.subr.bf16.mxu1 %v15234_v37  ;;  %13074 = vmatprep.subr.bf16.mxu0 %v15234_v37 }
 0x2bb   : > { %3092 = vst.msk [vmem:[#allocation3 + $0x69] sm:$0xff] %vm3078_vm4, %v3057_v34  ;;  %v3027_v10 = vadd.f32 %v11452_v63, %v15199_v2  ;;  %v2886_v54 = vpop.f32.mrb[75].mxu0 }
 0x2bc   : > { %3091 = vst.msk [vmem:[#allocation3 + $0x61] sm:$0xff] %vm3078_vm4, %v3056_v13  ;;  %v3026_v41 = vadd.f32 %v15199_v2, %v2886_v54 }
 0x2bd   : > { %v3059_v3 = vmax.f32 %v3027_v10, 0.0 }
 0x2be   : > { %v3058_v28 = vmax.f32 %v3026_v41, 0.0  ;;  %v11455_v29 = vpop.f32.mrb[76].mxu0 }
 0x2bf   : > { %3094 = vst.msk [vmem:[#allocation3 + $0x79] sm:$0xff] %vm3078_vm4, %v3059_v3  ;;  %v3029_v20 = vadd.f32 %v11455_v29, %v15199_v2  ;;  %v2896_v44 = vpop.f32.mrb[77].mxu0  ;;  %v3134_v55 = vld [vmem:[#allocation3 + $0x40] ss:$4 sm:$0xff]  ;;  %v15255_v6 = vld [vmem:[#allocation3 + $0x43] ss:$4 sm:$0xff] }
 0x2c0   : > { %3093 = vst.msk [vmem:[#allocation3 + $0x71] sm:$0xff] %vm3078_vm4, %v3058_v28  ;;  %v3028_v59 = vadd.f32 %v15199_v2, %v2896_v44  ;;  %11488 = vmatprep.mubr.msk.f32.mxu1 %vm3078_vm4, %v3134_v55  ;;  %11716 = vmatprep.mubr.msk.f32.mxu0 %vm3078_vm4, %v15255_v6  ;;  %v3425_v44 = vld [vmem:[%s17111_s1 + $0x68] sm:$0xff] }
 0x2c1   : > { %v3061_v19 = vmax.f32 %v3029_v20, 0.0 }
 0x2c2   : > { %v3060_v21 = vmax.f32 %v3028_v59, 0.0  ;;  %v11458_v9 = vpop.f32.mrb[78].mxu0  ;;  %v3426_v59 = vld [vmem:[%s17111_s1 + $0x70] sm:$0xff] }
 0x2c3   : > { %3096 = vst.msk [vmem:[#allocation3 + $0x89] sm:$0xff] %vm3078_vm4, %v3061_v19  ;;  %v3031_v15 = vadd.f32 %v11458_v9, %v15199_v2  ;;  %v2906_v39 = vpop.f32.mrb[79].mxu0  ;;  %v3113_v19 = vld [vmem:[#allocation2 + $0x1] ss:$4 sm:$0xff]  ;;  %v15325_v9 = vpack.c.bf16 %v3426_v59, %v3425_v44 }
 0x2c4   : > { %3095 = vst.msk [vmem:[#allocation3 + $0x81] sm:$0xff] %vm3078_vm4, %v3060_v21  ;;  %v3030_v27 = vadd.f32 %v15199_v2, %v2906_v39  ;;  %v4770_v21 = vld [vmem:[#allocation2 + $0x4] ss:$4 sm:$0xff] }
 0x2c5   : > { %v3063_v56 = vmax.f32 %v3031_v15, 0.0  ;;  %v3115_v15 = vld [vmem:[#allocation2 + $0x21] ss:$4 sm:$0xff]  ;;  %v4772_v39 = vld [vmem:[#allocation2 + $0x24] ss:$4 sm:$0xff] }
 0x2c6   : > { %v3062_v48 = vmax.f32 %v3030_v27, 0.0  ;;  %v11461_v31 = vpop.f32.mrb[80].mxu0  ;;  %v3117_v27 = vld [vmem:[#allocation2 + $0x41] ss:$4 sm:$0xff] }
 0x2c7   : > { %3098 = vst.msk [vmem:[#allocation3 + $0x99] sm:$0xff] %vm3078_vm4, %v3063_v56  ;;  %v3033_v57 = vadd.f32 %v11461_v31, %v15199_v2  ;;  %v2916_v43 = vpop.f32.mrb[81].mxu0  ;;  %v3136_v24 = vld [vmem:[#allocation3 + $0x60] ss:$4 sm:$0xff]  ;;  %v15268_v35 = vld [vmem:[#allocation3 + $0x63] ss:$4 sm:$0xff] }
 0x2c8   : > { %3097 = vst.msk [vmem:[#allocation3 + $0x91] sm:$0xff] %vm3078_vm4, %v3062_v48  ;;  %v3032_v4 = vadd.f32 %v15199_v2, %v2916_v43  ;;  %11489 = vmatmul.mubr.msk.f32.gmra.mrb[70].mxu1 %vm3078_vm4, %v3136_v24  ;;  %11717 = vmatmul.mubr.msk.f32.gmra.mrb[94].mxu0 %vm3078_vm4, %v15268_v35  ;;  %v3580_v56 = vld [vmem:[%s17111_s1 + $0x78] sm:$0xff]  ;;  %v3581_v48 = vld [vmem:[%s17111_s1 + $0x80] sm:$0xff] }
 0x2c9   : > { %v3065_v42 = vmax.f32 %v3033_v57, 0.0  ;;  %v4774_v31 = vld [vmem:[#allocation2 + $0x44] ss:$4 sm:$0xff]  ;;  %v3119_v57 = vld [vmem:[#allocation2 + $0x61] ss:$4 sm:$0xff]  ;;  %v15340_v24 = vpack.c.bf16 %v3581_v48, %v3580_v56 }
 0x2ca   : > { %v3064_v12 = vmax.f32 %v3032_v4, 0.0  ;;  %v11464_v32 = vpop.f32.mrb[82].mxu0  ;;  %v4776_v43 = vld [vmem:[#allocation2 + $0x64] ss:$4 sm:$0xff]  ;;  %v3121_v4 = vld [vmem:[#allocation2 + $0x81] ss:$4 sm:$0xff] }
 0x2cb   : > { %3100 = vst.msk [vmem:[#allocation3 + $0xa9] sm:$0xff] %vm3078_vm4, %v3065_v42  ;;  %v3035_v46 = vadd.f32 %v11464_v32, %v15199_v2  ;;  %v2926_v47 = vpop.f32.mrb[83].mxu0  ;;  %v4778_v42 = vld [vmem:[#allocation2 + $0x84] ss:$4 sm:$0xff]  ;;  %v3724_v56 = vld [vmem:[#allocation2 + $0x22] ss:$4 sm:$0xff] }
 0x2cc   : > { %3099 = vst.msk [vmem:[#allocation3 + $0xa1] sm:$0xff] %vm3078_vm4, %v3064_v12  ;;  %v3034_v58 = vadd.f32 %v15199_v2, %v2926_v47  ;;  %v3123_v12 = vld [vmem:[#allocation2 + $0xa1] ss:$4 sm:$0xff]  ;;  %v4780_v32 = vld [vmem:[#allocation2 + $0xa4] ss:$4 sm:$0xff] }
 0x2cd   : > { %v3067_v14 = vmax.f32 %v3035_v46, 0.0  ;;  %v3125_v46 = vld [vmem:[#allocation2 + $0xc1] ss:$4 sm:$0xff]  ;;  %v4782_v47 = vld [vmem:[#allocation2 + $0xc4] ss:$4 sm:$0xff] }
 0x2ce   : > { %v3066_v1 = vmax.f32 %v3034_v58, 0.0  ;;  %v11467_v33 = vpop.f32.mrb[84].mxu0  ;;  %v3127_v58 = vld [vmem:[#allocation2 + $0xe1] ss:$4 sm:$0xff]  ;;  %v3726_v48 = vld [vmem:[#allocation2 + $0x42] ss:$4 sm:$0xff] }
 0x2cf   : > { %3102 = vst.msk [vmem:[#allocation3 + $0xb9] sm:$0xff] %vm3078_vm4, %v3067_v14  ;;  %v3037_v45 = vadd.f32 %v11467_v33, %v15199_v2  ;;  %v2936_v36 = vpop.f32.mrb[85].mxu0  ;;  %v3138_v26 = vld [vmem:[#allocation3 + $0x80] ss:$4 sm:$0xff]  ;;  %v15281_v23 = vld [vmem:[#allocation3 + $0x83] ss:$4 sm:$0xff] }
 0x2d0   : > { %3101 = vst.msk [vmem:[#allocation3 + $0xb1] sm:$0xff] %vm3078_vm4, %v3066_v1  ;;  %v3036_v50 = vadd.f32 %v15199_v2, %v2936_v36  ;;  %11491 = vmatprep.mubr.msk.f32.mxu1 %vm3078_vm4, %v3138_v26  ;;  %11719 = vmatprep.mubr.msk.f32.mxu0 %vm3078_vm4, %v15281_v23  ;;  %v4784_v14 = vld [vmem:[#allocation2 + $0xe4] ss:$4 sm:$0xff] }
 0x2d1   : > { %v3069_v61 = vmax.f32 %v3037_v45, 0.0  ;;  %v3582_v1 = vld [vmem:[%s17111_s1 + $0x88] sm:$0xff]  ;;  %v3583_v33 = vld [vmem:[%s17111_s1 + $0x90] sm:$0xff] }
 0x2d2   : > { %v3068_v16 = vmax.f32 %v3036_v50, 0.0  ;;  %v11470_v30 = vpop.f32.mrb[86].mxu0  ;;  %v15363_v45 = vld [vmem:[#allocation3 + $0x1] ss:$4 sm:$0xff]  ;;  %v15365_v36 = vld [vmem:[#allocation3 + $0x4] ss:$4 sm:$0xff]  ;;  %v15371_v26 = vpack.c.bf16 %v3583_v33, %v3582_v1 }
 0x2d3   : > { %3104 = vst.msk [vmem:[#allocation3 + $0xc9] sm:$0xff] %vm3078_vm4, %v3069_v61  ;;  %v3039_v25 = vadd.f32 %v11470_v30, %v15199_v2  ;;  %v2946_v18 = vpop.f32.mrb[87].mxu0  ;;  %v15373_v50 = vld [vmem:[#allocation3 + $0x21] ss:$4 sm:$0xff]  ;;  %v15375_v61 = vld [vmem:[#allocation3 + $0x24] ss:$4 sm:$0xff] }
 0x2d4   : > { %3103 = vst.msk [vmem:[#allocation3 + $0xc1] sm:$0xff] %vm3078_vm4, %v3068_v16  ;;  %v3038_v38 = vadd.f32 %v15199_v2, %v2946_v18  ;;  %v15381_v16 = vld [vmem:[#allocation3 + $0x41] ss:$4 sm:$0xff]  ;;  %v15386_v30 = vld [vmem:[#allocation3 + $0x44] ss:$4 sm:$0xff] }
 0x2d5   : > { %v3071_v5 = vmax.f32 %v3039_v25, 0.0  ;;  %v15391_v25 = vld [vmem:[#allocation3 + $0x61] ss:$4 sm:$0xff]  ;;  %v15393_v18 = vld [vmem:[#allocation3 + $0x64] ss:$4 sm:$0xff] }
 0x2d6   : > { %v3070_v49 = vmax.f32 %v3038_v38, 0.0  ;;  %v11473_v11 = vpop.f32.mrb[88].mxu0  ;;  %v3416_v38 = vld [vmem:[#allocation3 + $0x81] ss:$4 sm:$0xff] }
 0x2d7   : > { %3106 = vst.msk [vmem:[#allocation3 + $0xd9] sm:$0xff] %vm3078_vm4, %v3071_v5  ;;  %v3041_v17 = vadd.f32 %v11473_v11, %v15199_v2  ;;  %v2956_v8 = vpop.f32.mrb[89].mxu0  ;;  %v3140_v60 = vld [vmem:[#allocation3 + $0xa0] ss:$4 sm:$0xff]  ;;  %v15294_v62 = vld [vmem:[#allocation3 + $0xa3] ss:$4 sm:$0xff] }
 0x2d8   : > { %3105 = vst.msk [vmem:[#allocation3 + $0xd1] sm:$0xff] %vm3078_vm4, %v3070_v49  ;;  %v3040_v0 = vadd.f32 %v15199_v2, %v2956_v8  ;;  %11492 = vmatmul.mubr.msk.f32.gmra.mrb[72].mxu1 %vm3078_vm4, %v3140_v60  ;;  %11720 = vmatmul.mubr.msk.f32.gmra.mrb[96].mxu0 %vm3078_vm4, %v15294_v62  ;;  %v15400_v5 = vld [vmem:[#allocation3 + $0x84] ss:$4 sm:$0xff]  ;;  %v3418_v49 = vld [vmem:[#allocation3 + $0xa1] ss:$4 sm:$0xff] }
 0x2d9   : > { %v3073_v34 = vmax.f32 %v3041_v17, 0.0  ;;  %v15407_v11 = vld [vmem:[#allocation3 + $0xa4] ss:$4 sm:$0xff]  ;;  %v5141_v44 = vld [vmem:[#allocation3 + $0x85] ss:$4 sm:$0xff] }
 0x2da   : > { %v3072_v13 = vmax.f32 %v3040_v0, 0.0  ;;  %v11476_v63 = vpop.f32.mrb[90].mxu0  ;;  %v5344_v1 = vld [vmem:[%s17111_s1 + $0xc8] sm:$0xff]  ;;  %v5345_v33 = vld [vmem:[%s17111_s1 + $0xd0] sm:$0xff] }
 0x2db   : > { %3108 = vst.msk [vmem:[#allocation3 + $0xe9] sm:$0xff] %vm3078_vm4, %v3073_v34  ;;  %v3043_v10 = vadd.f32 %v11476_v63, %v15199_v2  ;;  %v2966_v54 = vpop.f32.mrb[91].mxu0  ;;  %v15424_v34 = vld [vmem:[#allocation3 + $0x2] ss:$4 sm:$0xff]  ;;  %v5143_v59 = vld [vmem:[#allocation3 + $0xa5] ss:$4 sm:$0xff] }
 0x2dc   : > { %3107 = vst.msk [vmem:[#allocation3 + $0xe1] sm:$0xff] %vm3078_vm4, %v3072_v13  ;;  %v3042_v41 = vadd.f32 %v15199_v2, %v2966_v54  ;;  %v5133_v13 = vld [vmem:[#allocation3 + $0x5] ss:$4 sm:$0xff]  ;;  %v15429_v63 = vld [vmem:[#allocation3 + $0x22] ss:$4 sm:$0xff] }
 0x2dd   : > { %v3075_v3 = vmax.f32 %v3043_v10, 0.0  ;;  %v5135_v10 = vld [vmem:[#allocation3 + $0x25] ss:$4 sm:$0xff]  ;;  %v15434_v54 = vld [vmem:[#allocation3 + $0x42] ss:$4 sm:$0xff] }
 0x2de   : > { %v3074_v28 = vmax.f32 %v3042_v41, 0.0  ;;  %v5137_v41 = vld [vmem:[#allocation3 + $0x45] ss:$4 sm:$0xff] }
 0x2df   : > { %3110 = vst.msk [vmem:[#allocation3 + $0xf9] sm:$0xff] %vm3078_vm4, %v3075_v3  ;;  %v3142_v29 = vld [vmem:[#allocation3 + $0xc0] ss:$4 sm:$0xff]  ;;  %v15306_v20 = vld [vmem:[#allocation3 + $0xc3] ss:$4 sm:$0xff] }
 0x2e0   : > { %3109 = vst.msk [vmem:[#allocation3 + $0xf1] sm:$0xff] %vm3078_vm4, %v3074_v28  ;;  %11494 = vmatprep.mubr.msk.f32.mxu1 %vm3078_vm4, %v3142_v29  ;;  %11722 = vmatprep.mubr.msk.f32.mxu0 %vm3078_vm4, %v15306_v20  ;;  %v3420_v17 = vld [vmem:[#allocation3 + $0xc1] ss:$4 sm:$0xff]  ;;  %v15414_v8 = vld [vmem:[#allocation3 + $0xc4] ss:$4 sm:$0xff] }
 0x2e1   : > { %v15441_v3 = vld [vmem:[#allocation3 + $0x62] ss:$4 sm:$0xff]  ;;  %v5139_v28 = vld [vmem:[#allocation3 + $0x65] ss:$4 sm:$0xff] }
 0x2e2   : > { %v15446_v29 = vld [vmem:[#allocation3 + $0x82] ss:$4 sm:$0xff] }
 0x2e7   : > { %v3144_v55 = vld [vmem:[#allocation3 + $0xe0] ss:$4 sm:$0xff]  ;;  %v15315_v2 = vld [vmem:[#allocation3 + $0xe3] ss:$4 sm:$0xff]  ;;  %v3422_v60 = vld [vmem:[#allocation3 + $0xe1] ss:$4 sm:$0xff] }
 0x2e8   : > { %11495 = vmatmul.mubr.msk.f32.gmra.mrb[74].mxu1 %vm3078_vm4, %v3144_v55  ;;  %11723 = vmatmul.mubr.msk.f32.gmra.mrb[98].mxu0 %vm3078_vm4, %v15315_v2  ;;  %v15419_v0 = vld [vmem:[#allocation3 + $0xe4] ss:$4 sm:$0xff]  ;;  %v15452_v55 = vld [vmem:[#allocation3 + $0xa2] ss:$4 sm:$0xff] }
 0x2e9   : > { %11501 = vmatprep.mubr.msk.f32.mxu1 %vm1876_vm2, %v3113_v19  ;;  %11729 = vmatprep.mubr.msk.f32.mxu0 %vm1876_vm2, %v4770_v21  ;;  %v15458_v19 = vld [vmem:[#allocation3 + $0xc2] ss:$4 sm:$0xff]  ;;  %v5145_v21 = vld [vmem:[#allocation3 + $0xc5] ss:$4 sm:$0xff] }
 0x2ec   : > { %11502 = vmatmul.mubr.msk.f32.vlgmr.msra.gmra.mrb[68].mxu1 %vm1876_vm2, %v3115_v15  ;;  %11730 = vmatmul.mubr.msk.f32.vlgmr.msra.gmra.mrb[92].mxu0 %vm1876_vm2, %v4772_v39  ;;  %v15463_v15 = vld [vmem:[#allocation3 + $0xe2] ss:$4 sm:$0xff]  ;;  %v5147_v39 = vld [vmem:[#allocation3 + $0xe5] ss:$4 sm:$0xff] }
 0x2ed   : > { %12992 = vmatpush3.bf16.msra.mxu1 %v15234_v37  ;;  %11504 = vmatprep.mubr.msk.f32.mxu1 %vm1876_vm2, %v3117_v27  ;;  %v3722_v27 = vld [vmem:[#allocation2 + $0x2] ss:$4 sm:$0xff] }
 0x2ee   : > { %11732 = vmatprep.mubr.msk.f32.mxu0 %vm1876_vm2, %v4774_v31  ;;  %12994 = vmatprep.subr.bf16.mxu1 %v15325_v9  ;;  %v3728_v31 = vld [vmem:[#allocation2 + $0x62] ss:$4 sm:$0xff] }
 0x2ef   : > { %13076 = vmatpush3.bf16.msra.mxu0 %v15234_v37 }
 0x2f0   : > { %11505 = vmatmul.mubr.msk.f32.gmra.mrb[70].mxu1 %vm1876_vm2, %v3119_v57  ;;  %11733 = vmatmul.mubr.msk.f32.gmra.mrb[94].mxu0 %vm1876_vm2, %v4776_v43  ;;  %v3730_v57 = vld [vmem:[#allocation2 + $0x82] ss:$4 sm:$0xff] }
 0x2f1   : > { %11507 = vmatprep.mubr.msk.f32.mxu1 %vm1876_vm2, %v3121_v4  ;;  %11735 = vmatprep.mubr.msk.f32.mxu0 %vm1876_vm2, %v4778_v42  ;;  %v3732_v43 = vld [vmem:[#allocation2 + $0xa2] ss:$4 sm:$0xff] }
 0x2f2   : > { %12996 = vmatpush3.bf16.msra.mxu1 %v15325_v9  ;;  %13078 = vmatprep.subr.bf16.mxu0 %v15325_v9  ;;  %v3734_v4 = vld [vmem:[#allocation2 + $0xc2] ss:$4 sm:$0xff] }
 0x2f3   : > { %13080 = vmatpush3.bf16.msra.mxu0 %v15325_v9  ;;  %12998 = vmatprep.subr.bf16.mxu1 %v15340_v24  ;;  %v3736_v42 = vld [vmem:[#allocation2 + $0xe2] ss:$4 sm:$0xff] }
 0x2f4   : > { %11508 = vmatmul.mubr.msk.f32.gmra.mrb[72].mxu1 %vm1876_vm2, %v3123_v12  ;;  %11736 = vmatmul.mubr.msk.f32.gmra.mrb[96].mxu0 %vm1876_vm2, %v4780_v32  ;;  %v4252_v12 = vld [vmem:[#allocation2 + $0x63] ss:$4 sm:$0xff] }
 0x2f5   : > { %11510 = vmatprep.mubr.msk.f32.mxu1 %vm1876_vm2, %v3125_v46  ;;  %11738 = vmatprep.mubr.msk.f32.mxu0 %vm1876_vm2, %v4782_v47  ;;  %v4254_v32 = vld [vmem:[#allocation2 + $0x83] ss:$4 sm:$0xff] }
 0x2f6   : > { %13082 = vmatprep.subr.bf16.mxu0 %v15340_v24  ;;  %v4256_v46 = vld [vmem:[#allocation2 + $0xa3] ss:$4 sm:$0xff] }
 0x2f7   : > { %v4258_v47 = vld [vmem:[#allocation2 + $0xc3] ss:$4 sm:$0xff] }
 0x2f8   : > { %11511 = vmatmul.mubr.msk.f32.gmra.mrb[74].mxu1 %vm1876_vm2, %v3127_v58  ;;  %11739 = vmatmul.mubr.msk.f32.gmra.mrb[98].mxu0 %vm1876_vm2, %v4784_v14 }
 0x2f9   : > { %11521 = vmatprep.mubr.msk.f32.mxu1 %vm3078_vm4, %v15363_v45  ;;  %11749 = vmatprep.mubr.msk.f32.mxu0 %vm3078_vm4, %v15365_v36 }
 0x2fc   : > { %11522 = vmatmul.mubr.msk.f32.vlgmr.msra.gmra.mrb[68].mxu1 %vm3078_vm4, %v15373_v50  ;;  %11750 = vmatmul.mubr.msk.f32.vlgmr.msra.gmra.mrb[92].mxu0 %vm3078_vm4, %v15375_v61 }
 0x2fd   : > { %13000 = vmatpush3.bf16.msra.mxu1 %v15340_v24  ;;  %11524 = vmatprep.mubr.msk.f32.mxu1 %vm3078_vm4, %v15381_v16 }
 0x2fe   : > { %11752 = vmatprep.mubr.msk.f32.mxu0 %vm3078_vm4, %v15386_v30  ;;  %13002 = vmatprep.subr.bf16.mxu1 %v15371_v26 }
 0x2ff   : > { %13084 = vmatpush3.bf16.msra.mxu0 %v15340_v24 }
 0x300   : > { %11525 = vmatmul.mubr.msk.f32.gmra.mrb[70].mxu1 %vm3078_vm4, %v15391_v25  ;;  %11753 = vmatmul.mubr.msk.f32.gmra.mrb[94].mxu0 %vm3078_vm4, %v15393_v18 }
 0x301   : > { %11527 = vmatprep.mubr.msk.f32.mxu1 %vm3078_vm4, %v3416_v38  ;;  %11755 = vmatprep.mubr.msk.f32.mxu0 %vm3078_vm4, %v15400_v5 }
 0x302   : > { %13004 = vmatpush3.bf16.msra.mxu1 %v15371_v26  ;;  %13086 = vmatprep.subr.bf16.mxu0 %v15371_v26 }
 0x303   : > { %13088 = vmatpush3.bf16.msra.mxu0 %v15371_v26  ;;  %13006 = vmatprep.subr.bf16.mxu1 %v15100_v7 }
 0x304   : > { %11528 = vmatmul.mubr.msk.f32.gmra.mrb[72].mxu1 %vm3078_vm4, %v3418_v49  ;;  %11756 = vmatmul.mubr.msk.f32.gmra.mrb[96].mxu0 %vm3078_vm4, %v15407_v11 }
 0x305   : > { %11530 = vmatprep.mubr.msk.f32.mxu1 %vm3078_vm4, %v3420_v17  ;;  %11758 = vmatprep.mubr.msk.f32.mxu0 %vm3078_vm4, %v15414_v8 }
 0x308   : > { %11531 = vmatmul.mubr.msk.f32.gmra.mrb[74].mxu1 %vm3078_vm4, %v3422_v60  ;;  %11759 = vmatmul.mubr.msk.f32.gmra.mrb[98].mxu0 %vm3078_vm4, %v15419_v0 }
 0x309   : > { %11541 = vmatprep.mubr.msk.f32.mxu1 %vm3078_vm4, %v15424_v34  ;;  %11769 = vmatprep.mubr.msk.f32.mxu0 %vm3078_vm4, %v5133_v13 }
 0x30c   : > { %11542 = vmatmul.mubr.msk.f32.vlgmr.msra.gmra.mrb[68].mxu1 %vm3078_vm4, %v15429_v63  ;;  %11770 = vmatmul.mubr.msk.f32.vlgmr.msra.gmra.mrb[92].mxu0 %vm3078_vm4, %v5135_v10 }
 0x30d   : > { %13008 = vmatpush3.bf16.msra.mxu1 %v15100_v7  ;;  %11544 = vmatprep.mubr.msk.f32.mxu1 %vm3078_vm4, %v15434_v54 }
 0x30e   : > { %11772 = vmatprep.mubr.msk.f32.mxu0 %vm3078_vm4, %v5137_v41  ;;  %13010 = vmatprep.subr.bf16.mxu1 %v15180_v22 }
 0x310   : > { %11545 = vmatmul.mubr.msk.f32.gmra.mrb[70].mxu1 %vm3078_vm4, %v15441_v3  ;;  %11773 = vmatmul.mubr.msk.f32.gmra.mrb[94].mxu0 %vm3078_vm4, %v5139_v28 }
 0x311   : > { %11547 = vmatprep.mubr.msk.f32.mxu1 %vm3078_vm4, %v15446_v29  ;;  %11775 = vmatprep.mubr.msk.f32.mxu0 %vm3078_vm4, %v5141_v44 }
 0x312   : > { %13012 = vmatpush3.bf16.msra.mxu1 %v15180_v22 }
 0x313   : > { %13014 = vmatprep.subr.bf16.mxu1 %v15192_v40 }
 0x314   : > { %11548 = vmatmul.mubr.msk.f32.gmra.mrb[72].mxu1 %vm3078_vm4, %v15452_v55  ;;  %11776 = vmatmul.mubr.msk.f32.gmra.mrb[96].mxu0 %vm3078_vm4, %v5143_v59 }
 0x315   : > { %11550 = vmatprep.mubr.msk.f32.mxu1 %vm3078_vm4, %v15458_v19  ;;  %11778 = vmatprep.mubr.msk.f32.mxu0 %vm3078_vm4, %v5145_v21  ;;  %v10030_v21 = vld [vmem:[%s17112_s2 + $0x2] ss:$0 sm:$0xff] }
 0x318   : > { %11551 = vmatmul.mubr.msk.f32.gmra.mrb[74].mxu1 %vm3078_vm4, %v15463_v15  ;;  %11779 = vmatmul.mubr.msk.f32.gmra.mrb[98].mxu0 %vm3078_vm4, %v5147_v39 }
 0x319   : > { %11561 = vmatprep.mubr.msk.f32.mxu1 %vm3078_vm4, %v15363_v45  ;;  %v13089_v45 = vpack.c.bf16 %v5345_v33, %v5344_v1  ;;  %v5334_v33 = vld [vmem:[%s17111_s1 + $0xb8] sm:$0xff] }
 0x31c   : > { %11562 = vmatmul.mubr.msk.f32.vlgmr.msra.gmra.mrb[76].mxu1 %vm3078_vm4, %v15373_v50 }
 0x31d   : > { %13016 = vmatpush3.bf16.msra.mxu1 %v15192_v40  ;;  %11564 = vmatprep.mubr.msk.f32.mxu1 %vm3078_vm4, %v15381_v16  ;;  %v5346_v16 = vld [vmem:[%s17111_s1 + $0xd8] sm:$0xff] }
 0x31e   : > { %13018 = vmatprep.subr.bf16.mxu1 %v15234_v37 }
 0x320   : > { %11565 = vmatmul.mubr.msk.f32.gmra.mrb[78].mxu1 %vm3078_vm4, %v15391_v25 }
 0x321   : > { %11567 = vmatprep.mubr.msk.f32.mxu1 %vm3078_vm4, %v3416_v38  ;;  %v5333_v38 = vld [vmem:[%s17111_s1 + $0xb0] sm:$0xff] }
 0x324   : > { %11568 = vmatmul.mubr.msk.f32.gmra.mrb[80].mxu1 %vm3078_vm4, %v3418_v49 }
 0x325   : > { %11570 = vmatprep.mubr.msk.f32.mxu1 %vm3078_vm4, %v3420_v17 }
 0x328   : > { %11571 = vmatmul.mubr.msk.f32.gmra.mrb[82].mxu1 %vm3078_vm4, %v3422_v60 }
 0x329   : > { %11577 = vmatprep.mubr.msk.f32.mxu1 %vm1876_vm2, %v3722_v27 }
 0x32c   : > { %11578 = vmatmul.mubr.msk.f32.vlgmr.msra.gmra.mrb[76].mxu1 %vm1876_vm2, %v3724_v56 }
 0x32d   : > { %13020 = vmatpush3.bf16.msra.mxu1 %v15234_v37  ;;  %11580 = vmatprep.mubr.msk.f32.mxu1 %vm1876_vm2, %v3726_v48 }
 0x32e   : > { %13022 = vmatprep.subr.bf16.mxu1 %v15325_v9 }
 0x330   : > { %11581 = vmatmul.mubr.msk.f32.gmra.mrb[78].mxu1 %vm1876_vm2, %v3728_v31 }
 0x331   : > { %11583 = vmatprep.mubr.msk.f32.mxu1 %vm1876_vm2, %v3730_v57  ;;  %13024 = vmatpush3.bf16.msra.mxu1 %v15325_v9 }
 0x332   : > { %13026 = vmatprep.subr.bf16.mxu1 %v15340_v24 }
 0x334   : > { %11584 = vmatmul.mubr.msk.f32.gmra.mrb[80].mxu1 %vm1876_vm2, %v3732_v43 }
 0x335   : > { %11586 = vmatprep.mubr.msk.f32.mxu1 %vm1876_vm2, %v3734_v4 }
 0x338   : > { %11587 = vmatmul.mubr.msk.f32.gmra.mrb[82].mxu1 %vm1876_vm2, %v3736_v42 }
 0x339   : > { %11597 = vmatprep.mubr.msk.f32.mxu1 %vm3078_vm4, %v15424_v34 }
 0x33c   : > { %11598 = vmatmul.mubr.msk.f32.vlgmr.msra.gmra.mrb[76].mxu1 %vm3078_vm4, %v15429_v63 }
 0x33d   : > { %13028 = vmatpush3.bf16.msra.mxu1 %v15340_v24  ;;  %11600 = vmatprep.mubr.msk.f32.mxu1 %vm3078_vm4, %v15434_v54 }
 0x33e   : > { %13030 = vmatprep.subr.bf16.mxu1 %v15371_v26 }
 0x340   : > { %11601 = vmatmul.mubr.msk.f32.gmra.mrb[78].mxu1 %vm3078_vm4, %v15441_v3 }
 0x341   : > { %11603 = vmatprep.mubr.msk.f32.mxu1 %vm3078_vm4, %v15446_v29  ;;  %13032 = vmatpush3.bf16.msra.mxu1 %v15371_v26 }
 0x342   : > { %13034 = vmatprep.subr.bf16.mxu1 %v15100_v7 }
 0x344   : > { %11604 = vmatmul.mubr.msk.f32.gmra.mrb[80].mxu1 %vm3078_vm4, %v15452_v55 }
 0x345   : > { %11606 = vmatprep.mubr.msk.f32.mxu1 %vm3078_vm4, %v15458_v19 }
 0x348   : > { %11607 = vmatmul.mubr.msk.f32.gmra.mrb[82].mxu1 %vm3078_vm4, %v15463_v15 }
 0x349   : > { %11617 = vmatprep.mubr.msk.f32.mxu1 %vm3078_vm4, %v15217_v51 }
 0x34c   : > { %11618 = vmatmul.mubr.msk.f32.vlgmr.msra.gmra.mrb[76].mxu1 %vm3078_vm4, %v15238_v53 }
 0x34d   : > { %13036 = vmatpush3.bf16.msra.mxu1 %v15100_v7  ;;  %11620 = vmatprep.mubr.msk.f32.mxu1 %vm3078_vm4, %v15255_v6  ;;  %v4246_v7 = vld [vmem:[#allocation2 + $0x3] ss:$4 sm:$0xff] }
 0x34e   : > { %13038 = vmatprep.subr.bf16.mxu1 %v15180_v22 }
 0x350   : > { %11621 = vmatmul.mubr.msk.f32.gmra.mrb[78].mxu1 %vm3078_vm4, %v15268_v35 }
 0x351   : > { %11623 = vmatprep.mubr.msk.f32.mxu1 %vm3078_vm4, %v15281_v23  ;;  %13040 = vmatpush3.bf16.msra.mxu1 %v15180_v22  ;;  %v4248_v22 = vld [vmem:[#allocation2 + $0x23] ss:$4 sm:$0xff] }
 0x352   : > { %13042 = vmatprep.subr.bf16.mxu1 %v15192_v40 }
 0x354   : > { %11624 = vmatmul.mubr.msk.f32.gmra.mrb[80].mxu1 %vm3078_vm4, %v15294_v62 }
 0x355   : > { %11626 = vmatprep.mubr.msk.f32.mxu1 %vm3078_vm4, %v15306_v20 }
 0x358   : > { %11627 = vmatmul.mubr.msk.f32.gmra.mrb[82].mxu1 %vm3078_vm4, %v15315_v2 }
 0x359   : > { %11637 = vmatprep.mubr.msk.f32.mxu1 %vm3078_vm4, %v15424_v34 }
 0x35c   : > { %11638 = vmatmul.mubr.msk.f32.vlgmr.msra.gmra.mrb[84].mxu1 %vm3078_vm4, %v15429_v63 }
 0x35d   : > { %13044 = vmatpush3.bf16.msra.mxu1 %v15192_v40  ;;  %11640 = vmatprep.mubr.msk.f32.mxu1 %vm3078_vm4, %v15434_v54  ;;  %v4250_v40 = vld [vmem:[#allocation2 + $0x43] ss:$4 sm:$0xff] }
 0x35e   : > { %13046 = vmatprep.subr.bf16.mxu1 %v15234_v37 }
 0x360   : > { %11641 = vmatmul.mubr.msk.f32.gmra.mrb[86].mxu1 %vm3078_vm4, %v15441_v3 }
 0x361   : > { %11643 = vmatprep.mubr.msk.f32.mxu1 %vm3078_vm4, %v15446_v29 }
 0x364   : > { %11644 = vmatmul.mubr.msk.f32.gmra.mrb[88].mxu1 %vm3078_vm4, %v15452_v55 }
 0x365   : > { %11646 = vmatprep.mubr.msk.f32.mxu1 %vm3078_vm4, %v15458_v19 }
 0x368   : > { %11647 = vmatmul.mubr.msk.f32.gmra.mrb[90].mxu1 %vm3078_vm4, %v15463_v15 }
 0x369   : > { %11653 = vmatprep.mubr.msk.f32.mxu1 %vm1876_vm2, %v4246_v7 }
 0x36c   : > { %11654 = vmatmul.mubr.msk.f32.vlgmr.msra.gmra.mrb[84].mxu1 %vm1876_vm2, %v4248_v22 }
 0x36d   : > { %13048 = vmatpush3.bf16.msra.mxu1 %v15234_v37  ;;  %11656 = vmatprep.mubr.msk.f32.mxu1 %vm1876_vm2, %v4250_v40  ;;  %v4260_v37 = vld [vmem:[#allocation2 + $0xe3] ss:$4 sm:$0xff] }
 0x36e   : > { %13050 = vmatprep.subr.bf16.mxu1 %v15325_v9 }
 0x370   : > { %11657 = vmatmul.mubr.msk.f32.gmra.mrb[86].mxu1 %vm1876_vm2, %v4252_v12 }
 0x371   : > { %11659 = vmatprep.mubr.msk.f32.mxu1 %vm1876_vm2, %v4254_v32  ;;  %13052 = vmatpush3.bf16.msra.mxu1 %v15325_v9 }
 0x372   : > { %13054 = vmatprep.subr.bf16.mxu1 %v15340_v24 }
 0x374   : > { %11660 = vmatmul.mubr.msk.f32.gmra.mrb[88].mxu1 %vm1876_vm2, %v4256_v46 }
 0x375   : > { %11662 = vmatprep.mubr.msk.f32.mxu1 %vm1876_vm2, %v4258_v47 }
 0x378   : > { %11663 = vmatmul.mubr.msk.f32.gmra.mrb[90].mxu1 %vm1876_vm2, %v4260_v37 }
 0x379   : > { %11673 = vmatprep.mubr.msk.f32.mxu1 %vm3078_vm4, %v15217_v51 }
 0x37c   : > { %11674 = vmatmul.mubr.msk.f32.vlgmr.msra.gmra.mrb[84].mxu1 %vm3078_vm4, %v15238_v53 }
 0x37d   : > { %13056 = vmatpush3.bf16.msra.mxu1 %v15340_v24  ;;  %11676 = vmatprep.mubr.msk.f32.mxu1 %vm3078_vm4, %v15255_v6 }
 0x37e   : > { %13058 = vmatprep.subr.bf16.mxu1 %v15371_v26 }
 0x380   : > { %11677 = vmatmul.mubr.msk.f32.gmra.mrb[86].mxu1 %vm3078_vm4, %v15268_v35 }
 0x381   : > { %11679 = vmatprep.mubr.msk.f32.mxu1 %vm3078_vm4, %v15281_v23  ;;  %13060 = vmatpush3.bf16.msra.mxu1 %v15371_v26 }
 0x382   : > { %13090 = vmatprep.subr.bf16.mxu1 %v13089_v45 }
 0x384   : > { %11680 = vmatmul.mubr.msk.f32.gmra.mrb[88].mxu1 %vm3078_vm4, %v15294_v62 }
 0x385   : > { %11682 = vmatprep.mubr.msk.f32.mxu1 %vm3078_vm4, %v15306_v20 }
 0x388   : > { %11683 = vmatmul.mubr.msk.f32.gmra.mrb[90].mxu1 %vm3078_vm4, %v15315_v2 }
 0x389   : > { %11693 = vmatprep.mubr.msk.f32.mxu1 %vm3078_vm4, %v15365_v36 }
 0x38c   : > { %11694 = vmatmul.mubr.msk.f32.vlgmr.msra.gmra.mrb[84].mxu1 %vm3078_vm4, %v15375_v61 }
 0x38d   : > { %11696 = vmatprep.mubr.msk.f32.mxu1 %vm3078_vm4, %v15386_v30  ;;  %13092 = vmatpush3.bf16.msra.mxu1 %v13089_v45  ;;  %v5347_v30 = vld [vmem:[%s17111_s1 + $0xe0] sm:$0xff] }
 0x38e   : > { %v13093_v25 = vpack.c.bf16 %v5347_v30, %v5346_v16 }
 0x390   : > { %11697 = vmatmul.mubr.msk.f32.gmra.mrb[86].mxu1 %vm3078_vm4, %v15393_v18  ;;  %13094 = vmatprep.subr.bf16.mxu1 %v13093_v25  ;;  %v5332_v18 = vld [vmem:[%s17111_s1 + $0xa8] sm:$0xff] }
 0x391   : > { %11699 = vmatprep.mubr.msk.f32.mxu1 %vm3078_vm4, %v15400_v5  ;;  %13096 = vmatpush3.bf16.msra.mxu1 %v13093_v25  ;;  %v15631_v5 = vpack.c.bf16 %v5333_v38, %v5332_v18 }
 0x393   : > { %13098 = vmatprep.subr.bf16.mxu1 %v15631_v5 }
 0x394   : > { %11700 = vmatmul.mubr.msk.f32.gmra.mrb[88].mxu1 %vm3078_vm4, %v15407_v11 }
 0x395   : > { %11702 = vmatprep.mubr.msk.f32.mxu1 %vm3078_vm4, %v15414_v8 }
 0x398   : > { %11703 = vmatmul.mubr.msk.f32.gmra.mrb[90].mxu1 %vm3078_vm4, %v15419_v0 }
 0x3df   : > { %v11543_v51 = vpop.f32.mrb[68].mxu1  ;;  %v11771_v53 = vpop.f32.mrb[92].mxu0 }
 0x3e0   : > { %v3674_v6 = vpop.f32.mrb[69].mxu1  ;;  %v5238_v35 = vpop.f32.mrb[93].mxu0 }
 0x3e3   : > { %v11546_v23 = vpop.f32.mrb[70].mxu1  ;;  %v11774_v62 = vpop.f32.mrb[94].mxu0 }
 0x3e4   : > { %v3684_v20 = vpop.f32.mrb[71].mxu1  ;;  %v15599_v2 = vpop.f32.mrb[95].mxu0 }
 0x3e7   : > { %v11549_v9 = vpop.f32.mrb[72].mxu1  ;;  %v15601_v24 = vpop.f32.mrb[96].mxu0 }
 0x3e8   : > { %v3694_v58 = vpop.f32.mrb[73].mxu1  ;;  %v15603_v14 = vpop.f32.mrb[97].mxu0 }
 0x3eb   : > { %v15611_v36 = vpop.f32.mrb[74].mxu1  ;;  %v15613_v26 = vpop.f32.mrb[98].mxu0 }
 0x3ec   : > { %v15615_v50 = vpop.f32.mrb[75].mxu1  ;;  %v15617_v61 = vpop.f32.mrb[99].mxu0 }
 0x41f   : > { %v11619_v49 = vpop.f32.mrb[76].mxu1 }
 0x420   : > { %v4238_v11 = vmax.f32 %v11543_v51, %v11619_v49  ;;  %v4190_v17 = vpop.f32.mrb[77].mxu1  ;;  %v5614_v49 = vld [vmem:[%s17111_s1 + $0xe8] sm:$0xff] }
 0x421   : > { %v4237_v8 = vmax.f32 %v3674_v6, %v4190_v17 }
 0x423   : > { %v11622_v60 = vpop.f32.mrb[78].mxu1 }
 0x424   : > { %v4240_v0 = vmax.f32 %v11546_v23, %v11622_v60  ;;  %v4200_v34 = vpop.f32.mrb[79].mxu1 }
 0x425   : > { %v4239_v13 = vmax.f32 %v3684_v20, %v4200_v34 }
 0x427   : > { %v11625_v63 = vpop.f32.mrb[80].mxu1 }
 0x428   : > { %v4242_v10 = vmax.f32 %v11549_v9, %v11625_v63  ;;  %v4210_v54 = vpop.f32.mrb[81].mxu1  ;;  %v5616_v63 = vld [vmem:[%s17111_s1 + $0xf8] sm:$0xff] }
 0x429   : > { %v4241_v41 = vmax.f32 %v3694_v58, %v4210_v54 }
 0x42b   : > { %v11628_v3 = vpop.f32.mrb[82].mxu1 }
 0x42c   : > { %v4244_v28 = vmax.f32 %v15611_v36, %v11628_v3  ;;  %v4220_v29 = vpop.f32.mrb[83].mxu1 }
 0x42d   : > { %v4243_v44 = vmax.f32 %v15615_v50, %v4220_v29 }
 0x45f   : > { %v11695_v55 = vpop.f32.mrb[84].mxu1 }
 0x460   : > { %v4762_v59 = vmax.f32 %v4238_v11, %v11695_v55  ;;  %v4714_v19 = vpop.f32.mrb[85].mxu1 }
 0x461   : > { %v4761_v15 = vmax.f32 %v4237_v8, %v4714_v19 }
 0x462   : > { %v5286_v39 = vmax.f32 %v4762_v59, %v11771_v53 }
 0x463   : > { %v5285_v27 = vmax.f32 %v4761_v15, %v5238_v35  ;;  %v11698_v56 = vpop.f32.mrb[86].mxu1 }
 0x464   : > { %v5299_v48 = vadd.f32 %v10030_v21, %v5286_v39  ;;  %v4764_v31 = vmax.f32 %v4240_v0, %v11698_v56  ;;  %v4724_v57 = vpop.f32.mrb[87].mxu1 }
 0x465   : > { %v5298_v43 = vadd.f32 %v10030_v21, %v5285_v27  ;;  %v4763_v4 = vmax.f32 %v4239_v13, %v4724_v57 }
 0x466   : > { %v5307_v42 = vmax.f32 %v5299_v48, 0.0  ;;  %v5288_v7 = vmax.f32 %v4764_v31, %v11774_v62 }
 0x467   : > { %v5306_v22 = vmax.f32 %v5298_v43, 0.0  ;;  %v5287_v40 = vmax.f32 %v4763_v4, %v15599_v2  ;;  %v11701_v12 = vpop.f32.mrb[88].mxu1  ;;  %v5799_v43 = vld [vmem:[%s17111_s1 + $0x108] sm:$0xff]  ;;  %v5800_v4 = vld [vmem:[%s17111_s1 + $0x110] sm:$0xff] }
 0x468   : > { %5316 = vst.msk [vmem:[#allocation4 + $0x9] sm:$0xff] %vm3078_vm4, %v5307_v42  ;;  %v5301_v32 = vadd.f32 %v10030_v21, %v5288_v7  ;;  %v4766_v46 = vmax.f32 %v4242_v10, %v11701_v12  ;;  %v4734_v47 = vpop.f32.mrb[89].mxu1  ;;  %v5617_v10 = vld [vmem:[%s17111_s1 + $0x100] sm:$0xff]  ;;  %v15701_v42 = vpack.c.bf16 %v5800_v4, %v5799_v43  ;;  %v5801_v7 = vld [vmem:[%s17111_s1 + $0x118] sm:$0xff]  ;;  %v5803_v12 = vld [vmem:[%s17111_s1 + $0x128] sm:$0xff] }
 0x469   : > { %5315 = vst.msk [vmem:[#allocation4 + $0x1] sm:$0xff] %vm3078_vm4, %v5306_v22  ;;  %v5300_v37 = vadd.f32 %v10030_v21, %v5287_v40  ;;  %v4765_v51 = vmax.f32 %v4241_v41, %v4734_v47  ;;  %v13109_v41 = vpack.c.bf16 %v5617_v10, %v5616_v63  ;;  %v5802_v22 = vld [vmem:[%s17111_s1 + $0x120] sm:$0xff]  ;;  %v5805_v47 = vld [vmem:[%s17111_s1 + $0x138] sm:$0xff]  ;;  %v5973_v63 = vld [vmem:[%s17111_s1 + $0x148] sm:$0xff] }
 0x46a   : > { %v5309_v53 = vmax.f32 %v5301_v32, 0.0  ;;  %v5290_v6 = vmax.f32 %v4766_v46, %v15601_v24  ;;  %v5335_v24 = vld [vmem:[%s17111_s1 + $0xc0] sm:$0xff]  ;;  %13170 = vmatprep.subr.bf16.mxu0 %v15701_v42  ;;  %v15717_v40 = vpack.c.bf16 %v5802_v22, %v5801_v7  ;;  %v5804_v32 = vld [vmem:[%s17111_s1 + $0x130] sm:$0xff]  ;;  %v6068_v4 = vld [vmem:[%s17111_s1 + $0x188] sm:$0xff] }
 0x46b   : > { %v5308_v35 = vmax.f32 %v5300_v37, 0.0  ;;  %v5289_v23 = vmax.f32 %v4765_v51, %v15603_v14  ;;  %v11704_v62 = vpop.f32.mrb[90].mxu1  ;;  %v13101_v25 = vpack.c.bf16 %v5335_v24, %v5334_v33  ;;  %13172 = vmatpush3.bf16.msra.mxu0 %v15701_v42  ;;  %v15729_v46 = vpack.c.bf16 %v5804_v32, %v5803_v12  ;;  %v5806_v37 = vld [vmem:[%s17111_s1 + $0x140] sm:$0xff]  ;;  %v6069_v7 = vld [vmem:[%s17111_s1 + $0x190] sm:$0xff]  ;;  %v6070_v12 = vld [vmem:[%s17111_s1 + $0x198] sm:$0xff] }
 0x46c   : > { %5318 = vst.msk [vmem:[#allocation4 + $0x19] sm:$0xff] %vm3078_vm4, %v5309_v53  ;;  %v5303_v20 = vadd.f32 %v10030_v21, %v5290_v6  ;;  %v4768_v2 = vmax.f32 %v4244_v28, %v11704_v62  ;;  %v4744_v9 = vpop.f32.mrb[91].mxu1  ;;  %13174 = vmatprep.subr.bf16.mxu0 %v15717_v40  ;;  %v15737_v51 = vpack.c.bf16 %v5806_v37, %v5805_v47  ;;  %v5792_v53 = vld [vmem:[%s17111_s1 + $0x1c8] sm:$0xff]  ;;  %v5793_v6 = vld [vmem:[%s17111_s1 + $0x1d0] sm:$0xff]  ;;  %v6071_v32 = vld [vmem:[%s17111_s1 + $0x1a0] sm:$0xff] }
 0x46d   : > { %5317 = vst.msk [vmem:[#allocation4 + $0x11] sm:$0xff] %vm3078_vm4, %v5308_v35  ;;  %v5302_v58 = vadd.f32 %v10030_v21, %v5289_v23  ;;  %v4767_v1 = vmax.f32 %v4243_v44, %v4744_v9  ;;  %v15751_v35 = vpack.c.bf16 %v5793_v6, %v5792_v53  ;;  %v10055_v23 = vld [vmem:[%s17112_s2 + $0x3] ss:$0 sm:$0xff]  ;;  %v15844_v22 = vpack.c.bf16 %v6069_v7, %v6068_v4  ;;  %v6072_v53 = vld [vmem:[%s17111_s1 + $0x1a8] sm:$0xff]  ;;  %v6073_v6 = vld [vmem:[%s17111_s1 + $0x1b0] sm:$0xff] }
 0x46e   : > { %v5311_v45 = vmax.f32 %v5303_v20, 0.0  ;;  %v5292_v14 = vmax.f32 %v4768_v2, %v15613_v26  ;;  %v5615_v26 = vld [vmem:[%s17111_s1 + $0xf0] sm:$0xff]  ;;  %v15856_v37 = vpack.c.bf16 %v6071_v32, %v6070_v12  ;;  %v10088_v7 = vld [vmem:[%s17112_s2 + $0x4] ss:$0 sm:$0xff] }
 0x46f   : > { %v5310_v36 = vmax.f32 %v5302_v58, 0.0  ;;  %v5291_v50 = vmax.f32 %v4767_v1, %v15617_v61  ;;  %v5337_v38 = vld [vmem:[#allocation4 + $0x9] sm:$0xff]  ;;  %v13105_v8 = vpack.c.bf16 %v5615_v26, %v5614_v49  ;;  %13176 = vmatpush3.bf16.msra.mxu0 %v15717_v40 }
 0x470   : > { %5320 = vst.msk [vmem:[#allocation4 + $0x29] sm:$0xff] %vm3078_vm4, %v5311_v45  ;;  %v5305_v16 = vadd.f32 %v10030_v21, %v5292_v14  ;;  %v5336_v30 = vld [vmem:[#allocation4 + $0x1] sm:$0xff]  ;;  %13178 = vmatprep.subr.bf16.mxu0 %v15729_v46 }
 0x471   : > { %5319 = vst.msk [vmem:[#allocation4 + $0x21] sm:$0xff] %vm3078_vm4, %v5310_v36  ;;  %v5304_v18 = vadd.f32 %v10030_v21, %v5291_v50  ;;  %11789 = vmatprep.mubr.msk.f32.mxu1 %vm3078_vm4, %v5336_v30  ;;  %v5324_v54 = vld [vmem:[#allocation4] sm:$0xff]  ;;  %v5325_v3 = vld [vmem:[#allocation4 + $0x8] sm:$0xff] }
 0x472   : > { %v5313_v61 = vmax.f32 %v5305_v16, 0.0  ;;  %11790 = vmatmul.mubr.msk.f32.vlgmr.msra.gmra.mrb[92].mxu1 %vm3078_vm4, %v5337_v38  ;;  %v5606_v21 = vld [vmem:[#allocation4 + $0x2] sm:$0xff] }
 0x473   : > { %v5312_v11 = vmax.f32 %v5304_v18, 0.0  ;;  %13100 = vmatpush3.bf16.msra.mxu1 %v15631_v5  ;;  %v5339_v60 = vld [vmem:[#allocation4 + $0x19] sm:$0xff]  ;;  %13180 = vmatpush3.bf16.msra.mxu0 %v15729_v46 }
 0x474   : > { %5322 = vst.msk [vmem:[#allocation4 + $0x39] sm:$0xff] %vm3078_vm4, %v5313_v61  ;;  %v5338_v17 = vld [vmem:[#allocation4 + $0x11] sm:$0xff]  ;;  %13102 = vmatprep.subr.bf16.mxu1 %v13101_v25  ;;  %13182 = vmatprep.subr.bf16.mxu0 %v15737_v51 }
 0x475   : > { %5321 = vst.msk [vmem:[#allocation4 + $0x31] sm:$0xff] %vm3078_vm4, %v5312_v11  ;;  %11792 = vmatprep.mubr.msk.f32.mxu1 %vm3078_vm4, %v5338_v17  ;;  %v5326_v28 = vld [vmem:[#allocation4 + $0x10] sm:$0xff]  ;;  %v5327_v29 = vld [vmem:[#allocation4 + $0x18] sm:$0xff] }
 0x476   : > { %11793 = vmatmul.mubr.msk.f32.gmra.mrb[94].mxu1 %vm3078_vm4, %v5339_v60  ;;  %v5607_v15 = vld [vmem:[#allocation4 + $0xa] sm:$0xff]  ;;  %v5608_v39 = vld [vmem:[#allocation4 + $0x12] sm:$0xff] }
 0x477   : > { %13104 = vmatpush3.bf16.msra.mxu1 %v13101_v25  ;;  %v5341_v34 = vld [vmem:[#allocation4 + $0x29] sm:$0xff]  ;;  %13184 = vmatpush3.bf16.msra.mxu0 %v15737_v51 }
 0x478   : > { %v5340_v0 = vld [vmem:[#allocation4 + $0x21] sm:$0xff]  ;;  %13106 = vmatprep.subr.bf16.mxu1 %v13105_v8  ;;  %13186 = vmatprep.subr.bf16.mxu0 %v15751_v35 }
 0x479   : > { %11795 = vmatprep.mubr.msk.f32.mxu1 %vm3078_vm4, %v5340_v0  ;;  %v5328_v44 = vld [vmem:[#allocation4 + $0x20] sm:$0xff]  ;;  %v5329_v55 = vld [vmem:[#allocation4 + $0x28] sm:$0xff] }
 0x47a   : > { %11796 = vmatmul.mubr.msk.f32.gmra.mrb[96].mxu1 %vm3078_vm4, %v5341_v34  ;;  %v5609_v27 = vld [vmem:[#allocation4 + $0x1a] sm:$0xff]  ;;  %v5610_v56 = vld [vmem:[#allocation4 + $0x22] sm:$0xff] }
 0x47b   : > { %v5343_v13 = vld [vmem:[#allocation4 + $0x39] sm:$0xff] }
 0x47c   : > { %v5342_v5 = vld [vmem:[#allocation4 + $0x31] sm:$0xff]  ;;  %v5613_v57 = vld [vmem:[#allocation4 + $0x3a] sm:$0xff] }
 0x47d   : > { %11798 = vmatprep.mubr.msk.f32.mxu1 %vm3078_vm4, %v5342_v5  ;;  %v5330_v59 = vld [vmem:[#allocation4 + $0x30] sm:$0xff]  ;;  %v5331_v19 = vld [vmem:[#allocation4 + $0x38] sm:$0xff]  ;;  %v5794_v5 = vld [vmem:[%s17111_s1 + $0x1d8] sm:$0xff] }
 0x47e   : > { %11799 = vmatmul.mubr.msk.f32.gmra.mrb[98].mxu1 %vm3078_vm4, %v5343_v13  ;;  %v5611_v48 = vld [vmem:[#allocation4 + $0x2a] sm:$0xff]  ;;  %v5612_v31 = vld [vmem:[#allocation4 + $0x32] sm:$0xff] }
 0x47f   : > { %11809 = vmatprep.mubr.msk.f32.mxu1 %vm3078_vm4, %v5324_v54  ;;  %v5795_v13 = vld [vmem:[%s17111_s1 + $0x1e0] sm:$0xff] }
 0x482   : > { %11810 = vmatmul.mubr.msk.f32.vlgmr.msra.gmra.mrb[92].mxu1 %vm3078_vm4, %v5325_v3  ;;  %v5974_v3 = vld [vmem:[%s17111_s1 + $0x150] sm:$0xff] }
 0x483   : > { %13108 = vmatpush3.bf16.msra.mxu1 %v13105_v8  ;;  %11812 = vmatprep.mubr.msk.f32.mxu1 %vm3078_vm4, %v5326_v28  ;;  %v5789_v28 = vld [vmem:[#allocation4 + $0x1] ss:$4 sm:$0xff] }
 0x484   : > { %13110 = vmatprep.subr.bf16.mxu1 %v13109_v41 }
 0x486   : > { %11813 = vmatmul.mubr.msk.f32.gmra.mrb[94].mxu1 %vm3078_vm4, %v5327_v29  ;;  %v6160_v29 = vld [vmem:[#allocation4 + $0x2] ss:$4 sm:$0xff] }
 0x487   : > { %11815 = vmatprep.mubr.msk.f32.mxu1 %vm3078_vm4, %v5328_v44  ;;  %13112 = vmatpush3.bf16.msra.mxu1 %v13109_v41  ;;  %v15779_v41 = vpack.c.bf16 %v5795_v13, %v5794_v5  ;;  %v15790_v44 = vpack.c.bf16 %v5974_v3, %v5973_v63  ;;  %v7451_v13 = vld [vmem:[%s17111_s1 + $0x2b8] sm:$0xff]  ;;  %v7452_v63 = vld [vmem:[%s17111_s1 + $0x2c0] sm:$0xff] }
 0x488   : > { %13114 = vmatprep.subr.bf16.mxu1 %v15701_v42 }
 0x48a   : > { %11816 = vmatmul.mubr.msk.f32.gmra.mrb[96].mxu1 %vm3078_vm4, %v5329_v55  ;;  %v5975_v55 = vld [vmem:[%s17111_s1 + $0x158] sm:$0xff] }
 0x48b   : > { %11818 = vmatprep.mubr.msk.f32.mxu1 %vm3078_vm4, %v5330_v59  ;;  %v5976_v59 = vld [vmem:[%s17111_s1 + $0x160] sm:$0xff] }
 0x48e   : > { %11819 = vmatmul.mubr.msk.f32.gmra.mrb[98].mxu1 %vm3078_vm4, %v5331_v19  ;;  %v5791_v19 = vld [vmem:[#allocation4 + $0x21] ss:$4 sm:$0xff] }
 0x48f   : > { %11829 = vmatprep.mubr.msk.f32.mxu1 %vm3078_vm4, %v5606_v21  ;;  %v6162_v21 = vld [vmem:[#allocation4 + $0x22] ss:$4 sm:$0xff] }
 0x492   : > { %11830 = vmatmul.mubr.msk.f32.vlgmr.msra.gmra.mrb[92].mxu1 %vm3078_vm4, %v5607_v15  ;;  %v15804_v15 = vpack.c.bf16 %v5976_v59, %v5975_v55  ;;  %v7457_v55 = vld [vmem:[%s17111_s1 + $0x2e8] sm:$0xff]  ;;  %v7458_v59 = vld [vmem:[%s17111_s1 + $0x2f0] sm:$0xff] }
 0x493   : > { %11832 = vmatprep.mubr.msk.f32.mxu1 %vm3078_vm4, %v5608_v39  ;;  %13116 = vmatpush3.bf16.msra.mxu1 %v15701_v42  ;;  %v5977_v39 = vld [vmem:[%s17111_s1 + $0x168] sm:$0xff] }
 0x494   : > { %13118 = vmatprep.subr.bf16.mxu1 %v15717_v40 }
 0x496   : > { %11833 = vmatmul.mubr.msk.f32.gmra.mrb[94].mxu1 %vm3078_vm4, %v5609_v27  ;;  %v5978_v27 = vld [vmem:[%s17111_s1 + $0x170] sm:$0xff] }
 0x497   : > { %11835 = vmatprep.mubr.msk.f32.mxu1 %vm3078_vm4, %v5610_v56  ;;  %13120 = vmatpush3.bf16.msra.mxu1 %v15717_v40 }
 0x498   : > { %13122 = vmatprep.subr.bf16.mxu1 %v15729_v46 }
 0x49a   : > { %11836 = vmatmul.mubr.msk.f32.gmra.mrb[96].mxu1 %vm3078_vm4, %v5611_v48  ;;  %v15818_v48 = vpack.c.bf16 %v5978_v27, %v5977_v39 }
 0x49b   : > { %11838 = vmatprep.mubr.msk.f32.mxu1 %vm3078_vm4, %v5612_v31  ;;  %13124 = vmatpush3.bf16.msra.mxu1 %v15729_v46  ;;  %v5979_v31 = vld [vmem:[%s17111_s1 + $0x178] sm:$0xff] }
 0x49c   : > { %13126 = vmatprep.subr.bf16.mxu1 %v15737_v51 }
 0x49e   : > { %11839 = vmatmul.mubr.msk.f32.gmra.mrb[98].mxu1 %vm3078_vm4, %v5613_v57  ;;  %v5980_v57 = vld [vmem:[%s17111_s1 + $0x180] sm:$0xff] }
 0x49f   : > { %13128 = vmatpush3.bf16.msra.mxu1 %v15737_v51  ;;  %v15832_v43 = vpack.c.bf16 %v5980_v57, %v5979_v31 }
 0x4a0   : > { %13130 = vmatprep.subr.bf16.mxu1 %v15751_v35 }
 0x565   : > { %v11831_v62 = vpop.f32.mrb[92].mxu1 }
 0x566   : > { %v5761_v20 = vadd.f32 %v11831_v62, %v10055_v23  ;;  %v5708_v2 = vpop.f32.mrb[93].mxu1  ;;  %v15870_v62 = vpack.c.bf16 %v6073_v6, %v6072_v53 }
 0x567   : > { %v5760_v9 = vadd.f32 %v10055_v23, %v5708_v2  ;;  %v6075_v2 = vld [vmem:[%s17111_s1 + $0x1c0] sm:$0xff] }
 0x568   : > { %v5769_v58 = vmax.f32 %v5761_v20, 0.0  ;;  %v6074_v20 = vld [vmem:[%s17111_s1 + $0x1b8] sm:$0xff] }
 0x569   : > { %v5768_v1 = vmax.f32 %v5760_v9, 0.0  ;;  %v11834_v33 = vpop.f32.mrb[94].mxu1  ;;  %v15883_v9 = vpack.c.bf16 %v6075_v2, %v6074_v20  ;;  %v7155_v20 = vld [vmem:[%s17111_s1 + $0x200] sm:$0xff] }
 0x56a   : > { %5780 = vst.msk [vmem:[#allocation5 + $0x9] sm:$0xff] %vm5778_vm6, %v5769_v58  ;;  %v5763_v24 = vadd.f32 %v11834_v33, %v10055_v23  ;;  %v5718_v45 = vpop.f32.mrb[95].mxu1 }
 0x56b   : > { %5779 = vst.msk [vmem:[#allocation5 + $0x1] sm:$0xff] %vm5778_vm6, %v5768_v1  ;;  %v5762_v14 = vadd.f32 %v10055_v23, %v5718_v45  ;;  %v7162_v45 = vld [vmem:[%s17111_s1 + $0x228] sm:$0xff] }
 0x56c   : > { %v5771_v36 = vmax.f32 %v5763_v24, 0.0 }
 0x56d   : > { %v5770_v50 = vmax.f32 %v5762_v14, 0.0  ;;  %v11837_v16 = vpop.f32.mrb[96].mxu1  ;;  %v7163_v14 = vld [vmem:[%s17111_s1 + $0x230] sm:$0xff] }
 0x56e   : > { %5782 = vst.msk [vmem:[#allocation5 + $0x19] sm:$0xff] %vm5778_vm6, %v5771_v36  ;;  %v5765_v30 = vadd.f32 %v11837_v16, %v10055_v23  ;;  %v5728_v25 = vpop.f32.mrb[97].mxu1  ;;  %v13337_v36 = vpack.c.bf16 %v7163_v14, %v7162_v45  ;;  %v7165_v16 = vld [vmem:[%s17111_s1 + $0x240] sm:$0xff]  ;;  %v7335_v45 = vld [vmem:[%s17111_s1 + $0x270] sm:$0xff] }
 0x56f   : > { %5781 = vst.msk [vmem:[#allocation5 + $0x11] sm:$0xff] %vm5778_vm6, %v5770_v50  ;;  %v5764_v18 = vadd.f32 %v10055_v23, %v5728_v25  ;;  %v7164_v50 = vld [vmem:[%s17111_s1 + $0x238] sm:$0xff]  ;;  %v7166_v25 = vld [vmem:[%s17111_s1 + $0x248] sm:$0xff] }
 0x570   : > { %v5773_v38 = vmax.f32 %v5765_v30, 0.0  ;;  %v13341_v30 = vpack.c.bf16 %v7165_v16, %v7164_v50  ;;  %v7337_v50 = vld [vmem:[%s17111_s1 + $0x280] sm:$0xff] }
 0x571   : > { %v5772_v49 = vmax.f32 %v5764_v18, 0.0  ;;  %v11840_v26 = vpop.f32.mrb[98].mxu1  ;;  %v7167_v18 = vld [vmem:[%s17111_s1 + $0x250] sm:$0xff] }
 0x572   : > { %5784 = vst.msk [vmem:[#allocation5 + $0x29] sm:$0xff] %vm5778_vm6, %v5773_v38  ;;  %v5767_v61 = vadd.f32 %v11840_v26, %v10055_v23  ;;  %v5738_v11 = vpop.f32.mrb[99].mxu1  ;;  %v13345_v38 = vpack.c.bf16 %v7167_v18, %v7166_v25  ;;  %v7169_v26 = vld [vmem:[%s17111_s1 + $0x260] sm:$0xff]  ;;  %v7338_v25 = vld [vmem:[%s17111_s1 + $0x288] sm:$0xff]  ;;  %v7339_v18 = vld [vmem:[%s17111_s1 + $0x290] sm:$0xff] }
 0x573   : > { %5783 = vst.msk [vmem:[#allocation5 + $0x21] sm:$0xff] %vm5778_vm6, %v5772_v49  ;;  %v5766_v17 = vadd.f32 %v10055_v23, %v5738_v11  ;;  %v7168_v49 = vld [vmem:[%s17111_s1 + $0x258] sm:$0xff]  ;;  %v7152_v11 = vld [vmem:[%s17111_s1 + $0x1e8] sm:$0xff] }
 0x574   : > { %v5775_v8 = vmax.f32 %v5767_v61, 0.0  ;;  %v13349_v61 = vpack.c.bf16 %v7169_v26, %v7168_v49  ;;  %v13377_v49 = vpack.c.bf16 %v7339_v18, %v7338_v25  ;;  %v7340_v26 = vld [vmem:[%s17111_s1 + $0x298] sm:$0xff]  ;;  %v7622_v18 = vld [vmem:[%s17111_s1 + $0x388] sm:$0xff] }
 0x575   : > { %v5774_v60 = vmax.f32 %v5766_v17, 0.0  ;;  %v7153_v17 = vld [vmem:[%s17111_s1 + $0x1f0] sm:$0xff] }
 0x576   : > { %5786 = vst.msk [vmem:[#allocation5 + $0x39] sm:$0xff] %vm5778_vm6, %v5775_v8  ;;  %v5796_v0 = vld [vmem:[#allocation5] ss:$4 sm:$0xff]  ;;  %v5970_v34 = vld [vmem:[#allocation5 + $0x1] ss:$4 sm:$0xff]  ;;  %v13353_v8 = vpack.c.bf16 %v7153_v17, %v7152_v11 }
 0x577   : > { %5785 = vst.msk [vmem:[#allocation5 + $0x31] sm:$0xff] %vm5778_vm6, %v5774_v60  ;;  %11857 = vmatprep.mubr.msk.f32.mxu1 %vm5778_vm6, %v5796_v0  ;;  %11925 = vmatprep.mubr.msk.f32.mxu0 %vm5778_vm6, %v5970_v34  ;;  %v6065_v56 = vld [vmem:[#allocation5 + $0x2] ss:$4 sm:$0xff]  ;;  %v6397_v23 = vld [vmem:[#allocation5 + $0x3] ss:$4 sm:$0xff] }
 0x578   : > { %v7449_v60 = vld [vmem:[%s17111_s1 + $0x2a8] sm:$0xff]  ;;  %v7450_v0 = vld [vmem:[%s17111_s1 + $0x2b0] sm:$0xff] }
 0x579   : > { %v16003_v5 = vpack.c.bf16 %v7450_v0, %v7449_v60  ;;  %v7460_v60 = vld [vmem:[%s17111_s1 + $0x300] sm:$0xff] }
 0x57a   : > { %v7049_v33 = vld [vmem:[#allocation5 + $0x5] ss:$4 sm:$0xff] }
 0x57e   : > { %v5798_v10 = vld [vmem:[#allocation5 + $0x20] ss:$4 sm:$0xff]  ;;  %v5972_v54 = vld [vmem:[#allocation5 + $0x21] ss:$4 sm:$0xff]  ;;  %v6067_v47 = vld [vmem:[#allocation5 + $0x22] ss:$4 sm:$0xff] }
 0x57f   : > { %11858 = vmatmul.mubr.msk.f32.vlgmr.msra.gmra.mrb[100].mxu1 %vm5778_vm6, %v5798_v10  ;;  %11926 = vmatmul.mubr.msk.f32.vlgmr.msra.gmra.mrb[100].mxu0 %vm5778_vm6, %v5972_v54  ;;  %v6399_v58 = vld [vmem:[#allocation5 + $0x23] ss:$4 sm:$0xff]  ;;  %v6725_v1 = vld [vmem:[#allocation5 + $0x24] ss:$4 sm:$0xff]  ;;  %v7051_v24 = vld [vmem:[#allocation5 + $0x25] ss:$4 sm:$0xff]  ;;  %v16012_v10 = vpack.c.bf16 %v7452_v63, %v7451_v13 }
 0x580   : > { %13132 = vmatpush3.bf16.msra.mxu1 %v15751_v35  ;;  %13188 = vmatpush3.bf16.msra.mxu0 %v15751_v35  ;;  %v7461_v13 = vld [vmem:[%s17111_s1 + $0x308] sm:$0xff]  ;;  %v7462_v63 = vld [vmem:[%s17111_s1 + $0x310] sm:$0xff] }
 0x581   : > { %11868 = vmatprep.mubr.msk.f32.mxu1 %vm3078_vm4, %v5789_v28  ;;  %11936 = vmatprep.mubr.msk.f32.mxu0 %vm3078_vm4, %v6160_v29  ;;  %v7455_v28 = vld [vmem:[%s17111_s1 + $0x2d8] sm:$0xff]  ;;  %v7456_v29 = vld [vmem:[%s17111_s1 + $0x2e0] sm:$0xff] }
 0x582   : > { %13134 = vmatprep.subr.bf16.mxu1 %v15779_v41  ;;  %13190 = vmatprep.subr.bf16.mxu0 %v15779_v41 }
 0x584   : > { %13136 = vmatpush3.bf16.msra.mxu1 %v15779_v41  ;;  %13192 = vmatpush3.bf16.msra.mxu0 %v15779_v41 }
 0x585   : > { %13138 = vmatprep.subr.bf16.mxu1 %v15790_v44  ;;  %13194 = vmatprep.subr.bf16.mxu0 %v15790_v44 }
 0x587   : > { %11869 = vmatmul.mubr.msk.f32.vlgmr.msra.gmra.mrb[100].mxu1 %vm3078_vm4, %v5791_v19  ;;  %11937 = vmatmul.mubr.msk.f32.vlgmr.msra.gmra.mrb[100].mxu0 %vm3078_vm4, %v6162_v21  ;;  %v16042_v19 = vpack.c.bf16 %v7458_v59, %v7457_v55  ;;  %v10095_v55 = vld [vmem:[%s17112_s2 + $0x5] ss:$0 sm:$0xff] }
 0x588   : > { %13140 = vmatpush3.bf16.msra.mxu1 %v15790_v44  ;;  %13196 = vmatpush3.bf16.msra.mxu0 %v15790_v44 }
 0x589   : > { %11887 = vmatprep.mubr.msk.f32.mxu1 %vm5778_vm6, %v5970_v34  ;;  %11955 = vmatprep.mubr.msk.f32.mxu0 %vm5778_vm6, %v6065_v56  ;;  %v14262_v34 = vmov 0.0|0.0  }
 0x58a   : > { %13142 = vmatprep.subr.bf16.mxu1 %v15804_v15  ;;  %13198 = vmatprep.subr.bf16.mxu0 %v15804_v15 }
 0x58c   : > { %13144 = vmatpush3.bf16.msra.mxu1 %v15804_v15  ;;  %13200 = vmatpush3.bf16.msra.mxu0 %v15804_v15 }
 0x58d   : > { %13146 = vmatprep.subr.bf16.mxu1 %v15818_v48  ;;  %13202 = vmatprep.subr.bf16.mxu0 %v15818_v48 }
 0x590   : > { %13148 = vmatpush3.bf16.msra.mxu1 %v15818_v48  ;;  %13204 = vmatpush3.bf16.msra.mxu0 %v15818_v48 }
 0x591   : > { %13150 = vmatprep.subr.bf16.mxu1 %v15832_v43  ;;  %13206 = vmatprep.subr.bf16.mxu0 %v15832_v43 }
 0x594   : > { %13152 = vmatpush3.bf16.msra.mxu1 %v15832_v43  ;;  %13208 = vmatpush3.bf16.msra.mxu0 %v15832_v43 }
 0x595   : > { %13154 = vmatprep.subr.bf16.mxu1 %v15844_v22  ;;  %13210 = vmatprep.subr.bf16.mxu0 %v15844_v22 }
 0x597   : > { %11888 = vmatmul.mubr.msk.f32.vlgmr.msra.gmra.mrb[100].mxu1 %vm5778_vm6, %v5972_v54  ;;  %11956 = vmatmul.mubr.msk.f32.vlgmr.msra.gmra.mrb[100].mxu0 %vm5778_vm6, %v6067_v47  ;;  %v7453_v54 = vld [vmem:[%s17111_s1 + $0x2c8] sm:$0xff] }
 0x598   : > { %13156 = vmatpush3.bf16.msra.mxu1 %v15844_v22  ;;  %11906 = vmatprep.mubr.msk.f32.mxu1 %vm5778_vm6, %v6065_v56 }
 0x599   : > { %13212 = vmatpush3.bf16.msra.mxu0 %v15844_v22  ;;  %11974 = vmatprep.mubr.msk.f32.mxu0 %vm5778_vm6, %v6397_v23 }
 0x59a   : > { %13158 = vmatprep.subr.bf16.mxu1 %v15856_v37  ;;  %13214 = vmatprep.subr.bf16.mxu0 %v15856_v37 }
 0x59c   : > { %13160 = vmatpush3.bf16.msra.mxu1 %v15856_v37 }
 0x59d   : > { %13216 = vmatpush3.bf16.msra.mxu0 %v15856_v37  ;;  %13162 = vmatprep.subr.bf16.mxu1 %v15870_v62 }
 0x59e   : > { %13218 = vmatprep.subr.bf16.mxu0 %v15870_v62 }
 0x5a0   : > { %13164 = vmatpush3.bf16.msra.mxu1 %v15870_v62 }
 0x5a1   : > { %13220 = vmatpush3.bf16.msra.mxu0 %v15870_v62  ;;  %13166 = vmatprep.subr.bf16.mxu1 %v15883_v9 }
 0x5a2   : > { %13222 = vmatprep.subr.bf16.mxu0 %v15883_v9 }
 0x5a4   : > { %13168 = vmatpush3.bf16.msra.mxu1 %v15883_v9 }
 0x5a5   : > { %13224 = vmatpush3.bf16.msra.mxu0 %v15883_v9  ;;  %13226 = vmatprep.subr.bf16.mxu1 %v15701_v42 }
 0x5a6   : > { %13282 = vmatprep.subr.bf16.mxu0 %v15701_v42 }
 0x5a7   : > { %11907 = vmatmul.mubr.msk.f32.vlgmr.msra.gmra.mrb[100].mxu1 %vm5778_vm6, %v6067_v47 }
 0x5a8   : > { %11975 = vmatmul.mubr.msk.f32.vlgmr.msra.gmra.mrb[100].mxu0 %vm5778_vm6, %v6399_v58  ;;  %13228 = vmatpush3.bf16.msra.mxu1 %v15701_v42 }
 0x5a9   : > { %11993 = vmatprep.mubr.msk.f32.mxu1 %vm5778_vm6, %v6065_v56  ;;  %13284 = vmatpush3.bf16.msra.mxu0 %v15701_v42  ;;  %v6486_v42 = vld [vmem:[#allocation4 + $0x3] ss:$4 sm:$0xff] }
 0x5aa   : > { %12061 = vmatprep.mubr.msk.f32.mxu0 %vm5778_vm6, %v6397_v23  ;;  %13230 = vmatprep.subr.bf16.mxu1 %v15717_v40 }
 0x5ab   : > { %13286 = vmatprep.subr.bf16.mxu0 %v15717_v40 }
 0x5ac   : > { %13232 = vmatpush3.bf16.msra.mxu1 %v15717_v40 }
 0x5ad   : > { %13288 = vmatpush3.bf16.msra.mxu0 %v15717_v40  ;;  %13234 = vmatprep.subr.bf16.mxu1 %v15729_v46  ;;  %v6812_v40 = vld [vmem:[#allocation4 + $0x4] ss:$4 sm:$0xff] }
 0x5ae   : > { %13290 = vmatprep.subr.bf16.mxu0 %v15729_v46 }
 0x5b0   : > { %13236 = vmatpush3.bf16.msra.mxu1 %v15729_v46 }
 0x5b1   : > { %13292 = vmatpush3.bf16.msra.mxu0 %v15729_v46  ;;  %13238 = vmatprep.subr.bf16.mxu1 %v15737_v51  ;;  %v6488_v46 = vld [vmem:[#allocation4 + $0x23] ss:$4 sm:$0xff] }
 0x5b2   : > { %13294 = vmatprep.subr.bf16.mxu0 %v15737_v51 }
 0x5b4   : > { %13240 = vmatpush3.bf16.msra.mxu1 %v15737_v51 }
 0x5b5   : > { %13296 = vmatpush3.bf16.msra.mxu0 %v15737_v51  ;;  %13242 = vmatprep.subr.bf16.mxu1 %v15751_v35  ;;  %v6814_v51 = vld [vmem:[#allocation4 + $0x24] ss:$4 sm:$0xff] }
 0x5b6   : > { %13298 = vmatprep.subr.bf16.mxu0 %v15751_v35 }
 0x5b7   : > { %11994 = vmatmul.mubr.msk.f32.vlgmr.msra.gmra.mrb[102].mxu1 %vm5778_vm6, %v6067_v47 }
 0x5b8   : > { %12062 = vmatmul.mubr.msk.f32.vlgmr.msra.gmra.mrb[102].mxu0 %vm5778_vm6, %v6399_v58  ;;  %13244 = vmatpush3.bf16.msra.mxu1 %v15751_v35 }
 0x5b9   : > { %12004 = vmatprep.mubr.msk.f32.mxu1 %vm3078_vm4, %v6486_v42  ;;  %13300 = vmatpush3.bf16.msra.mxu0 %v15751_v35  ;;  %v6723_v35 = vld [vmem:[#allocation5 + $0x4] ss:$4 sm:$0xff] }
 0x5ba   : > { %12072 = vmatprep.mubr.msk.f32.mxu0 %vm3078_vm4, %v6812_v40  ;;  %13246 = vmatprep.subr.bf16.mxu1 %v15779_v41  ;;  %v7156_v42 = vld [vmem:[%s17111_s1 + $0x208] sm:$0xff]  ;;  %v7157_v40 = vld [vmem:[%s17111_s1 + $0x210] sm:$0xff] }
 0x5bb   : > { %13302 = vmatprep.subr.bf16.mxu0 %v15779_v41 }
 0x5bc   : > { %13248 = vmatpush3.bf16.msra.mxu1 %v15779_v41 }
 0x5bd   : > { %13304 = vmatpush3.bf16.msra.mxu0 %v15779_v41  ;;  %13250 = vmatprep.subr.bf16.mxu1 %v15790_v44  ;;  %v7454_v41 = vld [vmem:[%s17111_s1 + $0x2d0] sm:$0xff] }
 0x5be   : > { %13306 = vmatprep.subr.bf16.mxu0 %v15790_v44  ;;  %v16022_v3 = vpack.c.bf16 %v7454_v41, %v7453_v54  ;;  %v16129_v54 = vpack.c.bf16 %v7462_v63, %v7461_v13  ;;  %v7463_v41 = vld [vmem:[%s17111_s1 + $0x318] sm:$0xff]  ;;  %v7702_v63 = vld [vmem:[%s17111_s1 + $0x3c0] sm:$0xff] }
 0x5bf   : > { %12005 = vmatmul.mubr.msk.f32.vlgmr.msra.gmra.mrb[102].mxu1 %vm3078_vm4, %v6488_v46  ;;  %v7701_v13 = vld [vmem:[%s17111_s1 + $0x3b8] sm:$0xff] }
 0x5c0   : > { %12073 = vmatmul.mubr.msk.f32.vlgmr.msra.gmra.mrb[102].mxu0 %vm3078_vm4, %v6814_v51  ;;  %13252 = vmatpush3.bf16.msra.mxu1 %v15790_v44  ;;  %v13361_v51 = vpack.c.bf16 %v7157_v40, %v7156_v42 }
 0x5c1   : > { %12023 = vmatprep.mubr.msk.f32.mxu1 %vm5778_vm6, %v6397_v23  ;;  %13308 = vmatpush3.bf16.msra.mxu0 %v15790_v44  ;;  %v16032_v44 = vpack.c.bf16 %v7456_v29, %v7455_v28  ;;  %v7464_v28 = vld [vmem:[%s17111_s1 + $0x320] sm:$0xff] }
 0x5c2   : > { %12091 = vmatprep.mubr.msk.f32.mxu0 %vm5778_vm6, %v6723_v35  ;;  %13254 = vmatprep.subr.bf16.mxu1 %v15804_v15  ;;  %v16139_v29 = vpack.c.bf16 %v7464_v28, %v7463_v41  ;;  %v16331_v28 = vpack.c.bf16 %v7702_v63, %v7701_v13  ;;  %v8696_v63 = vld [vmem:[%s17111_s1 + $0x548] sm:$0xff] }
 0x5c3   : > { %13310 = vmatprep.subr.bf16.mxu0 %v15804_v15 }
 0x5c4   : > { %13256 = vmatpush3.bf16.msra.mxu1 %v15804_v15 }
 0x5c5   : > { %13312 = vmatpush3.bf16.msra.mxu0 %v15804_v15  ;;  %13258 = vmatprep.subr.bf16.mxu1 %v15818_v48 }
 0x5c6   : > { %13314 = vmatprep.subr.bf16.mxu0 %v15818_v48 }
 0x5c8   : > { %13260 = vmatpush3.bf16.msra.mxu1 %v15818_v48 }
 0x5c9   : > { %13316 = vmatpush3.bf16.msra.mxu0 %v15818_v48  ;;  %13262 = vmatprep.subr.bf16.mxu1 %v15832_v43 }
 0x5ca   : > { %13318 = vmatprep.subr.bf16.mxu0 %v15832_v43 }
 0x5cc   : > { %13264 = vmatpush3.bf16.msra.mxu1 %v15832_v43 }
 0x5cd   : > { %13320 = vmatpush3.bf16.msra.mxu0 %v15832_v43  ;;  %13266 = vmatprep.subr.bf16.mxu1 %v15844_v22 }
 0x5ce   : > { %13322 = vmatprep.subr.bf16.mxu0 %v15844_v22 }
 0x5cf   : > { %12024 = vmatmul.mubr.msk.f32.vlgmr.msra.gmra.mrb[102].mxu1 %vm5778_vm6, %v6399_v58 }
 0x5d0   : > { %12092 = vmatmul.mubr.msk.f32.vlgmr.msra.gmra.mrb[102].mxu0 %vm5778_vm6, %v6725_v1  ;;  %13268 = vmatpush3.bf16.msra.mxu1 %v15844_v22 }
 0x5d1   : > { %12042 = vmatprep.mubr.msk.f32.mxu1 %vm5778_vm6, %v6723_v35  ;;  %13324 = vmatpush3.bf16.msra.mxu0 %v15844_v22  ;;  %v7158_v35 = vld [vmem:[%s17111_s1 + $0x218] sm:$0xff] }
 0x5d2   : > { %12110 = vmatprep.mubr.msk.f32.mxu0 %vm5778_vm6, %v7049_v33  ;;  %13270 = vmatprep.subr.bf16.mxu1 %v15856_v37 }
 0x5d3   : > { %13326 = vmatprep.subr.bf16.mxu0 %v15856_v37 }
 0x5d4   : > { %13272 = vmatpush3.bf16.msra.mxu1 %v15856_v37 }
 0x5d5   : > { %13328 = vmatpush3.bf16.msra.mxu0 %v15856_v37  ;;  %13274 = vmatprep.subr.bf16.mxu1 %v15870_v62 }
 0x5d6   : > { %13330 = vmatprep.subr.bf16.mxu0 %v15870_v62 }
 0x5d8   : > { %13276 = vmatpush3.bf16.msra.mxu1 %v15870_v62 }
 0x5d9   : > { %13332 = vmatpush3.bf16.msra.mxu0 %v15870_v62  ;;  %13278 = vmatprep.subr.bf16.mxu1 %v15883_v9  ;;  %v7154_v62 = vld [vmem:[%s17111_s1 + $0x1f8] sm:$0xff] }
 0x5da   : > { %13334 = vmatprep.subr.bf16.mxu0 %v15883_v9 }
 0x5dc   : > { %13280 = vmatpush3.bf16.msra.mxu1 %v15883_v9 }
 0x5dd   : > { %13336 = vmatpush3.bf16.msra.mxu0 %v15883_v9  ;;  %13338 = vmatprep.subr.bf16.mxu1 %v13337_v36  ;;  %v13357_v9 = vpack.c.bf16 %v7155_v20, %v7154_v62  ;;  %v7610_v62 = vld [vmem:[%s17111_s1 + $0x328] sm:$0xff]  ;;  %v7611_v20 = vld [vmem:[%s17111_s1 + $0x330] sm:$0xff] }
 0x5de   : > { %13385 = vmatprep.subr.bf16.mxu0 %v14262_v34 }
 0x5df   : > { %12043 = vmatmul.mubr.msk.f32.vlgmr.msra.gmra.mrb[102].mxu1 %vm5778_vm6, %v6725_v1  ;;  %v7159_v1 = vld [vmem:[%s17111_s1 + $0x220] sm:$0xff] }
 0x5e0   : > { %12111 = vmatmul.mubr.msk.f32.vlgmr.msra.gmra.mrb[102].mxu0 %vm5778_vm6, %v7051_v24  ;;  %13340 = vmatpush3.bf16.msra.mxu1 %v13337_v36  ;;  %v13365_v33 = vpack.c.bf16 %v7159_v1, %v7158_v35  ;;  %v7334_v24 = vld [vmem:[%s17111_s1 + $0x268] sm:$0xff]  ;;  %v7336_v36 = vld [vmem:[%s17111_s1 + $0x278] sm:$0xff]  ;;  %v7615_v35 = vld [vmem:[%s17111_s1 + $0x350] sm:$0xff] }
 0x5e1   : > { %13342 = vmatprep.subr.bf16.mxu1 %v13341_v30  ;;  %13387 = vmatpush3.bf16.msra.mxu0 %v16003_v5  ;;  %v13369_v14 = vpack.c.bf16 %v7335_v45, %v7334_v24  ;;  %v13373_v16 = vpack.c.bf16 %v7337_v50, %v7336_v36  ;;  %v7617_v24 = vld [vmem:[%s17111_s1 + $0x360] sm:$0xff]  ;;  %v7619_v36 = vld [vmem:[%s17111_s1 + $0x370] sm:$0xff] }
 0x5e2   : > { %13388 = vmatprep.subr.bf16.mxu0 %v14262_v34  ;;  %12202 = vmatprep.mubr.msk.f32.mxu0 %vm14263_vm7, %v17176_v52 }
 0x5e4   : > { %13344 = vmatpush3.bf16.msra.mxu1 %v13341_v30 }
 0x5e5   : > { %13346 = vmatprep.subr.bf16.mxu1 %v13345_v38  ;;  %13390 = vmatpush3.bf16.msra.mxu0 %v16012_v10 }
 0x5e6   : > { %13391 = vmatprep.subr.bf16.mxu0 %v14262_v34 }
 0x5e8   : > { %13348 = vmatpush3.bf16.msra.mxu1 %v13345_v38 }
 0x5e9   : > { %13350 = vmatprep.subr.bf16.mxu1 %v13349_v61  ;;  %13393 = vmatpush3.bf16.msra.mxu0 %v16022_v3 }
 0x5ea   : > { %13394 = vmatprep.subr.bf16.mxu0 %v14262_v34 }
 0x5ec   : > { %13352 = vmatpush3.bf16.msra.mxu1 %v13349_v61  ;;  %v7341_v61 = vld [vmem:[%s17111_s1 + $0x2a0] sm:$0xff] }
 0x5ed   : > { %13354 = vmatprep.subr.bf16.mxu1 %v13353_v8  ;;  %13396 = vmatpush3.bf16.msra.mxu0 %v16032_v44  ;;  %v13381_v11 = vpack.c.bf16 %v7341_v61, %v7340_v26  ;;  %v7624_v26 = vld [vmem:[%s17111_s1 + $0x398] sm:$0xff]  ;;  %v7625_v61 = vld [vmem:[%s17111_s1 + $0x3a0] sm:$0xff] }
 0x5ee   : > { %13397 = vmatprep.subr.bf16.mxu0 %v14262_v34 }
 0x5f1   : > { %13399 = vmatpush3.bf16.msra.mxu0 %v16042_v19 }
 0x5f2   : > { %13400 = vmatprep.subr.bf16.mxu0 %v14262_v34 }
 0x67a   : > { %v11908_v21 = vpop.f32.mrb[100].mxu1 }
 0x67b   : > { %v11976_v15 = vpop.f32.mrb[100].mxu0  ;;  %v6148_v39 = vpop.f32.mrb[101].mxu1 }
 0x67c   : > { %v6484_v27 = vmax.f32 %v11908_v21, %v11976_v15  ;;  %v6472_v56 = vpop.f32.mrb[101].mxu0 }
 0x67d   : > { %v6483_v48 = vmax.f32 %v6148_v39, %v6472_v56 }
 0x6b2   : > { %v12044_v31 = vpop.f32.mrb[102].mxu1 }
 0x6b3   : > { %v6810_v57 = vmax.f32 %v6484_v27, %v12044_v31  ;;  %v12112_v43 = vpop.f32.mrb[102].mxu0  ;;  %v6798_v4 = vpop.f32.mrb[103].mxu1  ;;  %v7441_v31 = vld [vmem:[%s17111_s1 + $0x430] sm:$0xff] }
 0x6b4   : > { %v6809_v22 = vmax.f32 %v6483_v48, %v6798_v4  ;;  %v7124_v12 = vpop.f32.mrb[103].mxu0  ;;  %v7440_v48 = vld [vmem:[%s17111_s1 + $0x428] sm:$0xff]  ;;  %v7443_v4 = vld [vmem:[%s17111_s1 + $0x440] sm:$0xff] }
 0x6b5   : > { %v7136_v32 = vmax.f32 %v6810_v57, %v12112_v43  ;;  %v16160_v57 = vpack.c.bf16 %v7441_v31, %v7440_v48  ;;  %v7442_v43 = vld [vmem:[%s17111_s1 + $0x438] sm:$0xff]  ;;  %v7708_v48 = vld [vmem:[%s17111_s1 + $0x3f0] sm:$0xff] }
 0x6b6   : > { %v7135_v47 = vmax.f32 %v6809_v22, %v7124_v12  ;;  %v16173_v12 = vpack.c.bf16 %v7443_v4, %v7442_v43  ;;  %v7709_v43 = vld [vmem:[%s17111_s1 + $0x3f8] sm:$0xff]  ;;  %v7710_v4 = vld [vmem:[%s17111_s1 + $0x400] sm:$0xff] }
 0x6b7   : > { %v7143_v37 = vadd.f32 %v10088_v7, %v7136_v32  ;;  %v7444_v32 = vld [vmem:[%s17111_s1 + $0x448] sm:$0xff] }
 0x6b8   : > { %v7142_v53 = vadd.f32 %v10088_v7, %v7135_v47  ;;  %v7445_v47 = vld [vmem:[%s17111_s1 + $0x450] sm:$0xff] }
 0x6b9   : > { %v7145_v6 = vmax.f32 %v7143_v37, 0.0  ;;  %v16189_v37 = vpack.c.bf16 %v7445_v47, %v7444_v32  ;;  %v7712_v32 = vld [vmem:[%s17111_s1 + $0x410] sm:$0xff] }
 0x6ba   : > { %v7144_v23 = vmax.f32 %v7142_v53, 0.0  ;;  %v7446_v53 = vld [vmem:[%s17111_s1 + $0x458] sm:$0xff] }
 0x6bb   : > { %7148 = vst.msk [vmem:[#allocation6 + $0x9] sm:$0xff] %vm5778_vm6, %v7145_v6  ;;  %v7447_v6 = vld [vmem:[%s17111_s1 + $0x460] sm:$0xff] }
 0x6bc   : > { %7147 = vst.msk [vmem:[#allocation6 + $0x1] sm:$0xff] %vm5778_vm6, %v7144_v23  ;;  %v16201_v23 = vpack.c.bf16 %v7447_v6, %v7446_v53  ;;  %v7713_v53 = vld [vmem:[%s17111_s1 + $0x418] sm:$0xff]  ;;  %v7714_v6 = vld [vmem:[%s17111_s1 + $0x420] sm:$0xff] }
 0x6c2   : > { %v7161_v58 = vld [vmem:[#allocation6 + $0x9] sm:$0xff] }
 0x6c3   : > { %v7160_v2 = vld [vmem:[#allocation6 + $0x1] sm:$0xff]  ;;  %v7333_v17 = vld [vmem:[#allocation6 + $0xa] sm:$0xff] }
 0x6c4   : > { %12129 = vmatprep.mubr.msk.f32.mxu1 %vm5778_vm6, %v7160_v2  ;;  %v7150_v46 = vld [vmem:[#allocation6] sm:$0xff]  ;;  %v7151_v30 = vld [vmem:[#allocation6 + $0x8] sm:$0xff]  ;;  %v16213_v2 = vpack.c.bf16 %v7611_v20, %v7610_v62  ;;  %v16407_v62 = vpack.c.bf16 %v7714_v6, %v7713_v53 }
 0x6c5   : > { %12130 = vmatmul.mubr.msk.f32.vlgmr.msra.gmra.mrb[104].mxu1 %vm5778_vm6, %v7161_v58  ;;  %v7332_v38 = vld [vmem:[#allocation6 + $0x2] sm:$0xff] }
 0x6c6   : > { %13356 = vmatpush3.bf16.msra.mxu1 %v13353_v8  ;;  %12148 = vmatprep.mubr.msk.f32.mxu1 %vm5778_vm6, %v7150_v46  ;;  %v7459_v8 = vld [vmem:[%s17111_s1 + $0x2f8] sm:$0xff]  ;;  %v7613_v58 = vld [vmem:[%s17111_s1 + $0x340] sm:$0xff] }
 0x6c7   : > { %13358 = vmatprep.subr.bf16.mxu1 %v13357_v9  ;;  %v16117_v0 = vpack.c.bf16 %v7460_v60, %v7459_v8  ;;  %v7439_v42 = vld [vmem:[#allocation6 + $0x1] ss:$4 sm:$0xf]  ;;  %v7787_v40 = vld [vmem:[#allocation6 + $0x2] ss:$4 sm:$0xf] }
 0x6c8   : > { %v7700_v8 = vld [vmem:[%s17111_s1 + $0x3b0] sm:$0xff] }
 0x6c9   : > { %13402 = vmatpush3.bf16.msra.mxu0 %v16117_v0 }
 0x6ca   : > { %13360 = vmatpush3.bf16.msra.mxu1 %v13357_v9  ;;  %13403 = vmatprep.subr.bf16.mxu0 %v14262_v34  ;;  %v7612_v9 = vld [vmem:[%s17111_s1 + $0x338] sm:$0xff] }
 0x6cb   : > { %13362 = vmatprep.subr.bf16.mxu1 %v13361_v51  ;;  %v16227_v46 = vpack.c.bf16 %v7613_v58, %v7612_v9 }
 0x6cd   : > { %13405 = vmatpush3.bf16.msra.mxu0 %v16129_v54 }
 0x6ce   : > { %13364 = vmatpush3.bf16.msra.mxu1 %v13361_v51  ;;  %13406 = vmatprep.subr.bf16.mxu0 %v14262_v34  ;;  %v7614_v51 = vld [vmem:[%s17111_s1 + $0x348] sm:$0xff] }
 0x6cf   : > { %13366 = vmatprep.subr.bf16.mxu1 %v13365_v33  ;;  %v16243_v1 = vpack.c.bf16 %v7615_v35, %v7614_v51  ;;  %v8845_v51 = vld [vmem:[%s17111_s1 + $0x588] sm:$0xff]  ;;  %v8846_v35 = vld [vmem:[%s17111_s1 + $0x590] sm:$0xff] }
 0x6d1   : > { %13408 = vmatpush3.bf16.msra.mxu0 %v16139_v29 }
 0x6d2   : > { %13368 = vmatpush3.bf16.msra.mxu1 %v13365_v33  ;;  %13409 = vmatprep.subr.bf16.mxu0 %v14262_v34  ;;  %v7616_v33 = vld [vmem:[%s17111_s1 + $0x358] sm:$0xff] }
 0x6d3   : > { %13370 = vmatprep.subr.bf16.mxu1 %v13369_v14  ;;  %v16255_v45 = vpack.c.bf16 %v7617_v24, %v7616_v33  ;;  %v13776_v33 = vpack.c.bf16 %v8846_v35, %v8845_v51  ;;  %v8690_v24 = vld [vmem:[%s17111_s1 + $0x518] sm:$0xff]  ;;  %v8671_v51 = vld [vmem:[%s17111_s1 + $0x488] sm:$0xff]  ;;  %v8672_v35 = vld [vmem:[%s17111_s1 + $0x490] sm:$0xff] }
 0x6d5   : > { %12149 = vmatmul.mubr.msk.f32.vlgmr.msra.gmra.mrb[104].mxu1 %vm5778_vm6, %v7151_v30  ;;  %v7621_v30 = vld [vmem:[%s17111_s1 + $0x380] sm:$0xff] }
 0x6d6   : > { %13372 = vmatpush3.bf16.msra.mxu1 %v13369_v14  ;;  %12167 = vmatprep.mubr.msk.f32.mxu1 %vm5778_vm6, %v7332_v38  ;;  %v7618_v14 = vld [vmem:[%s17111_s1 + $0x368] sm:$0xff]  ;;  %v7623_v38 = vld [vmem:[%s17111_s1 + $0x390] sm:$0xff] }
 0x6d7   : > { %13374 = vmatprep.subr.bf16.mxu1 %v13373_v16  ;;  %v16267_v50 = vpack.c.bf16 %v7619_v36, %v7618_v14  ;;  %v8847_v14 = vld [vmem:[%s17111_s1 + $0x598] sm:$0xff]  ;;  %v8848_v36 = vld [vmem:[%s17111_s1 + $0x5a0] sm:$0xff] }
 0x6da   : > { %13376 = vmatpush3.bf16.msra.mxu1 %v13373_v16  ;;  %v7620_v16 = vld [vmem:[%s17111_s1 + $0x378] sm:$0xff] }
 0x6db   : > { %13378 = vmatprep.subr.bf16.mxu1 %v13377_v49  ;;  %v16279_v25 = vpack.c.bf16 %v7621_v30, %v7620_v16  ;;  %v13779_v16 = vpack.c.bf16 %v8848_v36, %v8847_v14  ;;  %v8692_v30 = vld [vmem:[%s17111_s1 + $0x528] sm:$0xff]  ;;  %v8673_v14 = vld [vmem:[%s17111_s1 + $0x498] sm:$0xff]  ;;  %v8674_v36 = vld [vmem:[%s17111_s1 + $0x4a0] sm:$0xff] }
 0x6de   : > { %13380 = vmatpush3.bf16.msra.mxu1 %v13377_v49  ;;  %v16291_v49 = vpack.c.bf16 %v7623_v38, %v7622_v18  ;;  %v8849_v18 = vld [vmem:[%s17111_s1 + $0x5a8] sm:$0xff] }
 0x6df   : > { %13382 = vmatprep.subr.bf16.mxu1 %v13381_v11 }
 0x6e2   : > { %13384 = vmatpush3.bf16.msra.mxu1 %v13381_v11  ;;  %v16303_v11 = vpack.c.bf16 %v7625_v61, %v7624_v26  ;;  %v8694_v61 = vld [vmem:[%s17111_s1 + $0x538] sm:$0xff] }
 0x6e3   : > { %13469 = vmatprep.subr.bf16.mxu1 %v14262_v34 }
 0x6e5   : > { %12168 = vmatmul.mubr.msk.f32.vlgmr.msra.gmra.mrb[104].mxu1 %vm5778_vm6, %v7333_v17  ;;  %v7699_v17 = vld [vmem:[%s17111_s1 + $0x3a8] sm:$0xff] }
 0x6e6   : > { %13471 = vmatpush3.bf16.msra.mxu1 %v16003_v5  ;;  %12326 = vmatprep.mubr.msk.f32.mxu1 %vm14263_vm7, %v17176_v52  ;;  %v16315_v60 = vpack.c.bf16 %v7700_v8, %v7699_v17  ;;  %v8851_v8 = vld [vmem:[%s17111_s1 + $0x5b8] sm:$0xff] }
 0x6e7   : > { %13472 = vmatprep.subr.bf16.mxu1 %v14262_v34 }
 0x6ea   : > { %13474 = vmatpush3.bf16.msra.mxu1 %v16012_v10 }
 0x6eb   : > { %13475 = vmatprep.subr.bf16.mxu1 %v14262_v34 }
 0x6ee   : > { %13477 = vmatpush3.bf16.msra.mxu1 %v16022_v3 }
 0x6ef   : > { %13478 = vmatprep.subr.bf16.mxu1 %v14262_v34 }
 0x6f2   : > { %13480 = vmatpush3.bf16.msra.mxu1 %v16032_v44 }
 0x6f3   : > { %13481 = vmatprep.subr.bf16.mxu1 %v14262_v34 }
 0x6f6   : > { %13483 = vmatpush3.bf16.msra.mxu1 %v16042_v19 }
 0x6f7   : > { %13484 = vmatprep.subr.bf16.mxu1 %v14262_v34 }
 0x6fa   : > { %13486 = vmatpush3.bf16.msra.mxu1 %v16117_v0 }
 0x6fb   : > { %13487 = vmatprep.subr.bf16.mxu1 %v14262_v34 }
 0x6fe   : > { %13489 = vmatpush3.bf16.msra.mxu1 %v16129_v54 }
 0x6ff   : > { %13490 = vmatprep.subr.bf16.mxu1 %v14262_v34 }
 0x702   : > { %13492 = vmatpush3.bf16.msra.mxu1 %v16139_v29 }
 0x703   : > { %13493 = vmatprep.subr.bf16.mxu1 %v14262_v34 }
 0x7b8   : > { %v12169_v59 = vpop.f32.mrb[104].mxu1 }
 0x7b9   : > { %v7431_v21 = vadd.f32 %v12169_v59, %v10095_v55  ;;  %v7414_v15 = vpop.f32.mrb[105].mxu1  ;;  %v7704_v59 = vld [vmem:[%s17111_s1 + $0x3d0] sm:$0xff] }
 0x7ba   : > { %v7430_v39 = vadd.f32 %v10095_v55, %v7414_v15  ;;  %v7703_v55 = vld [vmem:[%s17111_s1 + $0x3c8] sm:$0xff]  ;;  %v7705_v15 = vld [vmem:[%s17111_s1 + $0x3d8] sm:$0xff] }
 0x7bb   : > { %v7433_v27 = vmax.f32 %v7431_v21, 0.0  ;;  %v16347_v21 = vpack.c.bf16 %v7704_v59, %v7703_v55  ;;  %v8854_v59 = vld [vmem:[%s17111_s1 + $0x5d0] sm:$0xff] }
 0x7bc   : > { %v7432_v56 = vmax.f32 %v7430_v39, 0.0  ;;  %v7706_v39 = vld [vmem:[%s17111_s1 + $0x3e0] sm:$0xff] }
 0x7bd   : > { %7436 = vst [vmem:[#allocation7 + $0x9] sm:$0xff] %v7433_v27  ;;  %v16359_v27 = vpack.c.bf16 %v7706_v39, %v7705_v15  ;;  %v8698_v15 = vld [vmem:[%s17111_s1 + $0x558] sm:$0xff]  ;;  %v8699_v39 = vld [vmem:[%s17111_s1 + $0x560] sm:$0xff] }
 0x7be   : > { %7435 = vst [vmem:[#allocation7 + $0x1] sm:$0xff] %v7432_v56  ;;  %v7707_v56 = vld [vmem:[%s17111_s1 + $0x3e8] sm:$0xff] }
 0x7bf   : > { %v16371_v31 = vpack.c.bf16 %v7708_v48, %v7707_v56  ;;  %v13743_v56 = vpack.c.bf16 %v8699_v39, %v8698_v15  ;;  %v8856_v48 = vld [vmem:[%s17111_s1 + $0x5e0] sm:$0xff] }
 0x7c5   : > { %v7448_v7 = vld [vmem:[#allocation7] ss:$4 sm:$0xf]  ;;  %v16168_v22 = vld [vmem:[#allocation7 + $0x1] ss:$4 sm:$0xf] }
 0x7c6   : > { %12203 = vmatmul.mubr.f32.vlgmr.msra.gmra.mrb[104].mxu0 %v7448_v7  ;;  %12327 = vmatmul.mubr.f32.vlgmr.msra.gmra.mrb[106].mxu1 %v16168_v22  ;;  %v16325_v41 = vld [vmem:[#allocation7 + $0x2] ss:$4 sm:$0xf]  ;;  %v16383_v7 = vpack.c.bf16 %v7710_v4, %v7709_v43  ;;  %v16415_v20 = vld [vmem:[#allocation7 + $0x3] ss:$4 sm:$0xf] }
 0x7c7   : > { %13411 = vmatpush3.bf16.msra.mxu0 %v16160_v57  ;;  %13495 = vmatpush3.bf16.msra.mxu1 %v16160_v57  ;;  %v8583_v9 = vld [vmem:[#allocation7 + $0x5] ss:$4 sm:$0xf] }
 0x7c8   : > { %13412 = vmatprep.subr.bf16.mxu0 %v14262_v34  ;;  %13496 = vmatprep.subr.bf16.mxu1 %v14262_v34 }
 0x7c9   : > { %12221 = vmatprep.mubr.msk.f32.mxu0 %vm14263_vm7, %v17176_v52  ;;  %12345 = vmatprep.mubr.msk.f32.mxu1 %vm14263_vm7, %v17176_v52 }
 0x7cb   : > { %13414 = vmatpush3.bf16.msra.mxu0 %v16173_v12  ;;  %13498 = vmatpush3.bf16.msra.mxu1 %v16173_v12 }
 0x7cc   : > { %13415 = vmatprep.subr.bf16.mxu0 %v14262_v34  ;;  %13499 = vmatprep.subr.bf16.mxu1 %v14262_v34 }
 0x7cf   : > { %13417 = vmatpush3.bf16.msra.mxu0 %v16189_v37  ;;  %13501 = vmatpush3.bf16.msra.mxu1 %v16189_v37 }
 0x7d0   : > { %13418 = vmatprep.subr.bf16.mxu0 %v14262_v34  ;;  %13502 = vmatprep.subr.bf16.mxu1 %v14262_v34 }
 0x7d3   : > { %13420 = vmatpush3.bf16.msra.mxu0 %v16201_v23  ;;  %13504 = vmatpush3.bf16.msra.mxu1 %v16201_v23 }
 0x7d4   : > { %13421 = vmatprep.subr.bf16.mxu0 %v14262_v34  ;;  %13505 = vmatprep.subr.bf16.mxu1 %v14262_v34 }
 0x7d6   : > { %12222 = vmatmul.mubr.msk.f32.vlgmr.msra.gmra.mrb[104].mxu0 %vm5778_vm6, %v7439_v42  ;;  %12346 = vmatmul.mubr.msk.f32.vlgmr.msra.gmra.mrb[106].mxu1 %vm5778_vm6, %v7787_v40  ;;  %v8688_v40 = vld [vmem:[%s17111_s1 + $0x508] sm:$0xff] }
 0x7d7   : > { %13423 = vmatpush3.bf16.msra.mxu0 %v16213_v2  ;;  %13507 = vmatpush3.bf16.msra.mxu1 %v16213_v2 }
 0x7d8   : > { %13424 = vmatprep.subr.bf16.mxu0 %v14262_v34  ;;  %13508 = vmatprep.subr.bf16.mxu1 %v14262_v34 }
 0x7d9   : > { %12256 = vmatprep.mubr.msk.f32.mxu0 %vm14263_vm7, %v17176_v52  ;;  %12380 = vmatprep.mubr.msk.f32.mxu1 %vm14263_vm7, %v17176_v52 }
 0x7db   : > { %13426 = vmatpush3.bf16.msra.mxu0 %v16227_v46  ;;  %13510 = vmatpush3.bf16.msra.mxu1 %v16227_v46 }
 0x7dc   : > { %13427 = vmatprep.subr.bf16.mxu0 %v14262_v34  ;;  %13511 = vmatprep.subr.bf16.mxu1 %v14262_v34 }
 0x7df   : > { %13429 = vmatpush3.bf16.msra.mxu0 %v16243_v1  ;;  %13513 = vmatpush3.bf16.msra.mxu1 %v16243_v1 }
 0x7e0   : > { %13430 = vmatprep.subr.bf16.mxu0 %v14262_v34  ;;  %13514 = vmatprep.subr.bf16.mxu1 %v14262_v34 }
 0x7e3   : > { %13432 = vmatpush3.bf16.msra.mxu0 %v16255_v45  ;;  %13516 = vmatpush3.bf16.msra.mxu1 %v16255_v45 }
 0x7e4   : > { %13433 = vmatprep.subr.bf16.mxu0 %v14262_v34  ;;  %13517 = vmatprep.subr.bf16.mxu1 %v14262_v34 }
 0x7e7   : > { %13435 = vmatpush3.bf16.msra.mxu0 %v16267_v50  ;;  %13519 = vmatpush3.bf16.msra.mxu1 %v16267_v50 }
 0x7e8   : > { %13436 = vmatprep.subr.bf16.mxu0 %v14262_v34  ;;  %13520 = vmatprep.subr.bf16.mxu1 %v14262_v34 }
 0x7eb   : > { %13438 = vmatpush3.bf16.msra.mxu0 %v16279_v25  ;;  %13522 = vmatpush3.bf16.msra.mxu1 %v16279_v25 }
 0x7ec   : > { %13439 = vmatprep.subr.bf16.mxu0 %v14262_v34  ;;  %13523 = vmatprep.subr.bf16.mxu1 %v14262_v34 }
 0x7ef   : > { %13441 = vmatpush3.bf16.msra.mxu0 %v16291_v49  ;;  %13525 = vmatpush3.bf16.msra.mxu1 %v16291_v49 }
 0x7f0   : > { %13442 = vmatprep.subr.bf16.mxu0 %v14262_v34  ;;  %13526 = vmatprep.subr.bf16.mxu1 %v14262_v34 }
 0x7f3   : > { %13444 = vmatpush3.bf16.msra.mxu0 %v16303_v11  ;;  %13528 = vmatpush3.bf16.msra.mxu1 %v16303_v11 }
 0x7f4   : > { %13445 = vmatprep.subr.bf16.mxu0 %v14262_v34  ;;  %13529 = vmatprep.subr.bf16.mxu1 %v14262_v34 }
 0x7f6   : > { %12257 = vmatmul.mubr.f32.vlgmr.msra.gmra.mrb[104].mxu0 %v16168_v22  ;;  %12381 = vmatmul.mubr.f32.vlgmr.msra.gmra.mrb[106].mxu1 %v16325_v41  ;;  %v7711_v22 = vld [vmem:[%s17111_s1 + $0x408] sm:$0xff] }
 0x7f7   : > { %13447 = vmatpush3.bf16.msra.mxu0 %v16315_v60  ;;  %13531 = vmatpush3.bf16.msra.mxu1 %v16315_v60  ;;  %v16395_v47 = vpack.c.bf16 %v7712_v32, %v7711_v22 }
 0x7f8   : > { %13448 = vmatprep.subr.bf16.mxu0 %v14262_v34  ;;  %13532 = vmatprep.subr.bf16.mxu1 %v14262_v34 }
 0x7f9   : > { %12291 = vmatprep.mubr.msk.f32.mxu0 %vm14263_vm7, %v17176_v52  ;;  %12415 = vmatprep.mubr.msk.f32.mxu1 %vm14263_vm7, %v17176_v52 }
 0x7fb   : > { %13450 = vmatpush3.bf16.msra.mxu0 %v16331_v28  ;;  %13534 = vmatpush3.bf16.msra.mxu1 %v16331_v28 }
 0x7fc   : > { %13451 = vmatprep.subr.bf16.mxu0 %v14262_v34  ;;  %13535 = vmatprep.subr.bf16.mxu1 %v14262_v34 }
 0x7ff   : > { %13453 = vmatpush3.bf16.msra.mxu0 %v16347_v21  ;;  %13537 = vmatpush3.bf16.msra.mxu1 %v16347_v21 }
 0x800   : > { %13454 = vmatprep.subr.bf16.mxu0 %v14262_v34  ;;  %13538 = vmatprep.subr.bf16.mxu1 %v14262_v34 }
 0x803   : > { %13456 = vmatpush3.bf16.msra.mxu0 %v16359_v27  ;;  %13540 = vmatpush3.bf16.msra.mxu1 %v16359_v27 }
 0x804   : > { %13457 = vmatprep.subr.bf16.mxu0 %v14262_v34  ;;  %13541 = vmatprep.subr.bf16.mxu1 %v14262_v34 }
 0x807   : > { %13459 = vmatpush3.bf16.msra.mxu0 %v16371_v31  ;;  %13543 = vmatpush3.bf16.msra.mxu1 %v16371_v31 }
 0x808   : > { %13460 = vmatprep.subr.bf16.mxu0 %v14262_v34  ;;  %13544 = vmatprep.subr.bf16.mxu1 %v14262_v34 }
 0x80b   : > { %13462 = vmatpush3.bf16.msra.mxu0 %v16383_v7  ;;  %13546 = vmatpush3.bf16.msra.mxu1 %v16383_v7 }
 0x80c   : > { %13463 = vmatprep.subr.bf16.mxu0 %v14262_v34  ;;  %13547 = vmatprep.subr.bf16.mxu1 %v14262_v34 }
 0x80f   : > { %13465 = vmatpush3.bf16.msra.mxu0 %v16395_v47  ;;  %13549 = vmatpush3.bf16.msra.mxu1 %v16395_v47 }
 0x810   : > { %13466 = vmatprep.subr.bf16.mxu0 %v14262_v34  ;;  %13550 = vmatprep.subr.bf16.mxu1 %v14262_v34 }
 0x813   : > { %13468 = vmatpush3.bf16.msra.mxu0 %v16407_v62  ;;  %13552 = vmatpush3.bf16.msra.mxu1 %v16407_v62 }
 0x814   : > { %13553 = vmatprep.subr.bf16.mxu0 %v14262_v34  ;;  %13637 = vmatprep.subr.bf16.mxu1 %v14262_v34 }
 0x816   : > { %12292 = vmatmul.mubr.f32.vlgmr.msra.gmra.mrb[104].mxu0 %v16325_v41  ;;  %12416 = vmatmul.mubr.f32.vlgmr.msra.gmra.mrb[106].mxu1 %v16415_v20 }
 0x817   : > { %13555 = vmatpush3.bf16.msra.mxu0 %v16003_v5  ;;  %13639 = vmatpush3.bf16.msra.mxu1 %v16003_v5  ;;  %v8077_v5 = vld [vmem:[#allocation6 + $0x3] ss:$4 sm:$0xf] }
 0x818   : > { %13556 = vmatprep.subr.bf16.mxu0 %v14262_v34  ;;  %13640 = vmatprep.subr.bf16.mxu1 %v14262_v34 }
 0x819   : > { %12450 = vmatprep.mubr.msk.f32.mxu0 %vm14263_vm7, %v17176_v52  ;;  %12574 = vmatprep.mubr.msk.f32.mxu1 %vm14263_vm7, %v17176_v52 }
 0x81b   : > { %13558 = vmatpush3.bf16.msra.mxu0 %v16012_v10  ;;  %13642 = vmatpush3.bf16.msra.mxu1 %v16012_v10  ;;  %v8367_v10 = vld [vmem:[#allocation6 + $0x4] ss:$4 sm:$0xf] }
 0x81c   : > { %13559 = vmatprep.subr.bf16.mxu0 %v14262_v34  ;;  %13643 = vmatprep.subr.bf16.mxu1 %v14262_v34 }
 0x81f   : > { %13561 = vmatpush3.bf16.msra.mxu0 %v16022_v3  ;;  %13645 = vmatpush3.bf16.msra.mxu1 %v16022_v3  ;;  %v8293_v3 = vld [vmem:[#allocation7 + $0x4] ss:$4 sm:$0xf] }
 0x820   : > { %13562 = vmatprep.subr.bf16.mxu0 %v14262_v34  ;;  %13646 = vmatprep.subr.bf16.mxu1 %v14262_v34 }
 0x823   : > { %13564 = vmatpush3.bf16.msra.mxu0 %v16032_v44  ;;  %13648 = vmatpush3.bf16.msra.mxu1 %v16032_v44  ;;  %v8684_v44 = vld [vmem:[%s17111_s1 + $0x4e8] sm:$0xff] }
 0x824   : > { %13565 = vmatprep.subr.bf16.mxu0 %v14262_v34  ;;  %13649 = vmatprep.subr.bf16.mxu1 %v14262_v34 }
 0x827   : > { %13567 = vmatpush3.bf16.msra.mxu0 %v16042_v19  ;;  %13651 = vmatpush3.bf16.msra.mxu1 %v16042_v19  ;;  %v8685_v19 = vld [vmem:[%s17111_s1 + $0x4f0] sm:$0xff] }
 0x828   : > { %13568 = vmatprep.subr.bf16.mxu0 %v14262_v34  ;;  %13652 = vmatprep.subr.bf16.mxu1 %v14262_v34 }
 0x82b   : > { %13570 = vmatpush3.bf16.msra.mxu0 %v16117_v0  ;;  %13654 = vmatpush3.bf16.msra.mxu1 %v16117_v0  ;;  %v8841_v0 = vld [vmem:[%s17111_s1 + $0x568] sm:$0xff] }
 0x82c   : > { %13571 = vmatprep.subr.bf16.mxu0 %v14262_v34  ;;  %13655 = vmatprep.subr.bf16.mxu1 %v14262_v34 }
 0x82f   : > { %13573 = vmatpush3.bf16.msra.mxu0 %v16129_v54  ;;  %13657 = vmatpush3.bf16.msra.mxu1 %v16129_v54  ;;  %v8842_v54 = vld [vmem:[%s17111_s1 + $0x570] sm:$0xff] }
 0x830   : > { %13574 = vmatprep.subr.bf16.mxu0 %v14262_v34  ;;  %13658 = vmatprep.subr.bf16.mxu1 %v14262_v34 }
 0x833   : > { %13576 = vmatpush3.bf16.msra.mxu0 %v16139_v29  ;;  %13660 = vmatpush3.bf16.msra.mxu1 %v16139_v29  ;;  %v13722_v29 = vpack.c.bf16 %v8685_v19, %v8684_v44  ;;  %v8667_v19 = vld [vmem:[%s17111_s1 + $0x468] sm:$0xff] }
 0x834   : > { %13577 = vmatprep.subr.bf16.mxu0 %v14262_v34  ;;  %13661 = vmatprep.subr.bf16.mxu1 %v14262_v34 }
 0x836   : > { %12451 = vmatmul.mubr.f32.vlgmr.msra.gmra.mrb[106].mxu0 %v16325_v41  ;;  %12575 = vmatmul.mubr.f32.vlgmr.msra.gmra.mrb[108].mxu1 %v16415_v20  ;;  %v8697_v41 = vld [vmem:[%s17111_s1 + $0x550] sm:$0xff] }
 0x837   : > { %13579 = vmatpush3.bf16.msra.mxu0 %v16160_v57  ;;  %13663 = vmatpush3.bf16.msra.mxu1 %v16160_v57  ;;  %v13770_v57 = vpack.c.bf16 %v8842_v54, %v8841_v0  ;;  %v13740_v55 = vpack.c.bf16 %v8697_v41, %v8696_v63  ;;  %v8668_v0 = vld [vmem:[%s17111_s1 + $0x470] sm:$0xff]  ;;  %v8939_v54 = vld [vmem:[%s17111_s1 + $0x768] sm:$0xff] }
 0x838   : > { %13580 = vmatprep.subr.bf16.mxu0 %v14262_v34  ;;  %13664 = vmatprep.subr.bf16.mxu1 %v14262_v34 }
 0x839   : > { %12469 = vmatprep.mubr.msk.f32.mxu0 %vm14263_vm7, %v17176_v52  ;;  %12593 = vmatprep.mubr.msk.f32.mxu1 %vm14263_vm7, %v17176_v52 }
 0x83b   : > { %13582 = vmatpush3.bf16.msra.mxu0 %v16173_v12  ;;  %13666 = vmatpush3.bf16.msra.mxu1 %v16173_v12  ;;  %v8686_v12 = vld [vmem:[%s17111_s1 + $0x4f8] sm:$0xff] }
 0x83c   : > { %13583 = vmatprep.subr.bf16.mxu0 %v14262_v34  ;;  %13667 = vmatprep.subr.bf16.mxu1 %v14262_v34 }
 0x83f   : > { %13585 = vmatpush3.bf16.msra.mxu0 %v16189_v37  ;;  %13669 = vmatpush3.bf16.msra.mxu1 %v16189_v37  ;;  %v8687_v37 = vld [vmem:[%s17111_s1 + $0x500] sm:$0xff] }
 0x840   : > { %13586 = vmatprep.subr.bf16.mxu0 %v14262_v34  ;;  %13670 = vmatprep.subr.bf16.mxu1 %v14262_v34  ;;  %v13725_v58 = vpack.c.bf16 %v8687_v37, %v8686_v12  ;;  %v8669_v37 = vld [vmem:[%s17111_s1 + $0x478] sm:$0xff] }
 0x843   : > { %13588 = vmatpush3.bf16.msra.mxu0 %v16201_v23  ;;  %13672 = vmatpush3.bf16.msra.mxu1 %v16201_v23  ;;  %v8843_v23 = vld [vmem:[%s17111_s1 + $0x578] sm:$0xff] }
 0x844   : > { %13589 = vmatprep.subr.bf16.mxu0 %v14262_v34  ;;  %13673 = vmatprep.subr.bf16.mxu1 %v14262_v34 }
 0x846   : > { %12470 = vmatmul.mubr.msk.f32.vlgmr.msra.gmra.mrb[106].mxu0 %vm5778_vm6, %v8077_v5  ;;  %12594 = vmatmul.mubr.msk.f32.vlgmr.msra.gmra.mrb[108].mxu1 %vm5778_vm6, %v8367_v10  ;;  %v10100_v5 = vld [vmem:[%s17112_s2 + $0x6] ss:$0 sm:$0xff] }
 0x847   : > { %13591 = vmatpush3.bf16.msra.mxu0 %v16213_v2  ;;  %13675 = vmatpush3.bf16.msra.mxu1 %v16213_v2  ;;  %v8844_v2 = vld [vmem:[%s17111_s1 + $0x580] sm:$0xff] }
 0x848   : > { %13592 = vmatprep.subr.bf16.mxu0 %v14262_v34  ;;  %13676 = vmatprep.subr.bf16.mxu1 %v14262_v34  ;;  %v13773_v42 = vpack.c.bf16 %v8844_v2, %v8843_v23  ;;  %v8670_v23 = vld [vmem:[%s17111_s1 + $0x480] sm:$0xff]  ;;  %v8941_v2 = vld [vmem:[%s17111_s1 + $0x778] sm:$0xff] }
 0x849   : > { %12504 = vmatprep.mubr.msk.f32.mxu0 %vm14263_vm7, %v17176_v52  ;;  %12628 = vmatprep.mubr.msk.f32.mxu1 %vm14263_vm7, %v17176_v52 }
 0x84b   : > { %13594 = vmatpush3.bf16.msra.mxu0 %v16227_v46  ;;  %13678 = vmatpush3.bf16.msra.mxu1 %v16227_v46  ;;  %v8689_v46 = vld [vmem:[%s17111_s1 + $0x510] sm:$0xff] }
 0x84c   : > { %13595 = vmatprep.subr.bf16.mxu0 %v14262_v34  ;;  %13679 = vmatprep.subr.bf16.mxu1 %v14262_v34 }
 0x84f   : > { %13597 = vmatpush3.bf16.msra.mxu0 %v16243_v1  ;;  %13681 = vmatpush3.bf16.msra.mxu1 %v16243_v1  ;;  %v13728_v1 = vpack.c.bf16 %v8689_v46, %v8688_v40  ;;  %v13749_v40 = vpack.c.bf16 %v8670_v23, %v8669_v37 }
 0x850   : > { %13598 = vmatprep.subr.bf16.mxu0 %v14262_v34  ;;  %13682 = vmatprep.subr.bf16.mxu1 %v14262_v34 }
 0x853   : > { %13600 = vmatpush3.bf16.msra.mxu0 %v16255_v45  ;;  %13684 = vmatpush3.bf16.msra.mxu1 %v16255_v45  ;;  %v8691_v45 = vld [vmem:[%s17111_s1 + $0x520] sm:$0xff] }
 0x854   : > { %13601 = vmatprep.subr.bf16.mxu0 %v14262_v34  ;;  %13685 = vmatprep.subr.bf16.mxu1 %v14262_v34 }
 0x857   : > { %13603 = vmatpush3.bf16.msra.mxu0 %v16267_v50  ;;  %13687 = vmatpush3.bf16.msra.mxu1 %v16267_v50  ;;  %v13731_v50 = vpack.c.bf16 %v8691_v45, %v8690_v24  ;;  %v13752_v24 = vpack.c.bf16 %v8672_v35, %v8671_v51  ;;  %v8964_v51 = vld [vmem:[%s17111_s1 + $0x628] sm:$0xff]  ;;  %v8965_v35 = vld [vmem:[%s17111_s1 + $0x630] sm:$0xff] }
 0x858   : > { %13604 = vmatprep.subr.bf16.mxu0 %v14262_v34  ;;  %13688 = vmatprep.subr.bf16.mxu1 %v14262_v34 }
 0x85b   : > { %13606 = vmatpush3.bf16.msra.mxu0 %v16279_v25  ;;  %13690 = vmatpush3.bf16.msra.mxu1 %v16279_v25  ;;  %v8693_v25 = vld [vmem:[%s17111_s1 + $0x530] sm:$0xff] }
 0x85c   : > { %13607 = vmatprep.subr.bf16.mxu0 %v14262_v34  ;;  %13691 = vmatprep.subr.bf16.mxu1 %v14262_v34  ;;  %v13734_v38 = vpack.c.bf16 %v8693_v25, %v8692_v30  ;;  %v13755_v30 = vpack.c.bf16 %v8674_v36, %v8673_v14  ;;  %v8966_v14 = vld [vmem:[%s17111_s1 + $0x638] sm:$0xff]  ;;  %v8967_v36 = vld [vmem:[%s17111_s1 + $0x640] sm:$0xff] }
 0x85f   : > { %13609 = vmatpush3.bf16.msra.mxu0 %v16291_v49  ;;  %13693 = vmatpush3.bf16.msra.mxu1 %v16291_v49  ;;  %v8850_v49 = vld [vmem:[%s17111_s1 + $0x5b0] sm:$0xff] }
 0x860   : > { %13610 = vmatprep.subr.bf16.mxu0 %v14262_v34  ;;  %13694 = vmatprep.subr.bf16.mxu1 %v14262_v34  ;;  %v13782_v26 = vpack.c.bf16 %v8850_v49, %v8849_v18  ;;  %v8675_v18 = vld [vmem:[%s17111_s1 + $0x4a8] sm:$0xff] }
 0x861   : > { %v8947_v49 = vld [vmem:[%s17111_s1 + $0x7a8] sm:$0xff] }
 0x863   : > { %13612 = vmatpush3.bf16.msra.mxu0 %v16303_v11  ;;  %13696 = vmatpush3.bf16.msra.mxu1 %v16303_v11  ;;  %v8695_v11 = vld [vmem:[%s17111_s1 + $0x540] sm:$0xff] }
 0x864   : > { %13613 = vmatprep.subr.bf16.mxu0 %v14262_v34  ;;  %13697 = vmatprep.subr.bf16.mxu1 %v14262_v34  ;;  %v13737_v17 = vpack.c.bf16 %v8695_v11, %v8694_v61 }
 0x866   : > { %12505 = vmatmul.mubr.f32.vlgmr.msra.gmra.mrb[106].mxu0 %v16415_v20  ;;  %12629 = vmatmul.mubr.f32.vlgmr.msra.gmra.mrb[108].mxu1 %v8293_v3 }
 0x867   : > { %13615 = vmatpush3.bf16.msra.mxu0 %v16315_v60  ;;  %13699 = vmatpush3.bf16.msra.mxu1 %v16315_v60  ;;  %v8852_v60 = vld [vmem:[%s17111_s1 + $0x5c0] sm:$0xff] }
 0x868   : > { %13616 = vmatprep.subr.bf16.mxu0 %v14262_v34  ;;  %13700 = vmatprep.subr.bf16.mxu1 %v14262_v34  ;;  %v13785_v13 = vpack.c.bf16 %v8852_v60, %v8851_v8  ;;  %v8678_v8 = vld [vmem:[%s17111_s1 + $0x4c0] sm:$0xff]  ;;  %v8949_v60 = vld [vmem:[%s17111_s1 + $0x7b8] sm:$0xff] }
 0x869   : > { %12539 = vmatprep.mubr.msk.f32.mxu0 %vm14263_vm7, %v17176_v52  ;;  %12663 = vmatprep.mubr.msk.f32.mxu1 %vm14263_vm7, %v17176_v52 }
 0x86b   : > { %13618 = vmatpush3.bf16.msra.mxu0 %v16331_v28  ;;  %13702 = vmatpush3.bf16.msra.mxu1 %v16331_v28  ;;  %v8853_v28 = vld [vmem:[%s17111_s1 + $0x5c8] sm:$0xff] }
 0x86c   : > { %13619 = vmatprep.subr.bf16.mxu0 %v14262_v34  ;;  %13703 = vmatprep.subr.bf16.mxu1 %v14262_v34 }
 0x86f   : > { %13621 = vmatpush3.bf16.msra.mxu0 %v16347_v21  ;;  %13705 = vmatpush3.bf16.msra.mxu1 %v16347_v21  ;;  %v13788_v21 = vpack.c.bf16 %v8854_v59, %v8853_v28  ;;  %v8679_v28 = vld [vmem:[%s17111_s1 + $0x4c8] sm:$0xff] }
 0x870   : > { %13622 = vmatprep.subr.bf16.mxu0 %v14262_v34  ;;  %13706 = vmatprep.subr.bf16.mxu1 %v14262_v34  ;;  %v8951_v59 = vld [vmem:[%s17111_s1 + $0x7c8] sm:$0xff] }
 0x873   : > { %13624 = vmatpush3.bf16.msra.mxu0 %v16359_v27  ;;  %13708 = vmatpush3.bf16.msra.mxu1 %v16359_v27  ;;  %v8855_v27 = vld [vmem:[%s17111_s1 + $0x5d8] sm:$0xff] }
 0x874   : > { %13625 = vmatprep.subr.bf16.mxu0 %v14262_v34  ;;  %13709 = vmatprep.subr.bf16.mxu1 %v14262_v34 }
 0x877   : > { %13627 = vmatpush3.bf16.msra.mxu0 %v16371_v31  ;;  %13711 = vmatpush3.bf16.msra.mxu1 %v16371_v31  ;;  %v13791_v31 = vpack.c.bf16 %v8856_v48, %v8855_v27  ;;  %v8681_v27 = vld [vmem:[%s17111_s1 + $0x4d8] sm:$0xff] }
 0x878   : > { %13628 = vmatprep.subr.bf16.mxu0 %v14262_v34  ;;  %13712 = vmatprep.subr.bf16.mxu1 %v14262_v34  ;;  %v8953_v48 = vld [vmem:[%s17111_s1 + $0x7d8] sm:$0xff] }
 0x87b   : > { %13630 = vmatpush3.bf16.msra.mxu0 %v16383_v7  ;;  %13714 = vmatpush3.bf16.msra.mxu1 %v16383_v7 }
 0x87c   : > { %13631 = vmatprep.subr.bf16.mxu0 %v14262_v34  ;;  %13715 = vmatprep.subr.bf16.mxu1 %v14262_v34 }
 0x87f   : > { %13633 = vmatpush3.bf16.msra.mxu0 %v16395_v47  ;;  %13717 = vmatpush3.bf16.msra.mxu1 %v16395_v47 }
 0x880   : > { %13634 = vmatprep.subr.bf16.mxu0 %v14262_v34  ;;  %13718 = vmatprep.subr.bf16.mxu1 %v14262_v34 }
 0x883   : > { %13636 = vmatpush3.bf16.msra.mxu0 %v16407_v62  ;;  %13720 = vmatpush3.bf16.msra.mxu1 %v16407_v62 }
 0x884   : > { %13721 = vmatprep.subr.bf16.mxu0 %v14262_v34  ;;  %13769 = vmatprep.subr.bf16.mxu1 %v14262_v34 }
 0x886   : > { %12540 = vmatmul.mubr.f32.vlgmr.msra.gmra.mrb[106].mxu0 %v8293_v3  ;;  %12664 = vmatmul.mubr.f32.vlgmr.msra.gmra.mrb[108].mxu1 %v8583_v9  ;;  %v8942_v9 = vld [vmem:[%s17111_s1 + $0x780] sm:$0xff] }
 0x887   : > { %13723 = vmatpush3.bf16.msra.mxu0 %v13722_v29  ;;  %13771 = vmatpush3.bf16.msra.mxu1 %v13770_v57  ;;  %v8940_v29 = vld [vmem:[%s17111_s1 + $0x770] sm:$0xff]  ;;  %v13746_v57 = vpack.c.bf16 %v8668_v0, %v8667_v19  ;;  %v13821_v46 = vpack.c.bf16 %v8942_v9, %v8941_v2  ;;  %v8962_v2 = vld [vmem:[%s17111_s1 + $0x618] sm:$0xff]  ;;  %v8963_v9 = vld [vmem:[%s17111_s1 + $0x620] sm:$0xff] }
 0x888   : > { %13724 = vmatprep.subr.bf16.mxu0 %v14262_v34  ;;  %13772 = vmatprep.subr.bf16.mxu1 %v14262_v34  ;;  %v13818_v12 = vpack.c.bf16 %v8940_v29, %v8939_v54  ;;  %v8960_v54 = vld [vmem:[%s17111_s1 + $0x608] sm:$0xff]  ;;  %v8961_v29 = vld [vmem:[%s17111_s1 + $0x610] sm:$0xff] }
 0x889   : > { %12698 = vmatprep.mubr.msk.f32.mxu0 %vm14263_vm7, %v17176_v52  ;;  %12768 = vmatprep.mubr.msk.f32.mxu1 %vm14263_vm7, %v17176_v52  ;;  %v13800_v37 = vpack.c.bf16 %v8961_v29, %v8960_v54  ;;  %v9121_v29 = vld [vmem:[%s17111_s1 + $0x6a8] sm:$0xff] }
 0x88b   : > { %13726 = vmatpush3.bf16.msra.mxu0 %v13725_v58  ;;  %13774 = vmatpush3.bf16.msra.mxu1 %v13773_v42 }
 0x88c   : > { %13727 = vmatprep.subr.bf16.mxu0 %v14262_v34  ;;  %13775 = vmatprep.subr.bf16.mxu1 %v14262_v34 }
 0x88f   : > { %13729 = vmatpush3.bf16.msra.mxu0 %v13728_v1  ;;  %13777 = vmatpush3.bf16.msra.mxu1 %v13776_v33  ;;  %v8943_v1 = vld [vmem:[%s17111_s1 + $0x788] sm:$0xff]  ;;  %v8944_v33 = vld [vmem:[%s17111_s1 + $0x790] sm:$0xff] }
 0x890   : > { %13730 = vmatprep.subr.bf16.mxu0 %v14262_v34  ;;  %13778 = vmatprep.subr.bf16.mxu1 %v14262_v34  ;;  %v13824_v45 = vpack.c.bf16 %v8944_v33, %v8943_v1  ;;  %v13806_v1 = vpack.c.bf16 %v8965_v35, %v8964_v51  ;;  %v9209_v33 = vld [vmem:[%s17111_s1 + $0x728] sm:$0xff] }
 0x893   : > { %13732 = vmatpush3.bf16.msra.mxu0 %v13731_v50  ;;  %13780 = vmatpush3.bf16.msra.mxu1 %v13779_v16  ;;  %v8945_v50 = vld [vmem:[%s17111_s1 + $0x798] sm:$0xff]  ;;  %v8946_v16 = vld [vmem:[%s17111_s1 + $0x7a0] sm:$0xff] }
 0x894   : > { %13733 = vmatprep.subr.bf16.mxu0 %v14262_v34  ;;  %13781 = vmatprep.subr.bf16.mxu1 %v14262_v34  ;;  %v13827_v25 = vpack.c.bf16 %v8946_v16, %v8945_v50  ;;  %v13809_v50 = vpack.c.bf16 %v8967_v36, %v8966_v14  ;;  %v9211_v16 = vld [vmem:[%s17111_s1 + $0x738] sm:$0xff]  ;;  %v9306_v14 = vld [vmem:[%s17111_s1 + $0x800] sm:$0xff] }
 0x897   : > { %13735 = vmatpush3.bf16.msra.mxu0 %v13734_v38  ;;  %13783 = vmatpush3.bf16.msra.mxu1 %v13782_v26  ;;  %v8676_v38 = vld [vmem:[%s17111_s1 + $0x4b0] sm:$0xff] }
 0x898   : > { %13736 = vmatprep.subr.bf16.mxu0 %v14262_v34  ;;  %13784 = vmatprep.subr.bf16.mxu1 %v14262_v34  ;;  %v8948_v26 = vld [vmem:[%s17111_s1 + $0x7b0] sm:$0xff]  ;;  %v13758_v61 = vpack.c.bf16 %v8676_v38, %v8675_v18  ;;  %v8968_v18 = vld [vmem:[%s17111_s1 + $0x648] sm:$0xff] }
 0x899   : > { %v13830_v11 = vpack.c.bf16 %v8948_v26, %v8947_v49  ;;  %v8969_v38 = vld [vmem:[%s17111_s1 + $0x650] sm:$0xff]  ;;  %v9213_v26 = vld [vmem:[%s17111_s1 + $0x748] sm:$0xff] }
 0x89a   : > { %v13812_v49 = vpack.c.bf16 %v8969_v38, %v8968_v18  ;;  %v9311_v38 = vld [vmem:[%s17111_s1 + $0x828] sm:$0xff] }
 0x89b   : > { %13738 = vmatpush3.bf16.msra.mxu0 %v13737_v17  ;;  %13786 = vmatpush3.bf16.msra.mxu1 %v13785_v13  ;;  %v8677_v17 = vld [vmem:[%s17111_s1 + $0x4b8] sm:$0xff]  ;;  %v8950_v13 = vld [vmem:[%s17111_s1 + $0x7c0] sm:$0xff] }
 0x89c   : > { %13739 = vmatprep.subr.bf16.mxu0 %v14262_v34  ;;  %13787 = vmatprep.subr.bf16.mxu1 %v14262_v34  ;;  %v13761_v63 = vpack.c.bf16 %v8678_v8, %v8677_v17  ;;  %v13833_v41 = vpack.c.bf16 %v8950_v13, %v8949_v60  ;;  %v8970_v17 = vld [vmem:[%s17111_s1 + $0x658] sm:$0xff]  ;;  %v8971_v8 = vld [vmem:[%s17111_s1 + $0x660] sm:$0xff] }
 0x89d   : > { %v9215_v60 = vld [vmem:[%s17111_s1 + $0x758] sm:$0xff]  ;;  %v13815_v13 = vpack.c.bf16 %v8971_v8, %v8970_v17  ;;  %v9315_v8 = vld [vmem:[%s17111_s1 + $0x848] sm:$0xff] }
 0x89f   : > { %13741 = vmatpush3.bf16.msra.mxu0 %v13740_v55  ;;  %13789 = vmatpush3.bf16.msra.mxu1 %v13788_v21  ;;  %v8680_v55 = vld [vmem:[%s17111_s1 + $0x4d0] sm:$0xff] }
 0x8a0   : > { %13742 = vmatprep.subr.bf16.mxu0 %v14262_v34  ;;  %13790 = vmatprep.subr.bf16.mxu1 %v14262_v34  ;;  %v8952_v21 = vld [vmem:[%s17111_s1 + $0x7d0] sm:$0xff]  ;;  %v13764_v15 = vpack.c.bf16 %v8680_v55, %v8679_v28 }
 0x8a1   : > { %v13836_v39 = vpack.c.bf16 %v8952_v21, %v8951_v59 }
 0x8a3   : > { %13744 = vmatpush3.bf16.msra.mxu0 %v13743_v56  ;;  %13792 = vmatpush3.bf16.msra.mxu1 %v13791_v31  ;;  %v8682_v56 = vld [vmem:[%s17111_s1 + $0x4e0] sm:$0xff] }
 0x8a4   : > { %13745 = vmatprep.subr.bf16.mxu0 %v14262_v34  ;;  %13817 = vmatprep.subr.bf16.mxu1 %v14262_v34  ;;  %v8954_v31 = vld [vmem:[%s17111_s1 + $0x7e0] sm:$0xff] }
 0x8e9   : > { %v7781_v43 = vpop.f32.mrb[104].mxu0  ;;  %v8070_v4 = vpop.f32.mrb[106].mxu1 }
 0x8ea   : > { %v8075_v7 = vmax.f32 %v7781_v43, %v8070_v4  ;;  %v12293_v22 = vpop.f32.mrb[105].mxu0  ;;  %v12417_v32 = vpop.f32.mrb[107].mxu1  ;;  %v13767_v43 = vpack.c.bf16 %v8682_v56, %v8681_v27  ;;  %v13839_v4 = vpack.c.bf16 %v8954_v31, %v8953_v48  ;;  %v10101_v31 = vld [vmem:[%s17112_s2 + $0x7] ss:$0 sm:$0xff] }
 0x8eb   : > { %v8956_v32 = vld [vmem:[%s17111_s1 + $0x5e8] sm:$0xff] }
 0x959   : > { %v8360_v47 = vpop.f32.mrb[106].mxu0  ;;  %v8650_v53 = vpop.f32.mrb[108].mxu1 }
 0x95a   : > { %v8365_v6 = vmax.f32 %v8075_v7, %v8360_v47  ;;  %v12541_v62 = vpop.f32.mrb[107].mxu0  ;;  %v12665_v20 = vpop.f32.mrb[109].mxu1  ;;  %v8957_v47 = vld [vmem:[%s17111_s1 + $0x5f0] sm:$0xff] }
 0x95b   : > { %v9202_v62 = vld [vmem:[%s17111_s1 + $0x6f0] sm:$0xff]  ;;  %v8958_v20 = vld [vmem:[%s17111_s1 + $0x5f8] sm:$0xff] }
 0x95c   : > { %v8655_v10 = vmax.f32 %v8365_v6, %v8650_v53  ;;  %v9201_v53 = vld [vmem:[%s17111_s1 + $0x6e8] sm:$0xff]  ;;  %v13794_v6 = vpack.c.bf16 %v8957_v47, %v8956_v32  ;;  %v9114_v32 = vld [vmem:[%s17111_s1 + $0x670] sm:$0xff] }
 0x95e   : > { %v8661_v3 = vadd.f32 %v10100_v5, %v8655_v10  ;;  %v8959_v5 = vld [vmem:[%s17111_s1 + $0x600] sm:$0xff]  ;;  %v13866_v10 = vpack.c.bf16 %v9202_v62, %v9201_v53  ;;  %v9115_v53 = vld [vmem:[%s17111_s1 + $0x678] sm:$0xff] }
 0x95f   : > { %v13797_v19 = vpack.c.bf16 %v8959_v5, %v8958_v20 }
 0x960   : > { %v8662_v44 = vmax.f32 %v8661_v3, 0.0  ;;  %v9203_v3 = vld [vmem:[%s17111_s1 + $0x6f8] sm:$0xff] }
 0x962   : > { %8664 = vst [vmem:[#allocation8 + $0x1] sm:$0xf] %v8662_v44  ;;  %v9204_v44 = vld [vmem:[%s17111_s1 + $0x700] sm:$0xff] }
 0x963   : > { %v13869_v0 = vpack.c.bf16 %v9204_v44, %v9203_v3  ;;  %v9118_v3 = vld [vmem:[%s17111_s1 + $0x690] sm:$0xff] }
 0x969   : > { %v8683_v58 = vld [vmem:[#allocation8 + $0x1] sm:$0xf] }
 0x96a   : > { %v8840_v42 = vld [vmem:[#allocation8 + $0x2] sm:$0xf]  ;;  %12699 = vmatmul.mubr.f32.vlgmr.msra.gmra.mrb[108].mxu0 %v8683_v58  ;;  %v9207_v58 = vld [vmem:[%s17111_s1 + $0x718] sm:$0xff] }
 0x96b   : > { %12769 = vmatmul.mubr.f32.vlgmr.msra.gmra.mrb[110].mxu1 %v8840_v42  ;;  %13747 = vmatpush3.bf16.msra.mxu0 %v13746_v57  ;;  %v8666_v7 = vld [vmem:[#allocation8] sm:$0xf]  ;;  %v9205_v57 = vld [vmem:[%s17111_s1 + $0x708] sm:$0xff]  ;;  %v9208_v42 = vld [vmem:[%s17111_s1 + $0x720] sm:$0xff] }
 0x96c   : > { %13819 = vmatpush3.bf16.msra.mxu1 %v13818_v12  ;;  %13748 = vmatprep.subr.bf16.mxu0 %v14262_v34  ;;  %v8938_v22 = vld [vmem:[#allocation8 + $0x1] sm:$0xf] }
 0x96d   : > { %13820 = vmatprep.subr.bf16.mxu1 %v14262_v34  ;;  %12733 = vmatprep.mubr.msk.f32.mxu0 %vm14263_vm7, %v17176_v52  ;;  %v9206_v12 = vld [vmem:[%s17111_s1 + $0x710] sm:$0xff] }
 0x96e   : > { %12838 = vmatprep.mubr.msk.f32.mxu1 %vm14263_vm7, %v17176_v52  ;;  %v13872_v23 = vpack.c.bf16 %v9206_v12, %v9205_v57  ;;  %v9122_v57 = vld [vmem:[%s17111_s1 + $0x6b0] sm:$0xff] }
 0x96f   : > { %13750 = vmatpush3.bf16.msra.mxu0 %v13749_v40  ;;  %v13803_v40 = vpack.c.bf16 %v8963_v9, %v8962_v2  ;;  %v13854_v12 = vpack.c.bf16 %v9122_v57, %v9121_v29  ;;  %v9125_v9 = vld [vmem:[%s17111_s1 + $0x6c8] sm:$0xff]  ;;  %v9397_v57 = vld [vmem:[%s17111_s1 + $0x898] sm:$0xff] }
 0x970   : > { %13822 = vmatpush3.bf16.msra.mxu1 %v13821_v46  ;;  %13751 = vmatprep.subr.bf16.mxu0 %v14262_v34  ;;  %v13875_v46 = vpack.c.bf16 %v9208_v42, %v9207_v58  ;;  %v9126_v58 = vld [vmem:[%s17111_s1 + $0x6d0] sm:$0xff] }
 0x971   : > { %13823 = vmatprep.subr.bf16.mxu1 %v14262_v34  ;;  %v13860_v42 = vpack.c.bf16 %v9126_v58, %v9125_v9 }
 0x973   : > { %13753 = vmatpush3.bf16.msra.mxu0 %v13752_v24  ;;  %v9210_v24 = vld [vmem:[%s17111_s1 + $0x730] sm:$0xff] }
 0x974   : > { %13825 = vmatpush3.bf16.msra.mxu1 %v13824_v45  ;;  %13754 = vmatprep.subr.bf16.mxu0 %v14262_v34  ;;  %v13878_v45 = vpack.c.bf16 %v9210_v24, %v9209_v33  ;;  %v9304_v33 = vld [vmem:[%s17111_s1 + $0x7f0] sm:$0xff]  ;;  %v9305_v24 = vld [vmem:[%s17111_s1 + $0x7f8] sm:$0xff] }
 0x975   : > { %13826 = vmatprep.subr.bf16.mxu1 %v14262_v34  ;;  %v13893_v36 = vpack.c.bf16 %v9306_v14, %v9305_v24 }
 0x977   : > { %13756 = vmatpush3.bf16.msra.mxu0 %v13755_v30  ;;  %v9212_v30 = vld [vmem:[%s17111_s1 + $0x740] sm:$0xff] }
 0x978   : > { %13828 = vmatpush3.bf16.msra.mxu1 %v13827_v25  ;;  %13757 = vmatprep.subr.bf16.mxu0 %v14262_v34  ;;  %v13881_v25 = vpack.c.bf16 %v9212_v30, %v9211_v16  ;;  %v9309_v30 = vld [vmem:[%s17111_s1 + $0x818] sm:$0xff] }
 0x979   : > { %13829 = vmatprep.subr.bf16.mxu1 %v14262_v34 }
 0x97b   : > { %13759 = vmatpush3.bf16.msra.mxu0 %v13758_v61  ;;  %v9214_v61 = vld [vmem:[%s17111_s1 + $0x750] sm:$0xff] }
 0x97c   : > { %13831 = vmatpush3.bf16.msra.mxu1 %v13830_v11  ;;  %13760 = vmatprep.subr.bf16.mxu0 %v14262_v34  ;;  %v13884_v11 = vpack.c.bf16 %v9214_v61, %v9213_v26  ;;  %v9313_v61 = vld [vmem:[%s17111_s1 + $0x838] sm:$0xff] }
 0x97d   : > { %13832 = vmatprep.subr.bf16.mxu1 %v14262_v34 }
 0x97f   : > { %13762 = vmatpush3.bf16.msra.mxu0 %v13761_v63  ;;  %v9216_v63 = vld [vmem:[%s17111_s1 + $0x760] sm:$0xff] }
 0x980   : > { %13834 = vmatpush3.bf16.msra.mxu1 %v13833_v41  ;;  %13763 = vmatprep.subr.bf16.mxu0 %v14262_v34  ;;  %v13887_v41 = vpack.c.bf16 %v9216_v63, %v9215_v60  ;;  %v9316_v60 = vld [vmem:[%s17111_s1 + $0x850] sm:$0xff]  ;;  %v9317_v63 = vld [vmem:[%s17111_s1 + $0x858] sm:$0xff] }
 0x981   : > { %13835 = vmatprep.subr.bf16.mxu1 %v14262_v34 }
 0x983   : > { %13765 = vmatpush3.bf16.msra.mxu0 %v13764_v15 }
 0x984   : > { %13837 = vmatpush3.bf16.msra.mxu1 %v13836_v39  ;;  %13766 = vmatprep.subr.bf16.mxu0 %v14262_v34 }
 0x985   : > { %13838 = vmatprep.subr.bf16.mxu1 %v14262_v34 }
 0x987   : > { %13768 = vmatpush3.bf16.msra.mxu0 %v13767_v43 }
 0x988   : > { %13840 = vmatpush3.bf16.msra.mxu1 %v13839_v4  ;;  %13793 = vmatprep.subr.bf16.mxu0 %v14262_v34 }
 0x989   : > { %13865 = vmatprep.subr.bf16.mxu1 %v14262_v34 }
 0x98a   : > { %12734 = vmatmul.mubr.f32.vlgmr.msra.gmra.mrb[110].mxu0 %v8666_v7 }
 0x98b   : > { %12839 = vmatmul.mubr.f32.vlgmr.msra.gmra.mrb[112].mxu1 %v8938_v22  ;;  %12803 = vmatprep.mubr.msk.f32.mxu0 %vm14263_vm7, %v17176_v52  ;;  %v9113_v22 = vld [vmem:[%s17111_s1 + $0x668] sm:$0xff] }
 0x98c   : > { %12908 = vmatprep.mubr.msk.f32.mxu1 %vm14263_vm7, %v17176_v52  ;;  %13795 = vmatpush3.bf16.msra.mxu0 %v13794_v6  ;;  %v13842_v47 = vpack.c.bf16 %v9114_v32, %v9113_v22  ;;  %v9116_v6 = vld [vmem:[%s17111_s1 + $0x680] sm:$0xff] }
 0x98d   : > { %13867 = vmatpush3.bf16.msra.mxu1 %v13866_v10  ;;  %13796 = vmatprep.subr.bf16.mxu0 %v14262_v34  ;;  %v13845_v5 = vpack.c.bf16 %v9116_v6, %v9115_v53  ;;  %v9117_v10 = vld [vmem:[%s17111_s1 + $0x688] sm:$0xff] }
 0x98e   : > { %13868 = vmatprep.subr.bf16.mxu1 %v14262_v34  ;;  %v13848_v44 = vpack.c.bf16 %v9118_v3, %v9117_v10 }
 0x990   : > { %13798 = vmatpush3.bf16.msra.mxu0 %v13797_v19  ;;  %v9119_v19 = vld [vmem:[%s17111_s1 + $0x698] sm:$0xff] }
 0x991   : > { %13870 = vmatpush3.bf16.msra.mxu1 %v13869_v0  ;;  %13799 = vmatprep.subr.bf16.mxu0 %v14262_v34  ;;  %v9120_v0 = vld [vmem:[%s17111_s1 + $0x6a0] sm:$0xff] }
 0x992   : > { %13871 = vmatprep.subr.bf16.mxu1 %v14262_v34  ;;  %v13851_v54 = vpack.c.bf16 %v9120_v0, %v9119_v19 }
 0x994   : > { %13801 = vmatpush3.bf16.msra.mxu0 %v13800_v37  ;;  %v9123_v37 = vld [vmem:[%s17111_s1 + $0x6b8] sm:$0xff] }
 0x995   : > { %13873 = vmatpush3.bf16.msra.mxu1 %v13872_v23  ;;  %13802 = vmatprep.subr.bf16.mxu0 %v14262_v34  ;;  %v9124_v23 = vld [vmem:[%s17111_s1 + $0x6c0] sm:$0xff] }
 0x996   : > { %13874 = vmatprep.subr.bf16.mxu1 %v14262_v34  ;;  %v13857_v2 = vpack.c.bf16 %v9124_v23, %v9123_v37  ;;  %v9319_v23 = vld [vmem:[%s17112_s2 + $0x9] sm:$0x1] }
 0x998   : > { %13804 = vmatpush3.bf16.msra.mxu0 %v13803_v40  ;;  %v9127_v40 = vld [vmem:[%s17111_s1 + $0x6d8] sm:$0xff] }
 0x999   : > { %13876 = vmatpush3.bf16.msra.mxu1 %v13875_v46  ;;  %13805 = vmatprep.subr.bf16.mxu0 %v14262_v34  ;;  %v9128_v46 = vld [vmem:[%s17111_s1 + $0x6e0] sm:$0xff] }
 0x99a   : > { %13877 = vmatprep.subr.bf16.mxu1 %v14262_v34  ;;  %v13863_v51 = vpack.c.bf16 %v9128_v46, %v9127_v40  ;;  %v9399_v40 = vld [vmem:[%s17112_s2 + $0xa] sm:$0x1] }
 0x99c   : > { %13807 = vmatpush3.bf16.msra.mxu0 %v13806_v1  ;;  %v9303_v1 = vld [vmem:[%s17111_s1 + $0x7e8] sm:$0xff] }
 0x99d   : > { %13879 = vmatpush3.bf16.msra.mxu1 %v13878_v45  ;;  %13808 = vmatprep.subr.bf16.mxu0 %v14262_v34  ;;  %v13890_v45 = vpack.c.bf16 %v9304_v33, %v9303_v1 }
 0x99e   : > { %13880 = vmatprep.subr.bf16.mxu1 %v14262_v34 }
 0x9a0   : > { %13810 = vmatpush3.bf16.msra.mxu0 %v13809_v50  ;;  %v9308_v50 = vld [vmem:[%s17111_s1 + $0x810] sm:$0xff] }
 0x9a1   : > { %13882 = vmatpush3.bf16.msra.mxu1 %v13881_v25  ;;  %13811 = vmatprep.subr.bf16.mxu0 %v14262_v34  ;;  %v9310_v25 = vld [vmem:[%s17111_s1 + $0x820] sm:$0xff] }
 0x9a2   : > { %13883 = vmatprep.subr.bf16.mxu1 %v14262_v34  ;;  %v13899_v18 = vpack.c.bf16 %v9310_v25, %v9309_v30 }
 0x9a4   : > { %13813 = vmatpush3.bf16.msra.mxu0 %v13812_v49  ;;  %v9312_v49 = vld [vmem:[%s17111_s1 + $0x830] sm:$0xff] }
 0x9a5   : > { %13885 = vmatpush3.bf16.msra.mxu1 %v13884_v11  ;;  %13814 = vmatprep.subr.bf16.mxu0 %v14262_v34  ;;  %v13902_v26 = vpack.c.bf16 %v9312_v49, %v9311_v38  ;;  %v9314_v11 = vld [vmem:[%s17111_s1 + $0x840] sm:$0xff] }
 0x9a6   : > { %13886 = vmatprep.subr.bf16.mxu1 %v14262_v34  ;;  %v13905_v17 = vpack.c.bf16 %v9314_v11, %v9313_v61 }
 0x9a8   : > { %13816 = vmatpush3.bf16.msra.mxu0 %v13815_v13  ;;  %v13908_v13 = vpack.c.bf16 %v9316_v60, %v9315_v8 }
 0x9a9   : > { %13888 = vmatpush3.bf16.msra.mxu1 %v13887_v41  ;;  %13841 = vmatprep.subr.bf16.mxu0 %v14262_v34  ;;  %v9318_v41 = vld [vmem:[%s17111_s1 + $0x860] sm:$0xff] }
 0x9aa   : > { %13913 = vmatprep.subr.bf16.mxu1 %v14262_v34 }
 0xa3d   : > { %v8766_v28 = vpop.f32.mrb[108].mxu0 }
 0xa3e   : > { %v8923_v55 = vpop.f32.mrb[110].mxu1  ;;  %v12700_v59 = vpop.f32.mrb[109].mxu0 }
 0xa3f   : > { %v12770_v21 = vpop.f32.mrb[111].mxu1  ;;  %v9392_v59 = vld [vmem:[%s17111_s1 + $0x870] sm:$0xff] }
 0xa40   : > { %v9393_v21 = vld [vmem:[%s17111_s1 + $0x878] sm:$0xff] }
 0xa5d   : > { %v8836_v15 = vpop.f32.mrb[110].mxu0 }
 0xa5e   : > { %v16903_v39 = vpop.f32.mrb[112].mxu1  ;;  %v8837_v27 = vadd.f32 %v8836_v15, %v8766_v28  ;;  %v12735_v56 = vpop.f32.mrb[111].mxu0  ;;  %v13911_v28 = vpack.c.bf16 %v9318_v41, %v9317_v63 }
 0xa5f   : > { %v12840_v48 = vpop.f32.mrb[113].mxu1 }
 0xa60   : > { %v8927_v43 = vadd.f32 %v8923_v55, %v8837_v27  ;;  %v9391_v55 = vld [vmem:[%s17111_s1 + $0x868] sm:$0xff]  ;;  %v9394_v27 = vld [vmem:[%s17111_s1 + $0x880] sm:$0xff] }
 0xa61   : > { %v13914_v15 = vpack.c.bf16 %v9392_v59, %v9391_v55  ;;  %v13917_v56 = vpack.c.bf16 %v9394_v27, %v9393_v21  ;;  %v9395_v48 = vld [vmem:[%s17111_s1 + $0x888] sm:$0xff] }
 0xa62   : > { %v8933_v4 = vadd.f32 %v10101_v31, %v8927_v43  ;;  %v9396_v31 = vld [vmem:[%s17111_s1 + $0x890] sm:$0xff] }
 0xa63   : > { %v13920_v43 = vpack.c.bf16 %v9396_v31, %v9395_v48 }
 0xa64   : > { %v8934_v7 = vmax.f32 %v8933_v4, 0.0 }
 0xa66   : > { %8936 = vst [vmem:[#allocation9 + $0x1] sm:$0xf] %v8934_v7 }
 0xa6d   : > { %v8955_v62 = vld [vmem:[#allocation9] sm:$0xf] }
 0xa6e   : > { %v9200_v20 = vld [vmem:[#allocation9 + $0x2] sm:$0xf]  ;;  %12804 = vmatmul.mubr.f32.vlgmr.msra.gmra.mrb[112].mxu0 %v8955_v62 }
 0xa6f   : > { %12909 = vmatmul.mubr.f32.vlgmr.msra.gmra.mrb[114].mxu1 %v9200_v20  ;;  %13843 = vmatpush3.bf16.msra.mxu0 %v13842_v47  ;;  %v9112_v35 = vld [vmem:[#allocation9 + $0x1] sm:$0xf]  ;;  %v10102_v20 = vld [vmem:[%s17112_s2 + $0x8] ss:$0 sm:$0xff] }
 0xa70   : > { %12873 = vmatprep.mubr.msk.f32.mxu0 %vm14263_vm7, %v17176_v52  ;;  %13844 = vmatprep.subr.bf16.mxu0 %v14262_v34 }
 0xa71   : > { %12962 = vmatprep.mubr.msk.f32.mxu1 %vm14263_vm7, %v17176_v52  ;;  %13915 = vmatpush3.bf16.msra.mxu1 %v13914_v15 }
 0xa72   : > { %13916 = vmatprep.subr.bf16.mxu1 %v14262_v34 }
 0xa73   : > { %13846 = vmatpush3.bf16.msra.mxu0 %v13845_v5 }
 0xa74   : > { %13847 = vmatprep.subr.bf16.mxu0 %v14262_v34 }
 0xa75   : > { %13918 = vmatpush3.bf16.msra.mxu1 %v13917_v56 }
 0xa76   : > { %13919 = vmatprep.subr.bf16.mxu1 %v14262_v34 }
 0xa77   : > { %13849 = vmatpush3.bf16.msra.mxu0 %v13848_v44 }
 0xa78   : > { %13850 = vmatprep.subr.bf16.mxu0 %v14262_v34 }
 0xa79   : > { %13921 = vmatpush3.bf16.msra.mxu1 %v13920_v43 }
 0xa7a   : > { %13922 = vmatprep.subr.bf16.mxu1 %v14262_v34 }
 0xa7b   : > { %13852 = vmatpush3.bf16.msra.mxu0 %v13851_v54 }
 0xa7c   : > { %13853 = vmatprep.subr.bf16.mxu0 %v14262_v34 }
 0xa7f   : > { %13855 = vmatpush3.bf16.msra.mxu0 %v13854_v12  ;;  %v9398_v12 = vld [vmem:[%s17111_s1 + $0x8a0] sm:$0xff] }
 0xa80   : > { %13856 = vmatprep.subr.bf16.mxu0 %v14262_v34  ;;  %v13923_v37 = vpack.c.bf16 %v9398_v12, %v9397_v57 }
 0xa82   : > { %13924 = vmatpush3.bf16.msra.mxu1 %v13923_v37 }
 0xa83   : > { %13858 = vmatpush3.bf16.msra.mxu0 %v13857_v2 }
 0xa84   : > { %13859 = vmatprep.subr.bf16.mxu0 %v14262_v34 }
 0xa87   : > { %13861 = vmatpush3.bf16.msra.mxu0 %v13860_v42 }
 0xa88   : > { %13862 = vmatprep.subr.bf16.mxu0 %v14262_v34 }
 0xa8b   : > { %13864 = vmatpush3.bf16.msra.mxu0 %v13863_v51 }
 0xa8c   : > { %13889 = vmatprep.subr.bf16.mxu0 %v14262_v34 }
 0xa8e   : > { %12874 = vmatmul.mubr.f32.vlgmr.msra.gmra.mrb[114].mxu0 %v9112_v35 }
 0xa8f   : > { %12943 = vmatprep.mubr.msk.f32.mxu0 %vm14263_vm7, %v17176_v52  ;;  %13891 = vmatpush3.bf16.msra.mxu0 %v13890_v45  ;;  %v9307_v52 = vld [vmem:[%s17111_s1 + $0x808] sm:$0xff] }
 0xa90   : > { %13892 = vmatprep.subr.bf16.mxu0 %v14262_v34  ;;  %v13896_v16 = vpack.c.bf16 %v9308_v50, %v9307_v52 }
 0xa93   : > { %13894 = vmatpush3.bf16.msra.mxu0 %v13893_v36 }
 0xa94   : > { %13895 = vmatprep.subr.bf16.mxu0 %v14262_v34 }
 0xa97   : > { %13897 = vmatpush3.bf16.msra.mxu0 %v13896_v16 }
 0xa98   : > { %13898 = vmatprep.subr.bf16.mxu0 %v14262_v34 }
 0xa9b   : > { %13900 = vmatpush3.bf16.msra.mxu0 %v13899_v18 }
 0xa9c   : > { %13901 = vmatprep.subr.bf16.mxu0 %v14262_v34 }
 0xa9f   : > { %13903 = vmatpush3.bf16.msra.mxu0 %v13902_v26 }
 0xaa0   : > { %13904 = vmatprep.subr.bf16.mxu0 %v14262_v34 }
 0xaa3   : > { %13906 = vmatpush3.bf16.msra.mxu0 %v13905_v17 }
 0xaa4   : > { %13907 = vmatprep.subr.bf16.mxu0 %v14262_v34 }
 0xaa7   : > { %13909 = vmatpush3.bf16.msra.mxu0 %v13908_v13 }
 0xaa8   : > { %13910 = vmatprep.subr.bf16.mxu0 %v14262_v34 }
 0xaab   : > { %13912 = vmatpush3.bf16.msra.mxu0 %v13911_v28 }
 0xb41   : > { %v9038_v4 = vpop.f32.mrb[112].mxu0 }
 0xb42   : > { %v9283_v7 = vpop.f32.mrb[114].mxu1  ;;  %v9109_v22 = vadd.f32 %v16903_v39, %v9038_v4  ;;  %v12805_v32 = vpop.f32.mrb[113].mxu0 }
 0xb43   : > { %v12910_v47 = vpop.f32.mrb[115].mxu1 }
 0xb61   : > { %v9195_v53 = vpop.f32.mrb[114].mxu0 }
 0xb62   : > { %v9199_v6 = vadd.f32 %v9195_v53, %v9109_v22  ;;  %v12875_v62 = vpop.f32.mrb[115].mxu0 }
 0xb64   : > { %v9287_v5 = vadd.f32 %v9283_v7, %v9199_v6 }
 0xb66   : > { %v9293_v10 = vadd.f32 %v10102_v20, %v9287_v5 }
 0xb68   : > { %v9294_v3 = vmax.f32 %v9293_v10, 0.0 }
 0xb6a   : > { %v9296_v44 = vsel %vm9295_vm8, %v9294_v3, -inf }
 0xb6b   : > { %v9297_v19 = vrot.slane %v9296_v44, 4 }
 0xb6d   : > { %v9298_v34 = vmax.f32 %v9296_v44, %v9297_v19 }
 0xb6f   : > { %v9299_v0 = vrot.slane %v9298_v34, 2 }
 0xb71   : > { %v9300_v54 = vmax.f32 %v9298_v34, %v9299_v0 }
 0xb73   : > { %v9301_v39 = vrot.slane %v9300_v54, 1 }
 0xb75   : > { %v9302_v29 = vmax.f32 %v9300_v54, %v9301_v39 }
 0xb77   : > { %12944 = vmatmul.mubr.f32.vlgmr.msra.gmra.mrb[116].mxu0 %v9302_v29 }
 0xc4a   : > { %v9386_v2 = vpop.f32.mrb[116].mxu0 }
 0xc4b   : > { %v9387_v9 = vadd.f32 %v9386_v2, %v9319_v23  ;;  %v12945_v58 = vpop.f32.mrb[117].mxu0 }
 0xc4d   : > { %v9390_v42 = vmax.f32 %v9387_v9, 0.0 }
 0xc4f   : > { %12963 = vmatmul.mubr.msk.f32.vlgmr.msra.gmra.mrb[116].mxu1 %vm5778_vm6, %v9390_v42 }
 0xd22   : > { %v9469_v46 = vpop.f32.mrb[116].mxu1 }
 0xd23   : > { %v9470_v51 = vadd.f32 %v9469_v46, %v9399_v40  ;;  %v12964_v35 = vpop.f32.mrb[117].mxu1 }
 0xd25   : > { %v9473_v1 = vmax.f32 %v9470_v51, 0.0 }
 0xd27   : > { %9474 = vst [vmem:[%s162_s4] sm:$0x1] %v9473_v1 }
 0xd28   : > { %14210 = shalt.err (!%p14207_p3)
}
 0xd29   : > { %s14211_s19 = scalar_lea.hbm %s17068_s8, 16  ;;  %s14215_s25 = scalar_lea.hbm %s17113_s3, 32 }
 0xd2a   : > { %p14212_p4 = scmp.ne.s32.totalorder %s17068_s8, %s14211_s19  ;;  %p14216_p9 = scmp.lt.u32.totalorder %s17068_s8, %s17113_s3 }
 0xd2b   : > { %p14217_p10 = scmp.lt.u32.totalorder %s14215_s25, %s14211_s19  ;;  %p14219_p12 = scmp.lt.u32.totalorder %s14211_s19, %s17068_s8 }
 0xd2c   : > { %p14213_p7 = pnand %p14212_p4, %p14323_p5 }
 0xd2d   : > { %p14218_p11 = por %p14217_p10, %p14216_p9 }
 0xd2e   : > { %p14214_p8 = pneg %p14213_p7 }
 0xd2f   : > { %p14220_p13 = por %p14219_p12, %p14218_p11 }
 0xd31   : > { %p14221_p0 = pnand %p14220_p13, %p14214_p8 }
 0xd33   : > { %14224 = shalt.err (!%p14221_p0)
}
 0xd34   : > { %14155 = dma.vmem_to_hbm [thread:$0]  (%p14323_p5), %s17070_s5, 16, %s17068_s8, %s9476_s9  }
 0xd35 PF: > { %p14161_p1 = scmp.ge.s32.totalorder %s14259_s15, 2  ;;  %s9500_s28 = sand.u32 1, %s14247_s12  }
 0xd36   : > { %s9501_s29 = scalar_lea.sflag [#allocation11], %s9500_s28 }
 0xd37   : > { %p14158_p2 = pnand %p14161_p1, %p14327_p6 }
 0xd39   : > { %14242 = dma.done.wait (!%p14158_p2), %s9501_s29, 16  }
 0xd3a   : > { %14244 = vsyncadd (!%p14158_p2), %s9501_s29, 4294967280  ;;  %p13_p3 = scmp.ge.s32.totalorder %s14310_s18, 4   ;;  %s17177_s12 = smov %s14251_s13 }
 0xd3b   : > { %s17178_s13 = smov %s14255_s14  ;;  %s17179_s14 = smov %s14321_s21 }
 0xd3c   : > { %s17180_s15 = smov %s14310_s18  ;;  %15 = sbr.rel (!%p13_p3) target bundleno = 3 (0x3), region = 301 }
 0xd43   :  { %9505 = vsyncpa [#allocation11], 1 }
 0xd44   :  { %9507 = vsyncpa [#allocation11 + $0x1], 1 }

</bundles_post_ra>
